<compile_context>
chip_gen: v6e
topology: v6e:2x2x1
jax: 0.10.0
libtpu: 0.0.40
codegen_flags: <defaults>
</compile_context>

<pallas_src>
import functools

import jax
import jax.numpy as jnp
from jax import lax
from jax.experimental import pallas as pl
from jax.experimental.pallas import tpu as pltpu


# ----------------------------------------------------------------------------
# Kernel: channel mean/max -> in-kernel reflect pad (VMEM scratch) -> 7x7 conv
# ----------------------------------------------------------------------------
def spatial_attention_kernel(x_ref, w_ref, b_ref, out_ref, avgp_ref, maxp_ref):
    _, _, H, W = out_ref.shape                 # block = (1, 1, H, W)

    xc = x_ref[0]                              # (C, H, W) float32
    avg = jnp.mean(xc, axis=0)                 # (H, W)  channel mean
    mx = jnp.max(xc, axis=0)                   # (H, W)  channel max

    def fill_reflect(pad_ref, a):
        # interior
        pad_ref[3:3 + H, 3:3 + W] = a
        # rows (reflection excludes the edge, PyTorch 'reflect')
        for i in range(3):
            pad_ref[2 - i:3 - i, 3:3 + W] = a[1 + i:2 + i, :]
            pad_ref[H + 3 + i:H + 4 + i, 3:3 + W] = a[H - 2 - i:H - 1 - i, :]
        # columns (on the already row-padded buffer -> separable reflect)
        for j in range(3):
            pad_ref[:, 2 - j:3 - j] = pad_ref[:, 4 + j:5 + j]
            pad_ref[:, W + 3 + j:W + 4 + j] = pad_ref[:, W + 1 - j:W + 2 - j]

    fill_reflect(avgp_ref, avg)
    fill_reflect(maxp_ref, mx)

    # 7x7 conv over the two pooled maps, weights/bias from SMEM.
    acc = jnp.zeros((H, W), jnp.float32) + b_ref[0]
    k = 0
    for dh in range(7):
        for dw in range(7):
            acc = acc + avgp_ref[dh:dh + H, dw:dw + W] * w_ref[0, k] \
                      + maxp_ref[dh:dh + H, dw:dw + W] * w_ref[1, k]
            k += 1

    out_ref[...] = acc[None, None].astype(out_ref.dtype)


# ----------------------------------------------------------------------------
# Wrapper
# ----------------------------------------------------------------------------
@functools.partial(jax.jit, static_argnames=())
def spatial_attention_forward(x_nchw, w_oihw, bias):
    """x_nchw: (B, C, H, W); w_oihw: (1, 2, 7, 7); bias: (1,)."""
    B, C, H, W = x_nchw.shape
    xf = x_nchw.astype(jnp.float32)
    w2 = w_oihw.reshape(2, 49).astype(jnp.float32)     # (in=2, 7*7)
    b1 = bias.reshape(1).astype(jnp.float32)

    smem_spec = pl.BlockSpec(memory_space=pltpu.MemorySpace.SMEM)

    out = pl.pallas_call(
        spatial_attention_kernel,
        grid=(B,),
        in_specs=[
            pl.BlockSpec((1, C, H, W), lambda b: (b, 0, 0, 0)),
            smem_spec,           # conv weights (2, 49)
            smem_spec,           # bias (1,)
        ],
        out_specs=pl.BlockSpec((1, 1, H, W), lambda b: (b, 0, 0, 0)),
        out_shape=jax.ShapeDtypeStruct((B, 1, H, W), jnp.float32),
        scratch_shapes=[
            pltpu.VMEM((H + 6, W + 6), jnp.float32),   # reflect-padded avg map
            pltpu.VMEM((H + 6, W + 6), jnp.float32),   # reflect-padded max map
        ],
        compiler_params=pltpu.CompilerParams(
            dimension_semantics=("parallel",)),
    )(xf, w2, b1)

    return out.astype(x_nchw.dtype)


# ----------------------------------------------------------------------------
# Pure-JAX reference (sanity check)
# ----------------------------------------------------------------------------
def spatial_attention_reference(x_nchw, w_oihw, bias):
    x = x_nchw.astype(jnp.float32)
    avg = jnp.mean(x, axis=1, keepdims=True)
    mx = jnp.max(x, axis=1, keepdims=True)
    x2 = jnp.concatenate([avg, mx], axis=1)                        # (B, 2, H, W)
    x2p = jnp.pad(x2, ((0, 0), (0, 0), (3, 3), (3, 3)), mode='reflect')
    y = lax.conv_general_dilated(
        x2p, w_oihw.astype(jnp.float32), (1, 1), 'VALID',
        dimension_numbers=('NCHW', 'OIHW', 'NCHW'),
        precision=lax.Precision.HIGHEST)
    return (y + bias.reshape(1, 1, 1, 1)).astype(x_nchw.dtype)


# ----------------------------------------------------------------------------
if __name__ == "__main__":
    key = jax.random.PRNGKey(0)
    kx, kw, kb = jax.random.split(key, 3)

    B, C, H, W = 2, 4, 16, 16
    x = jax.random.normal(kx, (B, C, H, W), jnp.float32)           # NCHW input
    w = jax.random.normal(kw, (1, 2, 7, 7), jnp.float32) * 0.1     # Conv2d(2,1,7)
    b = jax.random.normal(kb, (1,), jnp.float32) * 0.1

    out = jax.block_until_ready(spatial_attention_forward(x, w, b))
    ref = jax.block_until_ready(spatial_attention_reference(x, w, b))

    assert out.shape == (B, 1, H, W) and out.dtype == x.dtype
    max_err = float(jnp.max(jnp.abs(out - ref)))
    assert max_err < 1e-4, f"mismatch vs reference: max abs err = {max_err}"
    print("KERNEL_OK")
</pallas_src>

<mosaic_0001>
module attributes {stable_mosaic.version = 11 : i64} {
  func.func @spatial_attention_kernel(%arg0: i32, %arg1: memref<1x4x16x16xf32, #tpu.memory_space<vmem>>, %arg2: memref<2x49xf32, #tpu.memory_space<smem>>, %arg3: memref<1xf32, #tpu.memory_space<smem>>, %arg4: memref<1x1x16x16xf32, #tpu.memory_space<vmem>>, %arg5: memref<22x22xf32, #tpu.memory_space<vmem>>, %arg6: memref<22x22xf32, #tpu.memory_space<vmem>>) attributes {dimension_semantics = [#tpu.dimension_semantics<parallel>], iteration_bounds = array<i64: 2>, scalar_prefetch = 0 : i64, scratch_operands = 2 : i64, tpu.core_type = #tpu.core_type<tc>, window_params = [{transform_indices = @transform_0, window_bounds = array<i64: 1, 4, 16, 16>}, {transform_indices = @transform_1, window_bounds = array<i64: 2, 49>}, {transform_indices = @transform_2, window_bounds = array<i64: 1>}, {transform_indices = @transform_3, window_bounds = array<i64: 1, 1, 16, 16>}]} {
    %c0 = arith.constant 0 : index
    %c0_0 = arith.constant 0 : index
    %c0_1 = arith.constant 0 : index
    %c0_2 = arith.constant 0 : index
    %0 = vector.load %arg1[%c0, %c0_0, %c0_1, %c0_2] : memref<1x4x16x16xf32, #tpu.memory_space<vmem>>, vector<1x4x16x16xf32>
    %1 = vector.shape_cast %0 : vector<1x4x16x16xf32> to vector<4x16x16xf32>
    %cst = arith.constant dense<0.000000e+00> : vector<16x16xf32>
    %2 = vector.multi_reduction <add>, %1, %cst [0] : vector<4x16x16xf32> to vector<16x16xf32>
    %cst_3 = arith.constant 4.000000e+00 : f32
    %3 = vector.broadcast %cst_3 : f32 to vector<16x16xf32>
    %4 = arith.divf %2, %3 : vector<16x16xf32>
    %cst_4 = arith.constant dense<0xFF800000> : vector<16x16xf32>
    %5 = vector.multi_reduction <maximumf>, %1, %cst_4 [0] : vector<4x16x16xf32> to vector<16x16xf32>
    %c3 = arith.constant 3 : index
    %c3_5 = arith.constant 3 : index
    %6 = vector.load %arg5[%c3, %c3_5] : memref<22x22xf32, #tpu.memory_space<vmem>>, vector<16x16xf32>
    tpu.vector_store %arg5[%c3, %c3_5], %4 {strides = array<i32>} : memref<22x22xf32, #tpu.memory_space<vmem>>, vector<16x16xf32>,
    %7 = vector.extract_strided_slice %4 {offsets = [1, 0], sizes = [1, 16], strides = [1, 1]} : vector<16x16xf32> to vector<1x16xf32>
    %c2 = arith.constant 2 : index
    %c3_6 = arith.constant 3 : index
    %8 = vector.load %arg5[%c2, %c3_6] : memref<22x22xf32, #tpu.memory_space<vmem>>, vector<1x16xf32>
    tpu.vector_store %arg5[%c2, %c3_6], %7 {strides = array<i32>} : memref<22x22xf32, #tpu.memory_space<vmem>>, vector<1x16xf32>,
    %9 = vector.extract_strided_slice %4 {offsets = [14, 0], sizes = [1, 16], strides = [1, 1]} : vector<16x16xf32> to vector<1x16xf32>
    %c19 = arith.constant 19 : index
    %c3_7 = arith.constant 3 : index
    %10 = vector.load %arg5[%c19, %c3_7] : memref<22x22xf32, #tpu.memory_space<vmem>>, vector<1x16xf32>
    tpu.vector_store %arg5[%c19, %c3_7], %9 {strides = array<i32>} : memref<22x22xf32, #tpu.memory_space<vmem>>, vector<1x16xf32>,
    %11 = vector.extract_strided_slice %4 {offsets = [2, 0], sizes = [1, 16], strides = [1, 1]} : vector<16x16xf32> to vector<1x16xf32>
    %c1 = arith.constant 1 : index
    %c3_8 = arith.constant 3 : index
    %12 = vector.load %arg5[%c1, %c3_8] : memref<22x22xf32, #tpu.memory_space<vmem>>, vector<1x16xf32>
    tpu.vector_store %arg5[%c1, %c3_8], %11 {strides = array<i32>} : memref<22x22xf32, #tpu.memory_space<vmem>>, vector<1x16xf32>,
    %13 = vector.extract_strided_slice %4 {offsets = [13, 0], sizes = [1, 16], strides = [1, 1]} : vector<16x16xf32> to vector<1x16xf32>
    %c20 = arith.constant 20 : index
    %c3_9 = arith.constant 3 : index
    %14 = vector.load %arg5[%c20, %c3_9] : memref<22x22xf32, #tpu.memory_space<vmem>>, vector<1x16xf32>
    tpu.vector_store %arg5[%c20, %c3_9], %13 {strides = array<i32>} : memref<22x22xf32, #tpu.memory_space<vmem>>, vector<1x16xf32>,
    %15 = vector.extract_strided_slice %4 {offsets = [3, 0], sizes = [1, 16], strides = [1, 1]} : vector<16x16xf32> to vector<1x16xf32>
    %c0_10 = arith.constant 0 : index
    %c3_11 = arith.constant 3 : index
    %16 = vector.load %arg5[%c0_10, %c3_11] : memref<22x22xf32, #tpu.memory_space<vmem>>, vector<1x16xf32>
    tpu.vector_store %arg5[%c0_10, %c3_11], %15 {strides = array<i32>} : memref<22x22xf32, #tpu.memory_space<vmem>>, vector<1x16xf32>,
    %17 = vector.extract_strided_slice %4 {offsets = [12, 0], sizes = [1, 16], strides = [1, 1]} : vector<16x16xf32> to vector<1x16xf32>
    %c21 = arith.constant 21 : index
    %c3_12 = arith.constant 3 : index
    %18 = vector.load %arg5[%c21, %c3_12] : memref<22x22xf32, #tpu.memory_space<vmem>>, vector<1x16xf32>
    tpu.vector_store %arg5[%c21, %c3_12], %17 {strides = array<i32>} : memref<22x22xf32, #tpu.memory_space<vmem>>, vector<1x16xf32>,
    %c0_13 = arith.constant 0 : index
    %c4 = arith.constant 4 : index
    %19 = vector.load %arg5[%c0_13, %c4] : memref<22x22xf32, #tpu.memory_space<vmem>>, vector<22x1xf32>
    %c0_14 = arith.constant 0 : index
    %c2_15 = arith.constant 2 : index
    %20 = vector.load %arg5[%c0_14, %c2_15] : memref<22x22xf32, #tpu.memory_space<vmem>>, vector<22x1xf32>
    tpu.vector_store %arg5[%c0_14, %c2_15], %19 {strides = array<i32>} : memref<22x22xf32, #tpu.memory_space<vmem>>, vector<22x1xf32>,
    %c0_16 = arith.constant 0 : index
    %c17 = arith.constant 17 : index
    %21 = vector.load %arg5[%c0_16, %c17] : memref<22x22xf32, #tpu.memory_space<vmem>>, vector<22x1xf32>
    %c0_17 = arith.constant 0 : index
    %c19_18 = arith.constant 19 : index
    %22 = vector.load %arg5[%c0_17, %c19_18] : memref<22x22xf32, #tpu.memory_space<vmem>>, vector<22x1xf32>
    tpu.vector_store %arg5[%c0_17, %c19_18], %21 {strides = array<i32>} : memref<22x22xf32, #tpu.memory_space<vmem>>, vector<22x1xf32>,
    %c0_19 = arith.constant 0 : index
    %c5 = arith.constant 5 : index
    %23 = vector.load %arg5[%c0_19, %c5] : memref<22x22xf32, #tpu.memory_space<vmem>>, vector<22x1xf32>
    %c0_20 = arith.constant 0 : index
    %c1_21 = arith.constant 1 : index
    %24 = vector.load %arg5[%c0_20, %c1_21] : memref<22x22xf32, #tpu.memory_space<vmem>>, vector<22x1xf32>
    tpu.vector_store %arg5[%c0_20, %c1_21], %23 {strides = array<i32>} : memref<22x22xf32, #tpu.memory_space<vmem>>, vector<22x1xf32>,
    %c0_22 = arith.constant 0 : index
    %c16 = arith.constant 16 : index
    %25 = vector.load %arg5[%c0_22, %c16] : memref<22x22xf32, #tpu.memory_space<vmem>>, vector<22x1xf32>
    %c0_23 = arith.constant 0 : index
    %c20_24 = arith.constant 20 : index
    %26 = vector.load %arg5[%c0_23, %c20_24] : memref<22x22xf32, #tpu.memory_space<vmem>>, vector<22x1xf32>
    tpu.vector_store %arg5[%c0_23, %c20_24], %25 {strides = array<i32>} : memref<22x22xf32, #tpu.memory_space<vmem>>, vector<22x1xf32>,
    %c0_25 = arith.constant 0 : index
    %c6 = arith.constant 6 : index
    %27 = vector.load %arg5[%c0_25, %c6] : memref<22x22xf32, #tpu.memory_space<vmem>>, vector<22x1xf32>
    %c0_26 = arith.constant 0 : index
    %c0_27 = arith.constant 0 : index
    %28 = vector.load %arg5[%c0_26, %c0_27] : memref<22x22xf32, #tpu.memory_space<vmem>>, vector<22x1xf32>
    tpu.vector_store %arg5[%c0_26, %c0_27], %27 {strides = array<i32>} : memref<22x22xf32, #tpu.memory_space<vmem>>, vector<22x1xf32>,
    %c0_28 = arith.constant 0 : index
    %c15 = arith.constant 15 : index
    %29 = vector.load %arg5[%c0_28, %c15] : memref<22x22xf32, #tpu.memory_space<vmem>>, vector<22x1xf32>
    %c0_29 = arith.constant 0 : index
    %c21_30 = arith.constant 21 : index
    %30 = vector.load %arg5[%c0_29, %c21_30] : memref<22x22xf32, #tpu.memory_space<vmem>>, vector<22x1xf32>
    tpu.vector_store %arg5[%c0_29, %c21_30], %29 {strides = array<i32>} : memref<22x22xf32, #tpu.memory_space<vmem>>, vector<22x1xf32>,
    %c3_31 = arith.constant 3 : index
    %c3_32 = arith.constant 3 : index
    %31 = vector.load %arg6[%c3_31, %c3_32] : memref<22x22xf32, #tpu.memory_space<vmem>>, vector<16x16xf32>
    tpu.vector_store %arg6[%c3_31, %c3_32], %5 {strides = array<i32>} : memref<22x22xf32, #tpu.memory_space<vmem>>, vector<16x16xf32>,
    %32 = vector.extract_strided_slice %5 {offsets = [1, 0], sizes = [1, 16], strides = [1, 1]} : vector<16x16xf32> to vector<1x16xf32>
    %c2_33 = arith.constant 2 : index
    %c3_34 = arith.constant 3 : index
    %33 = vector.load %arg6[%c2_33, %c3_34] : memref<22x22xf32, #tpu.memory_space<vmem>>, vector<1x16xf32>
    tpu.vector_store %arg6[%c2_33, %c3_34], %32 {strides = array<i32>} : memref<22x22xf32, #tpu.memory_space<vmem>>, vector<1x16xf32>,
    %34 = vector.extract_strided_slice %5 {offsets = [14, 0], sizes = [1, 16], strides = [1, 1]} : vector<16x16xf32> to vector<1x16xf32>
    %c19_35 = arith.constant 19 : index
    %c3_36 = arith.constant 3 : index
    %35 = vector.load %arg6[%c19_35, %c3_36] : memref<22x22xf32, #tpu.memory_space<vmem>>, vector<1x16xf32>
    tpu.vector_store %arg6[%c19_35, %c3_36], %34 {strides = array<i32>} : memref<22x22xf32, #tpu.memory_space<vmem>>, vector<1x16xf32>,
    %36 = vector.extract_strided_slice %5 {offsets = [2, 0], sizes = [1, 16], strides = [1, 1]} : vector<16x16xf32> to vector<1x16xf32>
    %c1_37 = arith.constant 1 : index
    %c3_38 = arith.constant 3 : index
    %37 = vector.load %arg6[%c1_37, %c3_38] : memref<22x22xf32, #tpu.memory_space<vmem>>, vector<1x16xf32>
    tpu.vector_store %arg6[%c1_37, %c3_38], %36 {strides = array<i32>} : memref<22x22xf32, #tpu.memory_space<vmem>>, vector<1x16xf32>,
    %38 = vector.extract_strided_slice %5 {offsets = [13, 0], sizes = [1, 16], strides = [1, 1]} : vector<16x16xf32> to vector<1x16xf32>
    %c20_39 = arith.constant 20 : index
    %c3_40 = arith.constant 3 : index
    %39 = vector.load %arg6[%c20_39, %c3_40] : memref<22x22xf32, #tpu.memory_space<vmem>>, vector<1x16xf32>
    tpu.vector_store %arg6[%c20_39, %c3_40], %38 {strides = array<i32>} : memref<22x22xf32, #tpu.memory_space<vmem>>, vector<1x16xf32>,
    %40 = vector.extract_strided_slice %5 {offsets = [3, 0], sizes = [1, 16], strides = [1, 1]} : vector<16x16xf32> to vector<1x16xf32>
    %c0_41 = arith.constant 0 : index
    %c3_42 = arith.constant 3 : index
    %41 = vector.load %arg6[%c0_41, %c3_42] : memref<22x22xf32, #tpu.memory_space<vmem>>, vector<1x16xf32>
    tpu.vector_store %arg6[%c0_41, %c3_42], %40 {strides = array<i32>} : memref<22x22xf32, #tpu.memory_space<vmem>>, vector<1x16xf32>,
    %42 = vector.extract_strided_slice %5 {offsets = [12, 0], sizes = [1, 16], strides = [1, 1]} : vector<16x16xf32> to vector<1x16xf32>
    %c21_43 = arith.constant 21 : index
    %c3_44 = arith.constant 3 : index
    %43 = vector.load %arg6[%c21_43, %c3_44] : memref<22x22xf32, #tpu.memory_space<vmem>>, vector<1x16xf32>
    tpu.vector_store %arg6[%c21_43, %c3_44], %42 {strides = array<i32>} : memref<22x22xf32, #tpu.memory_space<vmem>>, vector<1x16xf32>,
    %c0_45 = arith.constant 0 : index
    %c4_46 = arith.constant 4 : index
    %44 = vector.load %arg6[%c0_45, %c4_46] : memref<22x22xf32, #tpu.memory_space<vmem>>, vector<22x1xf32>
    %c0_47 = arith.constant 0 : index
    %c2_48 = arith.constant 2 : index
    %45 = vector.load %arg6[%c0_47, %c2_48] : memref<22x22xf32, #tpu.memory_space<vmem>>, vector<22x1xf32>
    tpu.vector_store %arg6[%c0_47, %c2_48], %44 {strides = array<i32>} : memref<22x22xf32, #tpu.memory_space<vmem>>, vector<22x1xf32>,
    %c0_49 = arith.constant 0 : index
    %c17_50 = arith.constant 17 : index
    %46 = vector.load %arg6[%c0_49, %c17_50] : memref<22x22xf32, #tpu.memory_space<vmem>>, vector<22x1xf32>
    %c0_51 = arith.constant 0 : index
    %c19_52 = arith.constant 19 : index
    %47 = vector.load %arg6[%c0_51, %c19_52] : memref<22x22xf32, #tpu.memory_space<vmem>>, vector<22x1xf32>
    tpu.vector_store %arg6[%c0_51, %c19_52], %46 {strides = array<i32>} : memref<22x22xf32, #tpu.memory_space<vmem>>, vector<22x1xf32>,
    %c0_53 = arith.constant 0 : index
    %c5_54 = arith.constant 5 : index
    %48 = vector.load %arg6[%c0_53, %c5_54] : memref<22x22xf32, #tpu.memory_space<vmem>>, vector<22x1xf32>
    %c0_55 = arith.constant 0 : index
    %c1_56 = arith.constant 1 : index
    %49 = vector.load %arg6[%c0_55, %c1_56] : memref<22x22xf32, #tpu.memory_space<vmem>>, vector<22x1xf32>
    tpu.vector_store %arg6[%c0_55, %c1_56], %48 {strides = array<i32>} : memref<22x22xf32, #tpu.memory_space<vmem>>, vector<22x1xf32>,
    %c0_57 = arith.constant 0 : index
    %c16_58 = arith.constant 16 : index
    %50 = vector.load %arg6[%c0_57, %c16_58] : memref<22x22xf32, #tpu.memory_space<vmem>>, vector<22x1xf32>
    %c0_59 = arith.constant 0 : index
    %c20_60 = arith.constant 20 : index
    %51 = vector.load %arg6[%c0_59, %c20_60] : memref<22x22xf32, #tpu.memory_space<vmem>>, vector<22x1xf32>
    tpu.vector_store %arg6[%c0_59, %c20_60], %50 {strides = array<i32>} : memref<22x22xf32, #tpu.memory_space<vmem>>, vector<22x1xf32>,
    %c0_61 = arith.constant 0 : index
    %c6_62 = arith.constant 6 : index
    %52 = vector.load %arg6[%c0_61, %c6_62] : memref<22x22xf32, #tpu.memory_space<vmem>>, vector<22x1xf32>
    %c0_63 = arith.constant 0 : index
    %c0_64 = arith.constant 0 : index
    %53 = vector.load %arg6[%c0_63, %c0_64] : memref<22x22xf32, #tpu.memory_space<vmem>>, vector<22x1xf32>
    tpu.vector_store %arg6[%c0_63, %c0_64], %52 {strides = array<i32>} : memref<22x22xf32, #tpu.memory_space<vmem>>, vector<22x1xf32>,
    %c0_65 = arith.constant 0 : index
    %c15_66 = arith.constant 15 : index
    %54 = vector.load %arg6[%c0_65, %c15_66] : memref<22x22xf32, #tpu.memory_space<vmem>>, vector<22x1xf32>
    %c0_67 = arith.constant 0 : index
    %c21_68 = arith.constant 21 : index
    %55 = vector.load %arg6[%c0_67, %c21_68] : memref<22x22xf32, #tpu.memory_space<vmem>>, vector<22x1xf32>
    tpu.vector_store %arg6[%c0_67, %c21_68], %54 {strides = array<i32>} : memref<22x22xf32, #tpu.memory_space<vmem>>, vector<22x1xf32>,
    %cst_69 = arith.constant 0.000000e+00 : f32
    %56 = vector.broadcast %cst_69 : f32 to vector<16x16xf32>
    %c0_70 = arith.constant 0 : index
    %57 = memref.load %arg3[%c0_70] : memref<1xf32, #tpu.memory_space<smem>>
    %58 = vector.broadcast %57 : f32 to vector<16x16xf32>
    %59 = arith.addf %56, %58 : vector<16x16xf32>
    %c0_71 = arith.constant 0 : index
    %c0_72 = arith.constant 0 : index
    %60 = vector.load %arg5[%c0_71, %c0_72] : memref<22x22xf32, #tpu.memory_space<vmem>>, vector<16x16xf32>
    %c0_73 = arith.constant 0 : index
    %c0_74 = arith.constant 0 : index
    %61 = memref.load %arg2[%c0_73, %c0_74] : memref<2x49xf32, #tpu.memory_space<smem>>
    %62 = vector.broadcast %61 : f32 to vector<16x16xf32>
    %63 = arith.mulf %60, %62 : vector<16x16xf32>
    %64 = arith.addf %59, %63 : vector<16x16xf32>
    %c0_75 = arith.constant 0 : index
    %c0_76 = arith.constant 0 : index
    %65 = vector.load %arg6[%c0_75, %c0_76] : memref<22x22xf32, #tpu.memory_space<vmem>>, vector<16x16xf32>
    %c1_77 = arith.constant 1 : index
    %c0_78 = arith.constant 0 : index
    %66 = memref.load %arg2[%c1_77, %c0_78] : memref<2x49xf32, #tpu.memory_space<smem>>
    %67 = vector.broadcast %66 : f32 to vector<16x16xf32>
    %68 = arith.mulf %65, %67 : vector<16x16xf32>
    %69 = arith.addf %64, %68 : vector<16x16xf32>
    %c0_79 = arith.constant 0 : index
    %c1_80 = arith.constant 1 : index
    %70 = vector.load %arg5[%c0_79, %c1_80] : memref<22x22xf32, #tpu.memory_space<vmem>>, vector<16x16xf32>
    %c0_81 = arith.constant 0 : index
    %c1_82 = arith.constant 1 : index
    %71 = memref.load %arg2[%c0_81, %c1_82] : memref<2x49xf32, #tpu.memory_space<smem>>
    %72 = vector.broadcast %71 : f32 to vector<16x16xf32>
    %73 = arith.mulf %70, %72 : vector<16x16xf32>
    %74 = arith.addf %69, %73 : vector<16x16xf32>
    %c0_83 = arith.constant 0 : index
    %c1_84 = arith.constant 1 : index
    %75 = vector.load %arg6[%c0_83, %c1_84] : memref<22x22xf32, #tpu.memory_space<vmem>>, vector<16x16xf32>
    %c1_85 = arith.constant 1 : index
    %c1_86 = arith.constant 1 : index
    %76 = memref.load %arg2[%c1_85, %c1_86] : memref<2x49xf32, #tpu.memory_space<smem>>
    %77 = vector.broadcast %76 : f32 to vector<16x16xf32>
    %78 = arith.mulf %75, %77 : vector<16x16xf32>
    %79 = arith.addf %74, %78 : vector<16x16xf32>
    %c0_87 = arith.constant 0 : index
    %c2_88 = arith.constant 2 : index
    %80 = vector.load %arg5[%c0_87, %c2_88] : memref<22x22xf32, #tpu.memory_space<vmem>>, vector<16x16xf32>
    %c0_89 = arith.constant 0 : index
    %c2_90 = arith.constant 2 : index
    %81 = memref.load %arg2[%c0_89, %c2_90] : memref<2x49xf32, #tpu.memory_space<smem>>
    %82 = vector.broadcast %81 : f32 to vector<16x16xf32>
    %83 = arith.mulf %80, %82 : vector<16x16xf32>
    %84 = arith.addf %79, %83 : vector<16x16xf32>
    %c0_91 = arith.constant 0 : index
    %c2_92 = arith.constant 2 : index
    %85 = vector.load %arg6[%c0_91, %c2_92] : memref<22x22xf32, #tpu.memory_space<vmem>>, vector<16x16xf32>
    %c1_93 = arith.constant 1 : index
    %c2_94 = arith.constant 2 : index
    %86 = memref.load %arg2[%c1_93, %c2_94] : memref<2x49xf32, #tpu.memory_space<smem>>
    %87 = vector.broadcast %86 : f32 to vector<16x16xf32>
    %88 = arith.mulf %85, %87 : vector<16x16xf32>
    %89 = arith.addf %84, %88 : vector<16x16xf32>
    %c0_95 = arith.constant 0 : index
    %c3_96 = arith.constant 3 : index
    %90 = vector.load %arg5[%c0_95, %c3_96] : memref<22x22xf32, #tpu.memory_space<vmem>>, vector<16x16xf32>
    %c0_97 = arith.constant 0 : index
    %c3_98 = arith.constant 3 : index
    %91 = memref.load %arg2[%c0_97, %c3_98] : memref<2x49xf32, #tpu.memory_space<smem>>
    %92 = vector.broadcast %91 : f32 to vector<16x16xf32>
    %93 = arith.mulf %90, %92 : vector<16x16xf32>
    %94 = arith.addf %89, %93 : vector<16x16xf32>
    %c0_99 = arith.constant 0 : index
    %c3_100 = arith.constant 3 : index
    %95 = vector.load %arg6[%c0_99, %c3_100] : memref<22x22xf32, #tpu.memory_space<vmem>>, vector<16x16xf32>
    %c1_101 = arith.constant 1 : index
    %c3_102 = arith.constant 3 : index
    %96 = memref.load %arg2[%c1_101, %c3_102] : memref<2x49xf32, #tpu.memory_space<smem>>
    %97 = vector.broadcast %96 : f32 to vector<16x16xf32>
    %98 = arith.mulf %95, %97 : vector<16x16xf32>
    %99 = arith.addf %94, %98 : vector<16x16xf32>
    %c0_103 = arith.constant 0 : index
    %c4_104 = arith.constant 4 : index
    %100 = vector.load %arg5[%c0_103, %c4_104] : memref<22x22xf32, #tpu.memory_space<vmem>>, vector<16x16xf32>
    %c0_105 = arith.constant 0 : index
    %c4_106 = arith.constant 4 : index
    %101 = memref.load %arg2[%c0_105, %c4_106] : memref<2x49xf32, #tpu.memory_space<smem>>
    %102 = vector.broadcast %101 : f32 to vector<16x16xf32>
    %103 = arith.mulf %100, %102 : vector<16x16xf32>
    %104 = arith.addf %99, %103 : vector<16x16xf32>
    %c0_107 = arith.constant 0 : index
    %c4_108 = arith.constant 4 : index
    %105 = vector.load %arg6[%c0_107, %c4_108] : memref<22x22xf32, #tpu.memory_space<vmem>>, vector<16x16xf32>
    %c1_109 = arith.constant 1 : index
    %c4_110 = arith.constant 4 : index
    %106 = memref.load %arg2[%c1_109, %c4_110] : memref<2x49xf32, #tpu.memory_space<smem>>
    %107 = vector.broadcast %106 : f32 to vector<16x16xf32>
    %108 = arith.mulf %105, %107 : vector<16x16xf32>
    %109 = arith.addf %104, %108 : vector<16x16xf32>
    %c0_111 = arith.constant 0 : index
    %c5_112 = arith.constant 5 : index
    %110 = vector.load %arg5[%c0_111, %c5_112] : memref<22x22xf32, #tpu.memory_space<vmem>>, vector<16x16xf32>
    %c0_113 = arith.constant 0 : index
    %c5_114 = arith.constant 5 : index
    %111 = memref.load %arg2[%c0_113, %c5_114] : memref<2x49xf32, #tpu.memory_space<smem>>
    %112 = vector.broadcast %111 : f32 to vector<16x16xf32>
    %113 = arith.mulf %110, %112 : vector<16x16xf32>
    %114 = arith.addf %109, %113 : vector<16x16xf32>
    %c0_115 = arith.constant 0 : index
    %c5_116 = arith.constant 5 : index
    %115 = vector.load %arg6[%c0_115, %c5_116] : memref<22x22xf32, #tpu.memory_space<vmem>>, vector<16x16xf32>
    %c1_117 = arith.constant 1 : index
    %c5_118 = arith.constant 5 : index
    %116 = memref.load %arg2[%c1_117, %c5_118] : memref<2x49xf32, #tpu.memory_space<smem>>
    %117 = vector.broadcast %116 : f32 to vector<16x16xf32>
    %118 = arith.mulf %115, %117 : vector<16x16xf32>
    %119 = arith.addf %114, %118 : vector<16x16xf32>
    %c0_119 = arith.constant 0 : index
    %c6_120 = arith.constant 6 : index
    %120 = vector.load %arg5[%c0_119, %c6_120] : memref<22x22xf32, #tpu.memory_space<vmem>>, vector<16x16xf32>
    %c0_121 = arith.constant 0 : index
    %c6_122 = arith.constant 6 : index
    %121 = memref.load %arg2[%c0_121, %c6_122] : memref<2x49xf32, #tpu.memory_space<smem>>
    %122 = vector.broadcast %121 : f32 to vector<16x16xf32>
    %123 = arith.mulf %120, %122 : vector<16x16xf32>
    %124 = arith.addf %119, %123 : vector<16x16xf32>
    %c0_123 = arith.constant 0 : index
    %c6_124 = arith.constant 6 : index
    %125 = vector.load %arg6[%c0_123, %c6_124] : memref<22x22xf32, #tpu.memory_space<vmem>>, vector<16x16xf32>
    %c1_125 = arith.constant 1 : index
    %c6_126 = arith.constant 6 : index
    %126 = memref.load %arg2[%c1_125, %c6_126] : memref<2x49xf32, #tpu.memory_space<smem>>
    %127 = vector.broadcast %126 : f32 to vector<16x16xf32>
    %128 = arith.mulf %125, %127 : vector<16x16xf32>
    %129 = arith.addf %124, %128 : vector<16x16xf32>
    %c1_127 = arith.constant 1 : index
    %c0_128 = arith.constant 0 : index
    %130 = vector.load %arg5[%c1_127, %c0_128] : memref<22x22xf32, #tpu.memory_space<vmem>>, vector<16x16xf32>
    %c0_129 = arith.constant 0 : index
    %c7 = arith.constant 7 : index
    %131 = memref.load %arg2[%c0_129, %c7] : memref<2x49xf32, #tpu.memory_space<smem>>
    %132 = vector.broadcast %131 : f32 to vector<16x16xf32>
    %133 = arith.mulf %130, %132 : vector<16x16xf32>
    %134 = arith.addf %129, %133 : vector<16x16xf32>
    %c1_130 = arith.constant 1 : index
    %c0_131 = arith.constant 0 : index
    %135 = vector.load %arg6[%c1_130, %c0_131] : memref<22x22xf32, #tpu.memory_space<vmem>>, vector<16x16xf32>
    %c1_132 = arith.constant 1 : index
    %c7_133 = arith.constant 7 : index
    %136 = memref.load %arg2[%c1_132, %c7_133] : memref<2x49xf32, #tpu.memory_space<smem>>
    %137 = vector.broadcast %136 : f32 to vector<16x16xf32>
    %138 = arith.mulf %135, %137 : vector<16x16xf32>
    %139 = arith.addf %134, %138 : vector<16x16xf32>
    %c1_134 = arith.constant 1 : index
    %c1_135 = arith.constant 1 : index
    %140 = vector.load %arg5[%c1_134, %c1_135] : memref<22x22xf32, #tpu.memory_space<vmem>>, vector<16x16xf32>
    %c0_136 = arith.constant 0 : index
    %c8 = arith.constant 8 : index
    %141 = memref.load %arg2[%c0_136, %c8] : memref<2x49xf32, #tpu.memory_space<smem>>
    %142 = vector.broadcast %141 : f32 to vector<16x16xf32>
    %143 = arith.mulf %140, %142 : vector<16x16xf32>
    %144 = arith.addf %139, %143 : vector<16x16xf32>
    %c1_137 = arith.constant 1 : index
    %c1_138 = arith.constant 1 : index
    %145 = vector.load %arg6[%c1_137, %c1_138] : memref<22x22xf32, #tpu.memory_space<vmem>>, vector<16x16xf32>
    %c1_139 = arith.constant 1 : index
    %c8_140 = arith.constant 8 : index
    %146 = memref.load %arg2[%c1_139, %c8_140] : memref<2x49xf32, #tpu.memory_space<smem>>
    %147 = vector.broadcast %146 : f32 to vector<16x16xf32>
    %148 = arith.mulf %145, %147 : vector<16x16xf32>
    %149 = arith.addf %144, %148 : vector<16x16xf32>
    %c1_141 = arith.constant 1 : index
    %c2_142 = arith.constant 2 : index
    %150 = vector.load %arg5[%c1_141, %c2_142] : memref<22x22xf32, #tpu.memory_space<vmem>>, vector<16x16xf32>
    %c0_143 = arith.constant 0 : index
    %c9 = arith.constant 9 : index
    %151 = memref.load %arg2[%c0_143, %c9] : memref<2x49xf32, #tpu.memory_space<smem>>
    %152 = vector.broadcast %151 : f32 to vector<16x16xf32>
    %153 = arith.mulf %150, %152 : vector<16x16xf32>
    %154 = arith.addf %149, %153 : vector<16x16xf32>
    %c1_144 = arith.constant 1 : index
    %c2_145 = arith.constant 2 : index
    %155 = vector.load %arg6[%c1_144, %c2_145] : memref<22x22xf32, #tpu.memory_space<vmem>>, vector<16x16xf32>
    %c1_146 = arith.constant 1 : index
    %c9_147 = arith.constant 9 : index
    %156 = memref.load %arg2[%c1_146, %c9_147] : memref<2x49xf32, #tpu.memory_space<smem>>
    %157 = vector.broadcast %156 : f32 to vector<16x16xf32>
    %158 = arith.mulf %155, %157 : vector<16x16xf32>
    %159 = arith.addf %154, %158 : vector<16x16xf32>
    %c1_148 = arith.constant 1 : index
    %c3_149 = arith.constant 3 : index
    %160 = vector.load %arg5[%c1_148, %c3_149] : memref<22x22xf32, #tpu.memory_space<vmem>>, vector<16x16xf32>
    %c0_150 = arith.constant 0 : index
    %c10 = arith.constant 10 : index
    %161 = memref.load %arg2[%c0_150, %c10] : memref<2x49xf32, #tpu.memory_space<smem>>
    %162 = vector.broadcast %161 : f32 to vector<16x16xf32>
    %163 = arith.mulf %160, %162 : vector<16x16xf32>
    %164 = arith.addf %159, %163 : vector<16x16xf32>
    %c1_151 = arith.constant 1 : index
    %c3_152 = arith.constant 3 : index
    %165 = vector.load %arg6[%c1_151, %c3_152] : memref<22x22xf32, #tpu.memory_space<vmem>>, vector<16x16xf32>
    %c1_153 = arith.constant 1 : index
    %c10_154 = arith.constant 10 : index
    %166 = memref.load %arg2[%c1_153, %c10_154] : memref<2x49xf32, #tpu.memory_space<smem>>
    %167 = vector.broadcast %166 : f32 to vector<16x16xf32>
    %168 = arith.mulf %165, %167 : vector<16x16xf32>
    %169 = arith.addf %164, %168 : vector<16x16xf32>
    %c1_155 = arith.constant 1 : index
    %c4_156 = arith.constant 4 : index
    %170 = vector.load %arg5[%c1_155, %c4_156] : memref<22x22xf32, #tpu.memory_space<vmem>>, vector<16x16xf32>
    %c0_157 = arith.constant 0 : index
    %c11 = arith.constant 11 : index
    %171 = memref.load %arg2[%c0_157, %c11] : memref<2x49xf32, #tpu.memory_space<smem>>
    %172 = vector.broadcast %171 : f32 to vector<16x16xf32>
    %173 = arith.mulf %170, %172 : vector<16x16xf32>
    %174 = arith.addf %169, %173 : vector<16x16xf32>
    %c1_158 = arith.constant 1 : index
    %c4_159 = arith.constant 4 : index
    %175 = vector.load %arg6[%c1_158, %c4_159] : memref<22x22xf32, #tpu.memory_space<vmem>>, vector<16x16xf32>
    %c1_160 = arith.constant 1 : index
    %c11_161 = arith.constant 11 : index
    %176 = memref.load %arg2[%c1_160, %c11_161] : memref<2x49xf32, #tpu.memory_space<smem>>
    %177 = vector.broadcast %176 : f32 to vector<16x16xf32>
    %178 = arith.mulf %175, %177 : vector<16x16xf32>
    %179 = arith.addf %174, %178 : vector<16x16xf32>
    %c1_162 = arith.constant 1 : index
    %c5_163 = arith.constant 5 : index
    %180 = vector.load %arg5[%c1_162, %c5_163] : memref<22x22xf32, #tpu.memory_space<vmem>>, vector<16x16xf32>
    %c0_164 = arith.constant 0 : index
    %c12 = arith.constant 12 : index
    %181 = memref.load %arg2[%c0_164, %c12] : memref<2x49xf32, #tpu.memory_space<smem>>
    %182 = vector.broadcast %181 : f32 to vector<16x16xf32>
    %183 = arith.mulf %180, %182 : vector<16x16xf32>
    %184 = arith.addf %179, %183 : vector<16x16xf32>
    %c1_165 = arith.constant 1 : index
    %c5_166 = arith.constant 5 : index
    %185 = vector.load %arg6[%c1_165, %c5_166] : memref<22x22xf32, #tpu.memory_space<vmem>>, vector<16x16xf32>
    %c1_167 = arith.constant 1 : index
    %c12_168 = arith.constant 12 : index
    %186 = memref.load %arg2[%c1_167, %c12_168] : memref<2x49xf32, #tpu.memory_space<smem>>
    %187 = vector.broadcast %186 : f32 to vector<16x16xf32>
    %188 = arith.mulf %185, %187 : vector<16x16xf32>
    %189 = arith.addf %184, %188 : vector<16x16xf32>
    %c1_169 = arith.constant 1 : index
    %c6_170 = arith.constant 6 : index
    %190 = vector.load %arg5[%c1_169, %c6_170] : memref<22x22xf32, #tpu.memory_space<vmem>>, vector<16x16xf32>
    %c0_171 = arith.constant 0 : index
    %c13 = arith.constant 13 : index
    %191 = memref.load %arg2[%c0_171, %c13] : memref<2x49xf32, #tpu.memory_space<smem>>
    %192 = vector.broadcast %191 : f32 to vector<16x16xf32>
    %193 = arith.mulf %190, %192 : vector<16x16xf32>
    %194 = arith.addf %189, %193 : vector<16x16xf32>
    %c1_172 = arith.constant 1 : index
    %c6_173 = arith.constant 6 : index
    %195 = vector.load %arg6[%c1_172, %c6_173] : memref<22x22xf32, #tpu.memory_space<vmem>>, vector<16x16xf32>
    %c1_174 = arith.constant 1 : index
    %c13_175 = arith.constant 13 : index
    %196 = memref.load %arg2[%c1_174, %c13_175] : memref<2x49xf32, #tpu.memory_space<smem>>
    %197 = vector.broadcast %196 : f32 to vector<16x16xf32>
    %198 = arith.mulf %195, %197 : vector<16x16xf32>
    %199 = arith.addf %194, %198 : vector<16x16xf32>
    %c2_176 = arith.constant 2 : index
    %c0_177 = arith.constant 0 : index
    %200 = vector.load %arg5[%c2_176, %c0_177] : memref<22x22xf32, #tpu.memory_space<vmem>>, vector<16x16xf32>
    %c0_178 = arith.constant 0 : index
    %c14 = arith.constant 14 : index
    %201 = memref.load %arg2[%c0_178, %c14] : memref<2x49xf32, #tpu.memory_space<smem>>
    %202 = vector.broadcast %201 : f32 to vector<16x16xf32>
    %203 = arith.mulf %200, %202 : vector<16x16xf32>
    %204 = arith.addf %199, %203 : vector<16x16xf32>
    %c2_179 = arith.constant 2 : index
    %c0_180 = arith.constant 0 : index
    %205 = vector.load %arg6[%c2_179, %c0_180] : memref<22x22xf32, #tpu.memory_space<vmem>>, vector<16x16xf32>
    %c1_181 = arith.constant 1 : index
    %c14_182 = arith.constant 14 : index
    %206 = memref.load %arg2[%c1_181, %c14_182] : memref<2x49xf32, #tpu.memory_space<smem>>
    %207 = vector.broadcast %206 : f32 to vector<16x16xf32>
    %208 = arith.mulf %205, %207 : vector<16x16xf32>
    %209 = arith.addf %204, %208 : vector<16x16xf32>
    %c2_183 = arith.constant 2 : index
    %c1_184 = arith.constant 1 : index
    %210 = vector.load %arg5[%c2_183, %c1_184] : memref<22x22xf32, #tpu.memory_space<vmem>>, vector<16x16xf32>
    %c0_185 = arith.constant 0 : index
    %c15_186 = arith.constant 15 : index
    %211 = memref.load %arg2[%c0_185, %c15_186] : memref<2x49xf32, #tpu.memory_space<smem>>
    %212 = vector.broadcast %211 : f32 to vector<16x16xf32>
    %213 = arith.mulf %210, %212 : vector<16x16xf32>
    %214 = arith.addf %209, %213 : vector<16x16xf32>
    %c2_187 = arith.constant 2 : index
    %c1_188 = arith.constant 1 : index
    %215 = vector.load %arg6[%c2_187, %c1_188] : memref<22x22xf32, #tpu.memory_space<vmem>>, vector<16x16xf32>
    %c1_189 = arith.constant 1 : index
    %c15_190 = arith.constant 15 : index
    %216 = memref.load %arg2[%c1_189, %c15_190] : memref<2x49xf32, #tpu.memory_space<smem>>
    %217 = vector.broadcast %216 : f32 to vector<16x16xf32>
    %218 = arith.mulf %215, %217 : vector<16x16xf32>
    %219 = arith.addf %214, %218 : vector<16x16xf32>
    %c2_191 = arith.constant 2 : index
    %c2_192 = arith.constant 2 : index
    %220 = vector.load %arg5[%c2_191, %c2_192] : memref<22x22xf32, #tpu.memory_space<vmem>>, vector<16x16xf32>
    %c0_193 = arith.constant 0 : index
    %c16_194 = arith.constant 16 : index
    %221 = memref.load %arg2[%c0_193, %c16_194] : memref<2x49xf32, #tpu.memory_space<smem>>
    %222 = vector.broadcast %221 : f32 to vector<16x16xf32>
    %223 = arith.mulf %220, %222 : vector<16x16xf32>
    %224 = arith.addf %219, %223 : vector<16x16xf32>
    %c2_195 = arith.constant 2 : index
    %c2_196 = arith.constant 2 : index
    %225 = vector.load %arg6[%c2_195, %c2_196] : memref<22x22xf32, #tpu.memory_space<vmem>>, vector<16x16xf32>
    %c1_197 = arith.constant 1 : index
    %c16_198 = arith.constant 16 : index
    %226 = memref.load %arg2[%c1_197, %c16_198] : memref<2x49xf32, #tpu.memory_space<smem>>
    %227 = vector.broadcast %226 : f32 to vector<16x16xf32>
    %228 = arith.mulf %225, %227 : vector<16x16xf32>
    %229 = arith.addf %224, %228 : vector<16x16xf32>
    %c2_199 = arith.constant 2 : index
    %c3_200 = arith.constant 3 : index
    %230 = vector.load %arg5[%c2_199, %c3_200] : memref<22x22xf32, #tpu.memory_space<vmem>>, vector<16x16xf32>
    %c0_201 = arith.constant 0 : index
    %c17_202 = arith.constant 17 : index
    %231 = memref.load %arg2[%c0_201, %c17_202] : memref<2x49xf32, #tpu.memory_space<smem>>
    %232 = vector.broadcast %231 : f32 to vector<16x16xf32>
    %233 = arith.mulf %230, %232 : vector<16x16xf32>
    %234 = arith.addf %229, %233 : vector<16x16xf32>
    %c2_203 = arith.constant 2 : index
    %c3_204 = arith.constant 3 : index
    %235 = vector.load %arg6[%c2_203, %c3_204] : memref<22x22xf32, #tpu.memory_space<vmem>>, vector<16x16xf32>
    %c1_205 = arith.constant 1 : index
    %c17_206 = arith.constant 17 : index
    %236 = memref.load %arg2[%c1_205, %c17_206] : memref<2x49xf32, #tpu.memory_space<smem>>
    %237 = vector.broadcast %236 : f32 to vector<16x16xf32>
    %238 = arith.mulf %235, %237 : vector<16x16xf32>
    %239 = arith.addf %234, %238 : vector<16x16xf32>
    %c2_207 = arith.constant 2 : index
    %c4_208 = arith.constant 4 : index
    %240 = vector.load %arg5[%c2_207, %c4_208] : memref<22x22xf32, #tpu.memory_space<vmem>>, vector<16x16xf32>
    %c0_209 = arith.constant 0 : index
    %c18 = arith.constant 18 : index
    %241 = memref.load %arg2[%c0_209, %c18] : memref<2x49xf32, #tpu.memory_space<smem>>
    %242 = vector.broadcast %241 : f32 to vector<16x16xf32>
    %243 = arith.mulf %240, %242 : vector<16x16xf32>
    %244 = arith.addf %239, %243 : vector<16x16xf32>
    %c2_210 = arith.constant 2 : index
    %c4_211 = arith.constant 4 : index
    %245 = vector.load %arg6[%c2_210, %c4_211] : memref<22x22xf32, #tpu.memory_space<vmem>>, vector<16x16xf32>
    %c1_212 = arith.constant 1 : index
    %c18_213 = arith.constant 18 : index
    %246 = memref.load %arg2[%c1_212, %c18_213] : memref<2x49xf32, #tpu.memory_space<smem>>
    %247 = vector.broadcast %246 : f32 to vector<16x16xf32>
    %248 = arith.mulf %245, %247 : vector<16x16xf32>
    %249 = arith.addf %244, %248 : vector<16x16xf32>
    %c2_214 = arith.constant 2 : index
    %c5_215 = arith.constant 5 : index
    %250 = vector.load %arg5[%c2_214, %c5_215] : memref<22x22xf32, #tpu.memory_space<vmem>>, vector<16x16xf32>
    %c0_216 = arith.constant 0 : index
    %c19_217 = arith.constant 19 : index
    %251 = memref.load %arg2[%c0_216, %c19_217] : memref<2x49xf32, #tpu.memory_space<smem>>
    %252 = vector.broadcast %251 : f32 to vector<16x16xf32>
    %253 = arith.mulf %250, %252 : vector<16x16xf32>
    %254 = arith.addf %249, %253 : vector<16x16xf32>
    %c2_218 = arith.constant 2 : index
    %c5_219 = arith.constant 5 : index
    %255 = vector.load %arg6[%c2_218, %c5_219] : memref<22x22xf32, #tpu.memory_space<vmem>>, vector<16x16xf32>
    %c1_220 = arith.constant 1 : index
    %c19_221 = arith.constant 19 : index
    %256 = memref.load %arg2[%c1_220, %c19_221] : memref<2x49xf32, #tpu.memory_space<smem>>
    %257 = vector.broadcast %256 : f32 to vector<16x16xf32>
    %258 = arith.mulf %255, %257 : vector<16x16xf32>
    %259 = arith.addf %254, %258 : vector<16x16xf32>
    %c2_222 = arith.constant 2 : index
    %c6_223 = arith.constant 6 : index
    %260 = vector.load %arg5[%c2_222, %c6_223] : memref<22x22xf32, #tpu.memory_space<vmem>>, vector<16x16xf32>
    %c0_224 = arith.constant 0 : index
    %c20_225 = arith.constant 20 : index
    %261 = memref.load %arg2[%c0_224, %c20_225] : memref<2x49xf32, #tpu.memory_space<smem>>
    %262 = vector.broadcast %261 : f32 to vector<16x16xf32>
    %263 = arith.mulf %260, %262 : vector<16x16xf32>
    %264 = arith.addf %259, %263 : vector<16x16xf32>
    %c2_226 = arith.constant 2 : index
    %c6_227 = arith.constant 6 : index
    %265 = vector.load %arg6[%c2_226, %c6_227] : memref<22x22xf32, #tpu.memory_space<vmem>>, vector<16x16xf32>
    %c1_228 = arith.constant 1 : index
    %c20_229 = arith.constant 20 : index
    %266 = memref.load %arg2[%c1_228, %c20_229] : memref<2x49xf32, #tpu.memory_space<smem>>
    %267 = vector.broadcast %266 : f32 to vector<16x16xf32>
    %268 = arith.mulf %265, %267 : vector<16x16xf32>
    %269 = arith.addf %264, %268 : vector<16x16xf32>
    %c3_230 = arith.constant 3 : index
    %c0_231 = arith.constant 0 : index
    %270 = vector.load %arg5[%c3_230, %c0_231] : memref<22x22xf32, #tpu.memory_space<vmem>>, vector<16x16xf32>
    %c0_232 = arith.constant 0 : index
    %c21_233 = arith.constant 21 : index
    %271 = memref.load %arg2[%c0_232, %c21_233] : memref<2x49xf32, #tpu.memory_space<smem>>
    %272 = vector.broadcast %271 : f32 to vector<16x16xf32>
    %273 = arith.mulf %270, %272 : vector<16x16xf32>
    %274 = arith.addf %269, %273 : vector<16x16xf32>
    %c3_234 = arith.constant 3 : index
    %c0_235 = arith.constant 0 : index
    %275 = vector.load %arg6[%c3_234, %c0_235] : memref<22x22xf32, #tpu.memory_space<vmem>>, vector<16x16xf32>
    %c1_236 = arith.constant 1 : index
    %c21_237 = arith.constant 21 : index
    %276 = memref.load %arg2[%c1_236, %c21_237] : memref<2x49xf32, #tpu.memory_space<smem>>
    %277 = vector.broadcast %276 : f32 to vector<16x16xf32>
    %278 = arith.mulf %275, %277 : vector<16x16xf32>
    %279 = arith.addf %274, %278 : vector<16x16xf32>
    %c3_238 = arith.constant 3 : index
    %c1_239 = arith.constant 1 : index
    %280 = vector.load %arg5[%c3_238, %c1_239] : memref<22x22xf32, #tpu.memory_space<vmem>>, vector<16x16xf32>
    %c0_240 = arith.constant 0 : index
    %c22 = arith.constant 22 : index
    %281 = memref.load %arg2[%c0_240, %c22] : memref<2x49xf32, #tpu.memory_space<smem>>
    %282 = vector.broadcast %281 : f32 to vector<16x16xf32>
    %283 = arith.mulf %280, %282 : vector<16x16xf32>
    %284 = arith.addf %279, %283 : vector<16x16xf32>
    %c3_241 = arith.constant 3 : index
    %c1_242 = arith.constant 1 : index
    %285 = vector.load %arg6[%c3_241, %c1_242] : memref<22x22xf32, #tpu.memory_space<vmem>>, vector<16x16xf32>
    %c1_243 = arith.constant 1 : index
    %c22_244 = arith.constant 22 : index
    %286 = memref.load %arg2[%c1_243, %c22_244] : memref<2x49xf32, #tpu.memory_space<smem>>
    %287 = vector.broadcast %286 : f32 to vector<16x16xf32>
    %288 = arith.mulf %285, %287 : vector<16x16xf32>
    %289 = arith.addf %284, %288 : vector<16x16xf32>
    %c3_245 = arith.constant 3 : index
    %c2_246 = arith.constant 2 : index
    %290 = vector.load %arg5[%c3_245, %c2_246] : memref<22x22xf32, #tpu.memory_space<vmem>>, vector<16x16xf32>
    %c0_247 = arith.constant 0 : index
    %c23 = arith.constant 23 : index
    %291 = memref.load %arg2[%c0_247, %c23] : memref<2x49xf32, #tpu.memory_space<smem>>
    %292 = vector.broadcast %291 : f32 to vector<16x16xf32>
    %293 = arith.mulf %290, %292 : vector<16x16xf32>
    %294 = arith.addf %289, %293 : vector<16x16xf32>
    %c3_248 = arith.constant 3 : index
    %c2_249 = arith.constant 2 : index
    %295 = vector.load %arg6[%c3_248, %c2_249] : memref<22x22xf32, #tpu.memory_space<vmem>>, vector<16x16xf32>
    %c1_250 = arith.constant 1 : index
    %c23_251 = arith.constant 23 : index
    %296 = memref.load %arg2[%c1_250, %c23_251] : memref<2x49xf32, #tpu.memory_space<smem>>
    %297 = vector.broadcast %296 : f32 to vector<16x16xf32>
    %298 = arith.mulf %295, %297 : vector<16x16xf32>
    %299 = arith.addf %294, %298 : vector<16x16xf32>
    %c3_252 = arith.constant 3 : index
    %c3_253 = arith.constant 3 : index
    %300 = vector.load %arg5[%c3_252, %c3_253] : memref<22x22xf32, #tpu.memory_space<vmem>>, vector<16x16xf32>
    %c0_254 = arith.constant 0 : index
    %c24 = arith.constant 24 : index
    %301 = memref.load %arg2[%c0_254, %c24] : memref<2x49xf32, #tpu.memory_space<smem>>
    %302 = vector.broadcast %301 : f32 to vector<16x16xf32>
    %303 = arith.mulf %300, %302 : vector<16x16xf32>
    %304 = arith.addf %299, %303 : vector<16x16xf32>
    %c3_255 = arith.constant 3 : index
    %c3_256 = arith.constant 3 : index
    %305 = vector.load %arg6[%c3_255, %c3_256] : memref<22x22xf32, #tpu.memory_space<vmem>>, vector<16x16xf32>
    %c1_257 = arith.constant 1 : index
    %c24_258 = arith.constant 24 : index
    %306 = memref.load %arg2[%c1_257, %c24_258] : memref<2x49xf32, #tpu.memory_space<smem>>
    %307 = vector.broadcast %306 : f32 to vector<16x16xf32>
    %308 = arith.mulf %305, %307 : vector<16x16xf32>
    %309 = arith.addf %304, %308 : vector<16x16xf32>
    %c3_259 = arith.constant 3 : index
    %c4_260 = arith.constant 4 : index
    %310 = vector.load %arg5[%c3_259, %c4_260] : memref<22x22xf32, #tpu.memory_space<vmem>>, vector<16x16xf32>
    %c0_261 = arith.constant 0 : index
    %c25 = arith.constant 25 : index
    %311 = memref.load %arg2[%c0_261, %c25] : memref<2x49xf32, #tpu.memory_space<smem>>
    %312 = vector.broadcast %311 : f32 to vector<16x16xf32>
    %313 = arith.mulf %310, %312 : vector<16x16xf32>
    %314 = arith.addf %309, %313 : vector<16x16xf32>
    %c3_262 = arith.constant 3 : index
    %c4_263 = arith.constant 4 : index
    %315 = vector.load %arg6[%c3_262, %c4_263] : memref<22x22xf32, #tpu.memory_space<vmem>>, vector<16x16xf32>
    %c1_264 = arith.constant 1 : index
    %c25_265 = arith.constant 25 : index
    %316 = memref.load %arg2[%c1_264, %c25_265] : memref<2x49xf32, #tpu.memory_space<smem>>
    %317 = vector.broadcast %316 : f32 to vector<16x16xf32>
    %318 = arith.mulf %315, %317 : vector<16x16xf32>
    %319 = arith.addf %314, %318 : vector<16x16xf32>
    %c3_266 = arith.constant 3 : index
    %c5_267 = arith.constant 5 : index
    %320 = vector.load %arg5[%c3_266, %c5_267] : memref<22x22xf32, #tpu.memory_space<vmem>>, vector<16x16xf32>
    %c0_268 = arith.constant 0 : index
    %c26 = arith.constant 26 : index
    %321 = memref.load %arg2[%c0_268, %c26] : memref<2x49xf32, #tpu.memory_space<smem>>
    %322 = vector.broadcast %321 : f32 to vector<16x16xf32>
    %323 = arith.mulf %320, %322 : vector<16x16xf32>
    %324 = arith.addf %319, %323 : vector<16x16xf32>
    %c3_269 = arith.constant 3 : index
    %c5_270 = arith.constant 5 : index
    %325 = vector.load %arg6[%c3_269, %c5_270] : memref<22x22xf32, #tpu.memory_space<vmem>>, vector<16x16xf32>
    %c1_271 = arith.constant 1 : index
    %c26_272 = arith.constant 26 : index
    %326 = memref.load %arg2[%c1_271, %c26_272] : memref<2x49xf32, #tpu.memory_space<smem>>
    %327 = vector.broadcast %326 : f32 to vector<16x16xf32>
    %328 = arith.mulf %325, %327 : vector<16x16xf32>
    %329 = arith.addf %324, %328 : vector<16x16xf32>
    %c3_273 = arith.constant 3 : index
    %c6_274 = arith.constant 6 : index
    %330 = vector.load %arg5[%c3_273, %c6_274] : memref<22x22xf32, #tpu.memory_space<vmem>>, vector<16x16xf32>
    %c0_275 = arith.constant 0 : index
    %c27 = arith.constant 27 : index
    %331 = memref.load %arg2[%c0_275, %c27] : memref<2x49xf32, #tpu.memory_space<smem>>
    %332 = vector.broadcast %331 : f32 to vector<16x16xf32>
    %333 = arith.mulf %330, %332 : vector<16x16xf32>
    %334 = arith.addf %329, %333 : vector<16x16xf32>
    %c3_276 = arith.constant 3 : index
    %c6_277 = arith.constant 6 : index
    %335 = vector.load %arg6[%c3_276, %c6_277] : memref<22x22xf32, #tpu.memory_space<vmem>>, vector<16x16xf32>
    %c1_278 = arith.constant 1 : index
    %c27_279 = arith.constant 27 : index
    %336 = memref.load %arg2[%c1_278, %c27_279] : memref<2x49xf32, #tpu.memory_space<smem>>
    %337 = vector.broadcast %336 : f32 to vector<16x16xf32>
    %338 = arith.mulf %335, %337 : vector<16x16xf32>
    %339 = arith.addf %334, %338 : vector<16x16xf32>
    %c4_280 = arith.constant 4 : index
    %c0_281 = arith.constant 0 : index
    %340 = vector.load %arg5[%c4_280, %c0_281] : memref<22x22xf32, #tpu.memory_space<vmem>>, vector<16x16xf32>
    %c0_282 = arith.constant 0 : index
    %c28 = arith.constant 28 : index
    %341 = memref.load %arg2[%c0_282, %c28] : memref<2x49xf32, #tpu.memory_space<smem>>
    %342 = vector.broadcast %341 : f32 to vector<16x16xf32>
    %343 = arith.mulf %340, %342 : vector<16x16xf32>
    %344 = arith.addf %339, %343 : vector<16x16xf32>
    %c4_283 = arith.constant 4 : index
    %c0_284 = arith.constant 0 : index
    %345 = vector.load %arg6[%c4_283, %c0_284] : memref<22x22xf32, #tpu.memory_space<vmem>>, vector<16x16xf32>
    %c1_285 = arith.constant 1 : index
    %c28_286 = arith.constant 28 : index
    %346 = memref.load %arg2[%c1_285, %c28_286] : memref<2x49xf32, #tpu.memory_space<smem>>
    %347 = vector.broadcast %346 : f32 to vector<16x16xf32>
    %348 = arith.mulf %345, %347 : vector<16x16xf32>
    %349 = arith.addf %344, %348 : vector<16x16xf32>
    %c4_287 = arith.constant 4 : index
    %c1_288 = arith.constant 1 : index
    %350 = vector.load %arg5[%c4_287, %c1_288] : memref<22x22xf32, #tpu.memory_space<vmem>>, vector<16x16xf32>
    %c0_289 = arith.constant 0 : index
    %c29 = arith.constant 29 : index
    %351 = memref.load %arg2[%c0_289, %c29] : memref<2x49xf32, #tpu.memory_space<smem>>
    %352 = vector.broadcast %351 : f32 to vector<16x16xf32>
    %353 = arith.mulf %350, %352 : vector<16x16xf32>
    %354 = arith.addf %349, %353 : vector<16x16xf32>
    %c4_290 = arith.constant 4 : index
    %c1_291 = arith.constant 1 : index
    %355 = vector.load %arg6[%c4_290, %c1_291] : memref<22x22xf32, #tpu.memory_space<vmem>>, vector<16x16xf32>
    %c1_292 = arith.constant 1 : index
    %c29_293 = arith.constant 29 : index
    %356 = memref.load %arg2[%c1_292, %c29_293] : memref<2x49xf32, #tpu.memory_space<smem>>
    %357 = vector.broadcast %356 : f32 to vector<16x16xf32>
    %358 = arith.mulf %355, %357 : vector<16x16xf32>
    %359 = arith.addf %354, %358 : vector<16x16xf32>
    %c4_294 = arith.constant 4 : index
    %c2_295 = arith.constant 2 : index
    %360 = vector.load %arg5[%c4_294, %c2_295] : memref<22x22xf32, #tpu.memory_space<vmem>>, vector<16x16xf32>
    %c0_296 = arith.constant 0 : index
    %c30 = arith.constant 30 : index
    %361 = memref.load %arg2[%c0_296, %c30] : memref<2x49xf32, #tpu.memory_space<smem>>
    %362 = vector.broadcast %361 : f32 to vector<16x16xf32>
    %363 = arith.mulf %360, %362 : vector<16x16xf32>
    %364 = arith.addf %359, %363 : vector<16x16xf32>
    %c4_297 = arith.constant 4 : index
    %c2_298 = arith.constant 2 : index
    %365 = vector.load %arg6[%c4_297, %c2_298] : memref<22x22xf32, #tpu.memory_space<vmem>>, vector<16x16xf32>
    %c1_299 = arith.constant 1 : index
    %c30_300 = arith.constant 30 : index
    %366 = memref.load %arg2[%c1_299, %c30_300] : memref<2x49xf32, #tpu.memory_space<smem>>
    %367 = vector.broadcast %366 : f32 to vector<16x16xf32>
    %368 = arith.mulf %365, %367 : vector<16x16xf32>
    %369 = arith.addf %364, %368 : vector<16x16xf32>
    %c4_301 = arith.constant 4 : index
    %c3_302 = arith.constant 3 : index
    %370 = vector.load %arg5[%c4_301, %c3_302] : memref<22x22xf32, #tpu.memory_space<vmem>>, vector<16x16xf32>
    %c0_303 = arith.constant 0 : index
    %c31 = arith.constant 31 : index
    %371 = memref.load %arg2[%c0_303, %c31] : memref<2x49xf32, #tpu.memory_space<smem>>
    %372 = vector.broadcast %371 : f32 to vector<16x16xf32>
    %373 = arith.mulf %370, %372 : vector<16x16xf32>
    %374 = arith.addf %369, %373 : vector<16x16xf32>
    %c4_304 = arith.constant 4 : index
    %c3_305 = arith.constant 3 : index
    %375 = vector.load %arg6[%c4_304, %c3_305] : memref<22x22xf32, #tpu.memory_space<vmem>>, vector<16x16xf32>
    %c1_306 = arith.constant 1 : index
    %c31_307 = arith.constant 31 : index
    %376 = memref.load %arg2[%c1_306, %c31_307] : memref<2x49xf32, #tpu.memory_space<smem>>
    %377 = vector.broadcast %376 : f32 to vector<16x16xf32>
    %378 = arith.mulf %375, %377 : vector<16x16xf32>
    %379 = arith.addf %374, %378 : vector<16x16xf32>
    %c4_308 = arith.constant 4 : index
    %c4_309 = arith.constant 4 : index
    %380 = vector.load %arg5[%c4_308, %c4_309] : memref<22x22xf32, #tpu.memory_space<vmem>>, vector<16x16xf32>
    %c0_310 = arith.constant 0 : index
    %c32 = arith.constant 32 : index
    %381 = memref.load %arg2[%c0_310, %c32] : memref<2x49xf32, #tpu.memory_space<smem>>
    %382 = vector.broadcast %381 : f32 to vector<16x16xf32>
    %383 = arith.mulf %380, %382 : vector<16x16xf32>
    %384 = arith.addf %379, %383 : vector<16x16xf32>
    %c4_311 = arith.constant 4 : index
    %c4_312 = arith.constant 4 : index
    %385 = vector.load %arg6[%c4_311, %c4_312] : memref<22x22xf32, #tpu.memory_space<vmem>>, vector<16x16xf32>
    %c1_313 = arith.constant 1 : index
    %c32_314 = arith.constant 32 : index
    %386 = memref.load %arg2[%c1_313, %c32_314] : memref<2x49xf32, #tpu.memory_space<smem>>
    %387 = vector.broadcast %386 : f32 to vector<16x16xf32>
    %388 = arith.mulf %385, %387 : vector<16x16xf32>
    %389 = arith.addf %384, %388 : vector<16x16xf32>
    %c4_315 = arith.constant 4 : index
    %c5_316 = arith.constant 5 : index
    %390 = vector.load %arg5[%c4_315, %c5_316] : memref<22x22xf32, #tpu.memory_space<vmem>>, vector<16x16xf32>
    %c0_317 = arith.constant 0 : index
    %c33 = arith.constant 33 : index
    %391 = memref.load %arg2[%c0_317, %c33] : memref<2x49xf32, #tpu.memory_space<smem>>
    %392 = vector.broadcast %391 : f32 to vector<16x16xf32>
    %393 = arith.mulf %390, %392 : vector<16x16xf32>
    %394 = arith.addf %389, %393 : vector<16x16xf32>
    %c4_318 = arith.constant 4 : index
    %c5_319 = arith.constant 5 : index
    %395 = vector.load %arg6[%c4_318, %c5_319] : memref<22x22xf32, #tpu.memory_space<vmem>>, vector<16x16xf32>
    %c1_320 = arith.constant 1 : index
    %c33_321 = arith.constant 33 : index
    %396 = memref.load %arg2[%c1_320, %c33_321] : memref<2x49xf32, #tpu.memory_space<smem>>
    %397 = vector.broadcast %396 : f32 to vector<16x16xf32>
    %398 = arith.mulf %395, %397 : vector<16x16xf32>
    %399 = arith.addf %394, %398 : vector<16x16xf32>
    %c4_322 = arith.constant 4 : index
    %c6_323 = arith.constant 6 : index
    %400 = vector.load %arg5[%c4_322, %c6_323] : memref<22x22xf32, #tpu.memory_space<vmem>>, vector<16x16xf32>
    %c0_324 = arith.constant 0 : index
    %c34 = arith.constant 34 : index
    %401 = memref.load %arg2[%c0_324, %c34] : memref<2x49xf32, #tpu.memory_space<smem>>
    %402 = vector.broadcast %401 : f32 to vector<16x16xf32>
    %403 = arith.mulf %400, %402 : vector<16x16xf32>
    %404 = arith.addf %399, %403 : vector<16x16xf32>
    %c4_325 = arith.constant 4 : index
    %c6_326 = arith.constant 6 : index
    %405 = vector.load %arg6[%c4_325, %c6_326] : memref<22x22xf32, #tpu.memory_space<vmem>>, vector<16x16xf32>
    %c1_327 = arith.constant 1 : index
    %c34_328 = arith.constant 34 : index
    %406 = memref.load %arg2[%c1_327, %c34_328] : memref<2x49xf32, #tpu.memory_space<smem>>
    %407 = vector.broadcast %406 : f32 to vector<16x16xf32>
    %408 = arith.mulf %405, %407 : vector<16x16xf32>
    %409 = arith.addf %404, %408 : vector<16x16xf32>
    %c5_329 = arith.constant 5 : index
    %c0_330 = arith.constant 0 : index
    %410 = vector.load %arg5[%c5_329, %c0_330] : memref<22x22xf32, #tpu.memory_space<vmem>>, vector<16x16xf32>
    %c0_331 = arith.constant 0 : index
    %c35 = arith.constant 35 : index
    %411 = memref.load %arg2[%c0_331, %c35] : memref<2x49xf32, #tpu.memory_space<smem>>
    %412 = vector.broadcast %411 : f32 to vector<16x16xf32>
    %413 = arith.mulf %410, %412 : vector<16x16xf32>
    %414 = arith.addf %409, %413 : vector<16x16xf32>
    %c5_332 = arith.constant 5 : index
    %c0_333 = arith.constant 0 : index
    %415 = vector.load %arg6[%c5_332, %c0_333] : memref<22x22xf32, #tpu.memory_space<vmem>>, vector<16x16xf32>
    %c1_334 = arith.constant 1 : index
    %c35_335 = arith.constant 35 : index
    %416 = memref.load %arg2[%c1_334, %c35_335] : memref<2x49xf32, #tpu.memory_space<smem>>
    %417 = vector.broadcast %416 : f32 to vector<16x16xf32>
    %418 = arith.mulf %415, %417 : vector<16x16xf32>
    %419 = arith.addf %414, %418 : vector<16x16xf32>
    %c5_336 = arith.constant 5 : index
    %c1_337 = arith.constant 1 : index
    %420 = vector.load %arg5[%c5_336, %c1_337] : memref<22x22xf32, #tpu.memory_space<vmem>>, vector<16x16xf32>
    %c0_338 = arith.constant 0 : index
    %c36 = arith.constant 36 : index
    %421 = memref.load %arg2[%c0_338, %c36] : memref<2x49xf32, #tpu.memory_space<smem>>
    %422 = vector.broadcast %421 : f32 to vector<16x16xf32>
    %423 = arith.mulf %420, %422 : vector<16x16xf32>
    %424 = arith.addf %419, %423 : vector<16x16xf32>
    %c5_339 = arith.constant 5 : index
    %c1_340 = arith.constant 1 : index
    %425 = vector.load %arg6[%c5_339, %c1_340] : memref<22x22xf32, #tpu.memory_space<vmem>>, vector<16x16xf32>
    %c1_341 = arith.constant 1 : index
    %c36_342 = arith.constant 36 : index
    %426 = memref.load %arg2[%c1_341, %c36_342] : memref<2x49xf32, #tpu.memory_space<smem>>
    %427 = vector.broadcast %426 : f32 to vector<16x16xf32>
    %428 = arith.mulf %425, %427 : vector<16x16xf32>
    %429 = arith.addf %424, %428 : vector<16x16xf32>
    %c5_343 = arith.constant 5 : index
    %c2_344 = arith.constant 2 : index
    %430 = vector.load %arg5[%c5_343, %c2_344] : memref<22x22xf32, #tpu.memory_space<vmem>>, vector<16x16xf32>
    %c0_345 = arith.constant 0 : index
    %c37 = arith.constant 37 : index
    %431 = memref.load %arg2[%c0_345, %c37] : memref<2x49xf32, #tpu.memory_space<smem>>
    %432 = vector.broadcast %431 : f32 to vector<16x16xf32>
    %433 = arith.mulf %430, %432 : vector<16x16xf32>
    %434 = arith.addf %429, %433 : vector<16x16xf32>
    %c5_346 = arith.constant 5 : index
    %c2_347 = arith.constant 2 : index
    %435 = vector.load %arg6[%c5_346, %c2_347] : memref<22x22xf32, #tpu.memory_space<vmem>>, vector<16x16xf32>
    %c1_348 = arith.constant 1 : index
    %c37_349 = arith.constant 37 : index
    %436 = memref.load %arg2[%c1_348, %c37_349] : memref<2x49xf32, #tpu.memory_space<smem>>
    %437 = vector.broadcast %436 : f32 to vector<16x16xf32>
    %438 = arith.mulf %435, %437 : vector<16x16xf32>
    %439 = arith.addf %434, %438 : vector<16x16xf32>
    %c5_350 = arith.constant 5 : index
    %c3_351 = arith.constant 3 : index
    %440 = vector.load %arg5[%c5_350, %c3_351] : memref<22x22xf32, #tpu.memory_space<vmem>>, vector<16x16xf32>
    %c0_352 = arith.constant 0 : index
    %c38 = arith.constant 38 : index
    %441 = memref.load %arg2[%c0_352, %c38] : memref<2x49xf32, #tpu.memory_space<smem>>
    %442 = vector.broadcast %441 : f32 to vector<16x16xf32>
    %443 = arith.mulf %440, %442 : vector<16x16xf32>
    %444 = arith.addf %439, %443 : vector<16x16xf32>
    %c5_353 = arith.constant 5 : index
    %c3_354 = arith.constant 3 : index
    %445 = vector.load %arg6[%c5_353, %c3_354] : memref<22x22xf32, #tpu.memory_space<vmem>>, vector<16x16xf32>
    %c1_355 = arith.constant 1 : index
    %c38_356 = arith.constant 38 : index
    %446 = memref.load %arg2[%c1_355, %c38_356] : memref<2x49xf32, #tpu.memory_space<smem>>
    %447 = vector.broadcast %446 : f32 to vector<16x16xf32>
    %448 = arith.mulf %445, %447 : vector<16x16xf32>
    %449 = arith.addf %444, %448 : vector<16x16xf32>
    %c5_357 = arith.constant 5 : index
    %c4_358 = arith.constant 4 : index
    %450 = vector.load %arg5[%c5_357, %c4_358] : memref<22x22xf32, #tpu.memory_space<vmem>>, vector<16x16xf32>
    %c0_359 = arith.constant 0 : index
    %c39 = arith.constant 39 : index
    %451 = memref.load %arg2[%c0_359, %c39] : memref<2x49xf32, #tpu.memory_space<smem>>
    %452 = vector.broadcast %451 : f32 to vector<16x16xf32>
    %453 = arith.mulf %450, %452 : vector<16x16xf32>
    %454 = arith.addf %449, %453 : vector<16x16xf32>
    %c5_360 = arith.constant 5 : index
    %c4_361 = arith.constant 4 : index
    %455 = vector.load %arg6[%c5_360, %c4_361] : memref<22x22xf32, #tpu.memory_space<vmem>>, vector<16x16xf32>
    %c1_362 = arith.constant 1 : index
    %c39_363 = arith.constant 39 : index
    %456 = memref.load %arg2[%c1_362, %c39_363] : memref<2x49xf32, #tpu.memory_space<smem>>
    %457 = vector.broadcast %456 : f32 to vector<16x16xf32>
    %458 = arith.mulf %455, %457 : vector<16x16xf32>
    %459 = arith.addf %454, %458 : vector<16x16xf32>
    %c5_364 = arith.constant 5 : index
    %c5_365 = arith.constant 5 : index
    %460 = vector.load %arg5[%c5_364, %c5_365] : memref<22x22xf32, #tpu.memory_space<vmem>>, vector<16x16xf32>
    %c0_366 = arith.constant 0 : index
    %c40 = arith.constant 40 : index
    %461 = memref.load %arg2[%c0_366, %c40] : memref<2x49xf32, #tpu.memory_space<smem>>
    %462 = vector.broadcast %461 : f32 to vector<16x16xf32>
    %463 = arith.mulf %460, %462 : vector<16x16xf32>
    %464 = arith.addf %459, %463 : vector<16x16xf32>
    %c5_367 = arith.constant 5 : index
    %c5_368 = arith.constant 5 : index
    %465 = vector.load %arg6[%c5_367, %c5_368] : memref<22x22xf32, #tpu.memory_space<vmem>>, vector<16x16xf32>
    %c1_369 = arith.constant 1 : index
    %c40_370 = arith.constant 40 : index
    %466 = memref.load %arg2[%c1_369, %c40_370] : memref<2x49xf32, #tpu.memory_space<smem>>
    %467 = vector.broadcast %466 : f32 to vector<16x16xf32>
    %468 = arith.mulf %465, %467 : vector<16x16xf32>
    %469 = arith.addf %464, %468 : vector<16x16xf32>
    %c5_371 = arith.constant 5 : index
    %c6_372 = arith.constant 6 : index
    %470 = vector.load %arg5[%c5_371, %c6_372] : memref<22x22xf32, #tpu.memory_space<vmem>>, vector<16x16xf32>
    %c0_373 = arith.constant 0 : index
    %c41 = arith.constant 41 : index
    %471 = memref.load %arg2[%c0_373, %c41] : memref<2x49xf32, #tpu.memory_space<smem>>
    %472 = vector.broadcast %471 : f32 to vector<16x16xf32>
    %473 = arith.mulf %470, %472 : vector<16x16xf32>
    %474 = arith.addf %469, %473 : vector<16x16xf32>
    %c5_374 = arith.constant 5 : index
    %c6_375 = arith.constant 6 : index
    %475 = vector.load %arg6[%c5_374, %c6_375] : memref<22x22xf32, #tpu.memory_space<vmem>>, vector<16x16xf32>
    %c1_376 = arith.constant 1 : index
    %c41_377 = arith.constant 41 : index
    %476 = memref.load %arg2[%c1_376, %c41_377] : memref<2x49xf32, #tpu.memory_space<smem>>
    %477 = vector.broadcast %476 : f32 to vector<16x16xf32>
    %478 = arith.mulf %475, %477 : vector<16x16xf32>
    %479 = arith.addf %474, %478 : vector<16x16xf32>
    %c6_378 = arith.constant 6 : index
    %c0_379 = arith.constant 0 : index
    %480 = vector.load %arg5[%c6_378, %c0_379] : memref<22x22xf32, #tpu.memory_space<vmem>>, vector<16x16xf32>
    %c0_380 = arith.constant 0 : index
    %c42 = arith.constant 42 : index
    %481 = memref.load %arg2[%c0_380, %c42] : memref<2x49xf32, #tpu.memory_space<smem>>
    %482 = vector.broadcast %481 : f32 to vector<16x16xf32>
    %483 = arith.mulf %480, %482 : vector<16x16xf32>
    %484 = arith.addf %479, %483 : vector<16x16xf32>
    %c6_381 = arith.constant 6 : index
    %c0_382 = arith.constant 0 : index
    %485 = vector.load %arg6[%c6_381, %c0_382] : memref<22x22xf32, #tpu.memory_space<vmem>>, vector<16x16xf32>
    %c1_383 = arith.constant 1 : index
    %c42_384 = arith.constant 42 : index
    %486 = memref.load %arg2[%c1_383, %c42_384] : memref<2x49xf32, #tpu.memory_space<smem>>
    %487 = vector.broadcast %486 : f32 to vector<16x16xf32>
    %488 = arith.mulf %485, %487 : vector<16x16xf32>
    %489 = arith.addf %484, %488 : vector<16x16xf32>
    %c6_385 = arith.constant 6 : index
    %c1_386 = arith.constant 1 : index
    %490 = vector.load %arg5[%c6_385, %c1_386] : memref<22x22xf32, #tpu.memory_space<vmem>>, vector<16x16xf32>
    %c0_387 = arith.constant 0 : index
    %c43 = arith.constant 43 : index
    %491 = memref.load %arg2[%c0_387, %c43] : memref<2x49xf32, #tpu.memory_space<smem>>
    %492 = vector.broadcast %491 : f32 to vector<16x16xf32>
    %493 = arith.mulf %490, %492 : vector<16x16xf32>
    %494 = arith.addf %489, %493 : vector<16x16xf32>
    %c6_388 = arith.constant 6 : index
    %c1_389 = arith.constant 1 : index
    %495 = vector.load %arg6[%c6_388, %c1_389] : memref<22x22xf32, #tpu.memory_space<vmem>>, vector<16x16xf32>
    %c1_390 = arith.constant 1 : index
    %c43_391 = arith.constant 43 : index
    %496 = memref.load %arg2[%c1_390, %c43_391] : memref<2x49xf32, #tpu.memory_space<smem>>
    %497 = vector.broadcast %496 : f32 to vector<16x16xf32>
    %498 = arith.mulf %495, %497 : vector<16x16xf32>
    %499 = arith.addf %494, %498 : vector<16x16xf32>
    %c6_392 = arith.constant 6 : index
    %c2_393 = arith.constant 2 : index
    %500 = vector.load %arg5[%c6_392, %c2_393] : memref<22x22xf32, #tpu.memory_space<vmem>>, vector<16x16xf32>
    %c0_394 = arith.constant 0 : index
    %c44 = arith.constant 44 : index
    %501 = memref.load %arg2[%c0_394, %c44] : memref<2x49xf32, #tpu.memory_space<smem>>
    %502 = vector.broadcast %501 : f32 to vector<16x16xf32>
    %503 = arith.mulf %500, %502 : vector<16x16xf32>
    %504 = arith.addf %499, %503 : vector<16x16xf32>
    %c6_395 = arith.constant 6 : index
    %c2_396 = arith.constant 2 : index
    %505 = vector.load %arg6[%c6_395, %c2_396] : memref<22x22xf32, #tpu.memory_space<vmem>>, vector<16x16xf32>
    %c1_397 = arith.constant 1 : index
    %c44_398 = arith.constant 44 : index
    %506 = memref.load %arg2[%c1_397, %c44_398] : memref<2x49xf32, #tpu.memory_space<smem>>
    %507 = vector.broadcast %506 : f32 to vector<16x16xf32>
    %508 = arith.mulf %505, %507 : vector<16x16xf32>
    %509 = arith.addf %504, %508 : vector<16x16xf32>
    %c6_399 = arith.constant 6 : index
    %c3_400 = arith.constant 3 : index
    %510 = vector.load %arg5[%c6_399, %c3_400] : memref<22x22xf32, #tpu.memory_space<vmem>>, vector<16x16xf32>
    %c0_401 = arith.constant 0 : index
    %c45 = arith.constant 45 : index
    %511 = memref.load %arg2[%c0_401, %c45] : memref<2x49xf32, #tpu.memory_space<smem>>
    %512 = vector.broadcast %511 : f32 to vector<16x16xf32>
    %513 = arith.mulf %510, %512 : vector<16x16xf32>
    %514 = arith.addf %509, %513 : vector<16x16xf32>
    %c6_402 = arith.constant 6 : index
    %c3_403 = arith.constant 3 : index
    %515 = vector.load %arg6[%c6_402, %c3_403] : memref<22x22xf32, #tpu.memory_space<vmem>>, vector<16x16xf32>
    %c1_404 = arith.constant 1 : index
    %c45_405 = arith.constant 45 : index
    %516 = memref.load %arg2[%c1_404, %c45_405] : memref<2x49xf32, #tpu.memory_space<smem>>
    %517 = vector.broadcast %516 : f32 to vector<16x16xf32>
    %518 = arith.mulf %515, %517 : vector<16x16xf32>
    %519 = arith.addf %514, %518 : vector<16x16xf32>
    %c6_406 = arith.constant 6 : index
    %c4_407 = arith.constant 4 : index
    %520 = vector.load %arg5[%c6_406, %c4_407] : memref<22x22xf32, #tpu.memory_space<vmem>>, vector<16x16xf32>
    %c0_408 = arith.constant 0 : index
    %c46 = arith.constant 46 : index
    %521 = memref.load %arg2[%c0_408, %c46] : memref<2x49xf32, #tpu.memory_space<smem>>
    %522 = vector.broadcast %521 : f32 to vector<16x16xf32>
    %523 = arith.mulf %520, %522 : vector<16x16xf32>
    %524 = arith.addf %519, %523 : vector<16x16xf32>
    %c6_409 = arith.constant 6 : index
    %c4_410 = arith.constant 4 : index
    %525 = vector.load %arg6[%c6_409, %c4_410] : memref<22x22xf32, #tpu.memory_space<vmem>>, vector<16x16xf32>
    %c1_411 = arith.constant 1 : index
    %c46_412 = arith.constant 46 : index
    %526 = memref.load %arg2[%c1_411, %c46_412] : memref<2x49xf32, #tpu.memory_space<smem>>
    %527 = vector.broadcast %526 : f32 to vector<16x16xf32>
    %528 = arith.mulf %525, %527 : vector<16x16xf32>
    %529 = arith.addf %524, %528 : vector<16x16xf32>
    %c6_413 = arith.constant 6 : index
    %c5_414 = arith.constant 5 : index
    %530 = vector.load %arg5[%c6_413, %c5_414] : memref<22x22xf32, #tpu.memory_space<vmem>>, vector<16x16xf32>
    %c0_415 = arith.constant 0 : index
    %c47 = arith.constant 47 : index
    %531 = memref.load %arg2[%c0_415, %c47] : memref<2x49xf32, #tpu.memory_space<smem>>
    %532 = vector.broadcast %531 : f32 to vector<16x16xf32>
    %533 = arith.mulf %530, %532 : vector<16x16xf32>
    %534 = arith.addf %529, %533 : vector<16x16xf32>
    %c6_416 = arith.constant 6 : index
    %c5_417 = arith.constant 5 : index
    %535 = vector.load %arg6[%c6_416, %c5_417] : memref<22x22xf32, #tpu.memory_space<vmem>>, vector<16x16xf32>
    %c1_418 = arith.constant 1 : index
    %c47_419 = arith.constant 47 : index
    %536 = memref.load %arg2[%c1_418, %c47_419] : memref<2x49xf32, #tpu.memory_space<smem>>
    %537 = vector.broadcast %536 : f32 to vector<16x16xf32>
    %538 = arith.mulf %535, %537 : vector<16x16xf32>
    %539 = arith.addf %534, %538 : vector<16x16xf32>
    %c6_420 = arith.constant 6 : index
    %c6_421 = arith.constant 6 : index
    %540 = vector.load %arg5[%c6_420, %c6_421] : memref<22x22xf32, #tpu.memory_space<vmem>>, vector<16x16xf32>
    %c0_422 = arith.constant 0 : index
    %c48 = arith.constant 48 : index
    %541 = memref.load %arg2[%c0_422, %c48] : memref<2x49xf32, #tpu.memory_space<smem>>
    %542 = vector.broadcast %541 : f32 to vector<16x16xf32>
    %543 = arith.mulf %540, %542 : vector<16x16xf32>
    %544 = arith.addf %539, %543 : vector<16x16xf32>
    %c6_423 = arith.constant 6 : index
    %c6_424 = arith.constant 6 : index
    %545 = vector.load %arg6[%c6_423, %c6_424] : memref<22x22xf32, #tpu.memory_space<vmem>>, vector<16x16xf32>
    %c1_425 = arith.constant 1 : index
    %c48_426 = arith.constant 48 : index
    %546 = memref.load %arg2[%c1_425, %c48_426] : memref<2x49xf32, #tpu.memory_space<smem>>
    %547 = vector.broadcast %546 : f32 to vector<16x16xf32>
    %548 = arith.mulf %545, %547 : vector<16x16xf32>
    %549 = arith.addf %544, %548 : vector<16x16xf32>
    %550 = vector.shape_cast %549 : vector<16x16xf32> to vector<1x1x16x16xf32>
    %c0_427 = arith.constant 0 : index
    %c0_428 = arith.constant 0 : index
    %c0_429 = arith.constant 0 : index
    %c0_430 = arith.constant 0 : index
    %551 = vector.load %arg4[%c0_427, %c0_428, %c0_429, %c0_430] : memref<1x1x16x16xf32, #tpu.memory_space<vmem>>, vector<1x1x16x16xf32>
    tpu.vector_store %arg4[%c0_427, %c0_428, %c0_429, %c0_430], %550 {strides = array<i32>} : memref<1x1x16x16xf32, #tpu.memory_space<vmem>>, vector<1x1x16x16xf32>,
    return
  }
  func.func @transform_0(%arg0: i32) -> (i32, i32, i32, i32) {
    %c0_i32 = arith.constant 0 : i32
    %c0_i32_0 = arith.constant 0 : i32
    %c0_i32_1 = arith.constant 0 : i32
    %c0_i32_2 = arith.constant 0 : i32
    return %arg0, %c0_i32, %c0_i32_0, %c0_i32_1 : i32, i32, i32, i32
  }
  func.func @transform_1(%arg0: i32) -> (i32, i32) {
    %c0_i32 = arith.constant 0 : i32
    %c0_i32_0 = arith.constant 0 : i32
    %c0_i32_1 = arith.constant 0 : i32
    return %c0_i32, %c0_i32_0 : i32, i32
  }
  func.func @transform_2(%arg0: i32) -> i32 {
    %c0_i32 = arith.constant 0 : i32
    %c0_i32_0 = arith.constant 0 : i32
    return %c0_i32 : i32
  }
  func.func @transform_3(%arg0: i32) -> (i32, i32, i32, i32) {
    %c0_i32 = arith.constant 0 : i32
    %c0_i32_0 = arith.constant 0 : i32
    %c0_i32_1 = arith.constant 0 : i32
    %c0_i32_2 = arith.constant 0 : i32
    return %arg0, %c0_i32, %c0_i32_0, %c0_i32_1 : i32, i32, i32, i32
  }
}

</mosaic_0001>

<bundles_post_ra>
// kernel: spatial_attention_forward.1
= control target key start
LH: loop header
LB: loop body
LE: loop exit
PB: predicated region body
PF: predicated region fallthrough
CT: control target
= control target key end

     0   :  { %s3202_s0 = inlined_call_operand.hbm [shape: f32[2,4,16,16], index: 0, kind: input, shape index: {}]   ;;  %s3203_s1 = inlined_call_operand.vmem [shape: f32[2,49], index: 1, kind: input, shape index: {}]   ;;  %s3204_s2 = inlined_call_operand.<no memory space> [shape: f32[1], index: 2, kind: input, shape index: {}]   ;;  %s3205_s3 = inlined_call_operand.hbm [shape: f32[2,1,16,16], index: 3, kind: output, shape index: {}]  }
   0x1   :  { %8 = sst [smem:[#allocation4]] %s3204_s2 }
   0x2   :  { %9 = vsyncpa [#allocation6], 0 }
   0x3   :  { %11 = vsyncpa [#allocation6 + $0x1], 0 }
   0x4   :  { %12 = vsyncpa [#allocation8], 0 }
   0x5   :  { %13 = vsyncpa [#allocation7], 0 }
   0x6   :  { %15 = vsyncpa [#allocation7 + $0x1], 0  ;;  %s2254_s14 = smov 0   ;;  %s2256_s15 = smov 0  }
   0x7   :  { %s2258_s16 = smov 0   ;;  %s2260_s17 = smov 0  }
   0x8 LB: > { %s2275_s2 = sadd.s32 4294967295, %s2212_s17   ;;  %s1903_s18 = sadd.s32 4294967294, %s2212_s17   ;;  %s2212_s17 = sphi %s2260_s17, %s3289_s17   ;;  %s2208_s16 = sphi %s2258_s16, %s3288_s16   ;;  %s2204_s15 = sphi %s2256_s15, %s3287_s15   ;;  %s2200_s14 = sphi %s2254_s14, %s3286_s14  }
   0x9   : > { %s2279_s19 = sadd.s32 1, %s2212_s17   ;;  %s28_s20 = sadd.s32 1, %s2208_s16 }
   0xa   : > { %s25_s21 = ssub.s32 %s2212_s17, %s2279_s19  ;;  %p35_p0 = scmp.ne.s32.totalorder %s2208_s16, %s2204_s15 }
   0xb   : > { %p26_p1 = scmp.eq.s32.totalorder %s25_s21, 0  ;;  %p36_p2 = scmp.eq.s32.totalorder %s2212_s17, 0 }
   0xc   : > { %p41_p3 = scmp.ne.s32.totalorder %s2204_s15, %s2200_s14  ;;  %p3207_p4 = scmp.eq.s32.totalorder %s2275_s2, 0 }
   0xd   : > { %s2291_s22 = scalar_select %p26_p1, %s2208_s16, %s28_s20  }
   0xe   : > { %p2293_p5 = por %p36_p2, %p35_p0  ;;  %p2299_p6 = por %p3207_p4, %p41_p3 }
   0xf   : > { %p107_p7 = scmp.eq.s32.totalorder %s2275_s2, 1  ;;  %p113_p8 = scmp.eq.s32.totalorder %s1903_s18, 1 }
  0x10   : > { %s3211_s24 = scalar_select %p2299_p6, 1, 0 }
  0x11   : > { %p1904_p9 = scmp.ge.s32.totalorder %s2212_s17, 1  ;;  %p120_p10 = scmp.lt.s32.totalorder %s2212_s17, 3 }
  0x12   : > { %p2306_p11 = por %p107_p7, %p35_p0  ;;  %p2310_p12 = por %p113_p8, %p41_p3 }
  0x13   : > { %p2314_p13 = pnand %p1904_p9, %p120_p10  ;;  %s133_s30 = sshll.u32 %s3203_s1, 4  ;;  %s134_s30 = int_to_ptr.vmem [resolvable:$true] %s133_s30 }
  0x14   : > { %s3212_s25 = scalar_select %p2306_p11, 1, 0 }
  0x15   : > { %s3213_s26 = scalar_select %p2310_p12, 1, 0 }
  0x16   : > { %s3214_s27 = scalar_select %p2314_p13, 1, 0 }
  0x17   : > { %p2026_p1 = pneg %p2314_p13  ;;  %p2039_p2 = scmp.lt.s32.totalorder %s2212_s17, 2 }
  0x18   : > { %s147_s5 = sand.u32 1, %s2208_s16   ;;  %s2101_s8 = scalar_lea.vmem %s134_s30, 32 }
  0x19   : > { %p2327_p7 = pnand %p2026_p1, %p3207_p4  ;;  %p2334_p3 = pnand %p2039_p2, %p2293_p5 }
  0x1a   : > { %s1907_s7 = sshll.u32 %s147_s5, 6  ;;  %p2102_p8 = scmp.ne.s32.totalorder %s134_s30, %s2101_s8 }
  0x1b   : > { %p2103_p9 = pneg %p2327_p7  ;;  %p2109_p12 = scmp.lt.s32.totalorder %s134_s30, %s134_s30 }
  0x1c   : > { %p2110_p11 = scmp.lt.s32.totalorder %s2101_s8, %s2101_s8 }
  0x1d   : > { %p2104_p10 = pnand %p2103_p9, %p2102_p8 }
  0x1e   : > { %p2111_p1 = por %p2110_p11, %p2109_p12 }
  0x1f   : > { %p2105_p0 = pneg %p2104_p10 }
  0x21   : > { %p2112_p4 = pnand %p2111_p1, %p2105_p0 }
  0x23   : > { %2115 = shalt.err (!%p2112_p4)
}
  0x24   : > { %s2214_s9 = smov [#allocation9]   ;;  %s2016_s10 = sshll.u32 %s2212_s17, 10 }
  0x25   : > { %2029 = dma.vmem_to_smem (!%p2327_p7), %s134_s30, 32, %s2214_s9, [#allocation8]  }
  0x26   : > { %s151_s11 = scalar_lea.vmem [#allocation5], %s1907_s7  ;;  %s2346_s20 = scalar_lea.hbm %s3202_s0, %s2016_s10 }
  0x27   : > { %s158_s12 = sshll.u32 %s151_s11, 4  ;;  %s2350_s21 = scalar_lea.sflag [#allocation6], %s147_s5  ;;  %s2348_s12 = int_to_ptr.vmem [resolvable:$true] %s158_s12 }
  0x28   : > { %s2116_s23 = scalar_lea.hbm %s2346_s20, 1024  ;;  %p2118_p5 = pneg %p2334_p3 }
  0x29   : > { %p2117_p4 = scmp.ne.s32.totalorder %s2346_s20, %s2116_s23  ;;  %s2121_s30 = scalar_lea.hbm %s3202_s0, 2048 }
  0x2a   : > { %p2122_p0 = scmp.lt.s32.totalorder %s2346_s20, %s3202_s0  ;;  %p2123_p2 = scmp.lt.s32.totalorder %s2121_s30, %s2116_s23 }
  0x2b   : > { %p2119_p11 = pnand %p2118_p5, %p2117_p4 }
  0x2c   : > { %p2124_p7 = por %p2123_p2, %p2122_p0 }
  0x2d   : > { %p2120_p12 = pneg %p2119_p11 }
  0x2f   : > { %p2125_p8 = pnand %p2124_p7, %p2120_p12 }
  0x31   : > { %2128 = shalt.err (!%p2125_p8)
}
  0x32   : > { %s2129_s5 = scalar_lea.vmem %s2348_s12, 1024  ;;  %s2215_s8 = smov [#allocation5]  }
  0x33   : > { %p2130_p9 = scmp.ne.s32.totalorder %s2348_s12, %s2129_s5  ;;  %s2134_s9 = sshll.u32 %s2215_s8, 4  ;;  %s2135_s9 = int_to_ptr.vmem [resolvable:$false] %s2134_s9 }
  0x34   : > { %s2136_s10 = scalar_lea.vmem %s2135_s9, 2048  ;;  %p2137_p4 = scmp.lt.s32.totalorder %s2348_s12, %s2135_s9 }
  0x35   : > { %p2132_p10 = pnand %p2130_p9, %p2118_p5  ;;  %p2138_p11 = scmp.lt.s32.totalorder %s2136_s10, %s2129_s5 }
  0x37   : > { %p2133_p1 = pneg %p2132_p10  ;;  %p2139_p6 = por %p2138_p11, %p2137_p4 }
  0x39   : > { %p2140_p13 = pnand %p2139_p6, %p2133_p1 }
  0x3b   : > { %2143 = shalt.err (!%p2140_p13)
}
  0x3c   : > { %s2216_s11 = smov 128   ;;  %s2217_s13 = smov 8  }
  0x3d   : > { %2033 = dma.hbm_to_vmem [thread:$0]  (!%p2334_p3), %s2346_s20, 1024, %s2348_s12, %s2350_s21, %s2216_s11, %s2216_s11, %s2217_s13  }
  0x3e   : > { %p3217_p5 = scmp.ne.s32.totalorder %s3214_s27, 0 }
  0x40   : > { %170 = sbr.rel (%p3217_p5) target bundleno = 1427 (0x593), region = 32 }
  0x45   : > { %s2374_s18 = sand.u32 1, %s2204_s15   ;;  %p3218_p6 = scmp.ne.s32.totalorder %s3211_s24, 0 }
  0x46   : > { %s1911_s23 = sshll.u32 %s2374_s18, 6  ;;  %s173_s28 = scalar_lea.sflag [#allocation6], %s2374_s18 }
  0x47   : > { %s176_s29 = scalar_lea.vmem [#allocation5], %s1911_s23 }
  0x48   : > { %2187 = dma.done.wait (%p3218_p6), %s173_s28, 1024  }
  0x49   : > { %2189 = vsyncadd (%p3218_p6), %s173_s28, 4294966272  ;;  %p3219_p13 = scmp.eq.s32.totalorder %s2275_s2, 0 }
  0x4b   : > { %2191 = dma.done.wait (%p3219_p13), [#allocation8], 32   ;;  %p3220_p3 = pmov %p3219_p13 }
  0x4d   : > { %2193 = vsyncadd (%p3220_p3), [#allocation8], 4294967264 }
  0x4e   : > { %185 = sfence }
  0x4f   : > { %v204_v0 = vld [vmem:[%s176_s29] sm:$0xff]  ;;  %v206_v1 = vld [vmem:[%s176_s29 + $0x10] sm:$0xff]  ;;  %vm212_vm0 = vcmask 130048   ;;  %v205_v8 = vld [vmem:[%s176_s29 + $0x8] sm:$0xff]  ;;  %s2218_s24 = smov 3   ;;  %vm252_vm1 = vcmask 154648  }
  0x50   : > { %v208_v2 = vld [vmem:[%s176_s29 + $0x20] sm:$0xff]  ;;  %v210_v3 = vld [vmem:[%s176_s29 + $0x30] sm:$0xff]  ;;  %v214_v4 = vsel %vm212_vm0, %v206_v1, 0.0  ;;  %v230_v5 = vsel %vm212_vm0, %v204_v0, -inf  ;;  %v231_v6 = vsel %vm212_vm0, %v206_v1, -inf  ;;  %v213_v11 = vsel %vm212_vm0, %v204_v0, 0.0 }
  0x51   : > { %v232_v7 = vsel %vm212_vm0, %v208_v2, -inf  ;;  %v234_v10 = vsel %vm212_vm0, %v210_v3, -inf  ;;  %v216_v12 = vsel %vm212_vm0, %v208_v2, 0.0  ;;  %v207_v13 = vld [vmem:[%s176_s29 + $0x18] sm:$0xff]  ;;  %v215_v16 = vadd.f32 %v214_v4, %v213_v11  ;;  %v209_v18 = vld [vmem:[%s176_s29 + $0x28] sm:$0xff]  ;;  %s2219_s27 = smov 126  }
  0x52   : > { %v233_v9 = vmax.f32 %v230_v5, %v232_v7  ;;  %v211_v14 = vld [vmem:[%s176_s29 + $0x38] sm:$0xff]  ;;  %v235_v15 = vmax.f32 %v231_v6, %v234_v10  ;;  %v218_v17 = vsel %vm212_vm0, %v210_v3, 0.0  ;;  %v220_v19 = vsel %vm212_vm0, %v205_v8, 0.0  ;;  %s2220_s6 = smov 2   ;;  %s2221_s12 = smov 124  }
  0x53   : > { %v221_v20 = vsel %vm212_vm0, %v207_v13, 0.0  ;;  %v237_v21 = vsel %vm212_vm0, %v205_v8, -inf  ;;  %v238_v22 = vsel %vm212_vm0, %v207_v13, -inf  ;;  %v239_v23 = vsel %vm212_vm0, %v209_v18, -inf  ;;  %s2222_s20 = smov 4   ;;  %s2223_s21 = smov 122  }
  0x54   : > { %v236_v24 = vmax.f32 %v233_v9, %v235_v15  ;;  %v217_v25 = vadd.f32 %v216_v12, %v215_v16  ;;  %v240_v26 = vmax.f32 %v237_v21, %v239_v23  ;;  %v241_v27 = vsel %vm212_vm0, %v211_v14, -inf  ;;  %s2224_s30 = smov 6   ;;  %s1916_s4 = sld [smem:[#allocation9 + $0x81]] }
  0x55   : > { %v242_v28 = vmax.f32 %v238_v22, %v241_v27  ;;  %v222_v29 = vadd.f32 %v221_v20, %v220_v19  ;;  %v223_v30 = vsel %vm212_vm0, %v209_v18, 0.0  ;;  %v225_v32 = vsel %vm212_vm0, %v211_v14, 0.0  ;;  %s2429_s7 = sld [smem:[#allocation9 + $0x82]]  ;;  %s2225_s13 = smov 127  }
  0x56   : > { %389 = vrot.lane.b32.xlu1 %v236_v24, %s2218_s24  ;;  %v219_v31 = vadd.f32 %v218_v17, %v217_v25  ;;  %vm255_vm2 = vcmask 148505   ;;  %vm259_vm3 = vcmask 149530   ;;  %vm263_vm4 = vcmask 150555   ;;  %s2432_s5 = sld [smem:[#allocation9 + $0x83]]  ;;  %s2226_s29 = smov 125  }
  0x57   : > { %v243_v33 = vmax.f32 %v240_v26, %v242_v28  ;;  %v224_v34 = vadd.f32 %v223_v30, %v222_v29  ;;  %vm257_vm5 = vcmask 153630   ;;  %vm261_vm6 = vcmask 152605   ;;  %s2434_s8 = sld [smem:[#allocation9]]  ;;  %p3283_p0 = scmp.ne.s32.totalorder %s3212_s25, 0 }
  0x58   : > { %v228_v35 = vmul.f32 0.25, %v219_v31  ;;  %vm265_vm7 = vcmask 151580   ;;  %vm282_vm8 = vcmask 23568   ;;  %vm285_vm9 = vcmask 21520   ;;  %s2436_s9 = sld [smem:[#allocation9 + $0x80]] }
  0x59   : > { %v226_v36 = vadd.f32 %v225_v32, %v224_v34  ;;  %vm302_vm10 = vcmask 162968   ;;  %vm305_vm11 = vcmask 160920   ;;  %vm322_vm12 = vcmask 15368   ;;  %s2438_s10 = sld [smem:[#allocation4]] }
  0x5a   : > { %246 = vrot.lane.b32.xlu0 %v228_v35, %s2218_s24  ;;  %391 = vrot.lane.b32.xlu1 %v243_v33, %s2218_s24  ;;  %vm325_vm13 = vcmask 13320   ;;  %vm342_vm14 = vcmask 171168   ;;  %vm345_vm15 = vcmask 169120   ;;  %s2443_s11 = sld [smem:[#allocation9 + $0x84]] }
  0x5b   : > { %v229_v37 = vmul.f32 0.25, %v226_v36  ;;  %s2450_s23 = sld [smem:[#allocation9 + $0x85]] }
  0x5c   : > { %s2460_s28 = sld [smem:[#allocation9 + $0x86]] }
  0x5e   : > { %248 = vrot.lane.b32.xlu0 %v229_v37, %s2218_s24  ;;  %s1930_s24 = sld [smem:[#allocation9 + $0x88]] }
  0xc8   : > { %v390_v38 = vpop.permute.xlu1 %389 }
  0xc9   : > { %395 = vst.msk [vmem:[#allocation3 + $0x3] sm:$0xff] %vm252_vm1, %v390_v38 }
  0xca   : > { %397 = vst.msk [vmem:[#allocation3 + $0x1] sm:$0x2] %vm255_vm2, %v390_v38 }
  0xcb   : > { %399 = vst.msk [vmem:[#allocation3 - $0x1] sm:$0x4] %vm259_vm3, %v390_v38 }
  0xcc   : > { %401 = vst.msk [vmem:[#allocation3 - $0x3] sm:$0x8] %vm263_vm4, %v390_v38  ;;  %v247_v39 = vpop.permute.xlu0 %246  ;;  %v392_v40 = vpop.permute.xlu1 %391 }
  0xcd   : > { %253 = vst.msk [vmem:[#allocation2 + $0x3] sm:$0xff] %vm252_vm1, %v247_v39  ;;  %396 = vst.msk [vmem:[#allocation3 + $0xb] sm:$0xff] %vm252_vm1, %v392_v40 }
  0xce   : > { %256 = vst.msk [vmem:[#allocation2 + $0x1] sm:$0x2] %vm255_vm2, %v247_v39  ;;  %vm365_vm2 = vcmask 5120  }
  0xcf   : > { %260 = vst.msk [vmem:[#allocation2 - $0x1] sm:$0x4] %vm259_vm3, %v247_v39  ;;  %vm382_vm3 = vcmask 179368  }
  0xd0   : > { %264 = vst.msk [vmem:[#allocation2 - $0x3] sm:$0x8] %vm263_vm4, %v247_v39  ;;  %v249_v41 = vpop.permute.xlu0 %248  ;;  %vm385_vm4 = vcmask 177320  }
  0xd1   : > { %398 = vst.msk [vmem:[#allocation3 + $0xd] sm:$0x40] %vm257_vm5, %v392_v40  ;;  %258 = vst.msk [vmem:[#allocation2 + $0xd] sm:$0x40] %vm257_vm5, %v249_v41 }
  0xd2   : > { %400 = vst.msk [vmem:[#allocation3 + $0xf] sm:$0x20] %vm261_vm6, %v392_v40  ;;  %262 = vst.msk [vmem:[#allocation2 + $0xf] sm:$0x20] %vm261_vm6, %v249_v41 }
  0xd3   : > { %402 = vst.msk [vmem:[#allocation3 + $0x11] sm:$0x10] %vm265_vm7, %v392_v40  ;;  %266 = vst.msk [vmem:[#allocation2 + $0x11] sm:$0x10] %vm265_vm7, %v249_v41  ;;  %v403_v43 = vld [vmem:[#allocation3] sm:$0xff] }
  0xd4   : > { %254 = vst.msk [vmem:[#allocation2 + $0xb] sm:$0xff] %vm252_vm1, %v249_v41  ;;  %v404_v46 = vld [vmem:[#allocation3 + $0x8] sm:$0xff]  ;;  %vm362_vm1 = vcmask 7168  }
  0xd7   : > { %v267_v42 = vld [vmem:[#allocation2] sm:$0xff] }
  0xd8   : > { %273 = vrot.lane.b32.xlu0 %v267_v42, %s2219_s27 }
  0xda   : > { %v405_v47 = vld [vmem:[#allocation3 + $0x10] sm:$0x3f] }
  0xdb   : > { %v268_v44 = vld [vmem:[#allocation2 + $0x8] sm:$0xff]  ;;  %v269_v45 = vld [vmem:[#allocation2 + $0x10] sm:$0x3f] }
  0xdc   : > { %409 = vrot.lane.b32.xlu0 %v403_v43, %s2219_s27  ;;  %275 = vrot.lane.b32.xlu1 %v268_v44, %s2219_s27 }
  0xe0   : > { %277 = vrot.lane.b32.xlu0 %v269_v45, %s2219_s27  ;;  %411 = vrot.lane.b32.xlu1 %v404_v46, %s2219_s27  ;;  %v545_v46 = vstv %s1916_s4  ;;  %s1936_s4 = sld [smem:[#allocation9 + $0x8b]] }
  0xe4   : > { %413 = vrot.lane.b32.xlu1 %v405_v47, %s2219_s27 }
 0x14a   : > { %v274_v48 = vpop.permute.xlu0 %273 }
 0x14b   : > { %283 = vst.msk [vmem:[#allocation2] sm:$0xff] %vm282_vm8, %v274_v48 }
 0x14e   : > { %v276_v49 = vpop.permute.xlu1 %275  ;;  %v410_v50 = vpop.permute.xlu0 %409 }
 0x14f   : > { %284 = vst.msk [vmem:[#allocation2 + $0x8] sm:$0xff] %vm282_vm8, %v276_v49  ;;  %418 = vst.msk [vmem:[#allocation3] sm:$0xff] %vm282_vm8, %v410_v50 }
 0x152   : > { %v412_v51 = vpop.permute.xlu1 %411  ;;  %v278_v52 = vpop.permute.xlu0 %277  ;;  %v287_v53 = vld [vmem:[#allocation2] sm:$0xff] }
 0x153   : > { %419 = vst.msk [vmem:[#allocation3 + $0x8] sm:$0xff] %vm282_vm8, %v412_v51  ;;  %293 = vrot.lane.b32.xlu0 %v287_v53, %s2220_s6  ;;  %v573_v51 = vstv %s2429_s7  ;;  %s1938_s7 = sld [smem:[#allocation9 + $0x8c]] }
 0x154   : > { %286 = vst.msk [vmem:[#allocation2 + $0x10] sm:$0x3f] %vm285_vm9, %v278_v52 }
 0x156   : > { %v414_v54 = vpop.permute.xlu1 %413  ;;  %v288_v55 = vld [vmem:[#allocation2 + $0x8] sm:$0xff]  ;;  %v421_v56 = vld [vmem:[#allocation3] sm:$0xff] }
 0x157   : > { %420 = vst.msk [vmem:[#allocation3 + $0x10] sm:$0x3f] %vm285_vm9, %v414_v54  ;;  %295 = vrot.lane.b32.xlu1 %v288_v55, %s2220_s6  ;;  %427 = vrot.lane.b32.xlu0 %v421_v56, %s2220_s6 }
 0x15a   : > { %v422_v57 = vld [vmem:[#allocation3 + $0x8] sm:$0xff] }
 0x15b   : > { %v289_v58 = vld [vmem:[#allocation2 + $0x10] sm:$0x3f]  ;;  %429 = vrot.lane.b32.xlu1 %v422_v57, %s2220_s6  ;;  %v517_v57 = vstv %s2434_s8  ;;  %s1944_s8 = sld [smem:[#allocation9 + $0x8f]] }
 0x15c   : > { %297 = vrot.lane.b32.xlu0 %v289_v58, %s2220_s6  ;;  %v601_v58 = vstv %s2432_s5  ;;  %s1940_s5 = sld [smem:[#allocation9 + $0x8d]] }
 0x15e   : > { %v423_v59 = vld [vmem:[#allocation3 + $0x10] sm:$0x3f] }
 0x15f   : > { %431 = vrot.lane.b32.xlu1 %v423_v59, %s2220_s6  ;;  %v525_v59 = vstv %s2436_s9  ;;  %s1932_s6 = sld [smem:[#allocation9 + $0x89]] }
 0x160   : > { %s1946_s9 = sld [smem:[#allocation9 + $0x90]] }
 0x1c5   : > { %v294_v60 = vpop.permute.xlu0 %293 }
 0x1c6   : > { %303 = vst.msk [vmem:[#allocation2] sm:$0xff] %vm302_vm10, %v294_v60  ;;  %v512_v60 = vstv %s2438_s10  ;;  %s1948_s10 = sld [smem:[#allocation9 + $0x91]] }
 0x1c9   : > { %v296_v61 = vpop.permute.xlu1 %295  ;;  %v428_v62 = vpop.permute.xlu0 %427 }
 0x1ca   : > { %304 = vst.msk [vmem:[#allocation2 + $0x8] sm:$0xff] %vm302_vm10, %v296_v61  ;;  %436 = vst.msk [vmem:[#allocation3] sm:$0xff] %vm302_vm10, %v428_v62 }
 0x1cd   : > { %v430_v63 = vpop.permute.xlu1 %429  ;;  %v307_v1 = vld [vmem:[#allocation2] sm:$0xff] }
 0x1ce   : > { %v298_v0 = vpop.permute.xlu0 %297  ;;  %437 = vst.msk [vmem:[#allocation3 + $0x8] sm:$0xff] %vm302_vm10, %v430_v63  ;;  %313 = vrot.lane.b32.xlu0 %v307_v1, %s2221_s12  ;;  %v629_v1 = vstv %s2443_s11  ;;  %s1950_s11 = sld [smem:[#allocation9 + $0x92]] }
 0x1cf   : > { %306 = vst.msk [vmem:[#allocation2 + $0x10] sm:$0x3f] %vm305_vm11, %v298_v0 }
 0x1d1   : > { %v432_v2 = vpop.permute.xlu1 %431  ;;  %v308_v3 = vld [vmem:[#allocation2 + $0x8] sm:$0xff]  ;;  %v439_v4 = vld [vmem:[#allocation3] sm:$0xff] }
 0x1d2   : > { %438 = vst.msk [vmem:[#allocation3 + $0x10] sm:$0x3f] %vm305_vm11, %v432_v2  ;;  %315 = vrot.lane.b32.xlu1 %v308_v3, %s2221_s12  ;;  %445 = vrot.lane.b32.xlu0 %v439_v4, %s2221_s12 }
 0x1d5   : > { %v440_v5 = vld [vmem:[#allocation3 + $0x8] sm:$0xff] }
 0x1d6   : > { %v309_v6 = vld [vmem:[#allocation2 + $0x10] sm:$0x3f]  ;;  %447 = vrot.lane.b32.xlu1 %v440_v5, %s2221_s12 }
 0x1d7   : > { %317 = vrot.lane.b32.xlu0 %v309_v6, %s2221_s12 }
 0x1d9   : > { %v441_v7 = vld [vmem:[#allocation3 + $0x10] sm:$0x3f] }
 0x1da   : > { %449 = vrot.lane.b32.xlu1 %v441_v7, %s2221_s12 }
 0x240   : > { %v314_v8 = vpop.permute.xlu0 %313 }
 0x241   : > { %323 = vst.msk [vmem:[#allocation2] sm:$0xff] %vm322_vm12, %v314_v8 }
 0x244   : > { %v316_v9 = vpop.permute.xlu1 %315  ;;  %v446_v10 = vpop.permute.xlu0 %445 }
 0x245   : > { %324 = vst.msk [vmem:[#allocation2 + $0x8] sm:$0xff] %vm322_vm12, %v316_v9  ;;  %454 = vst.msk [vmem:[#allocation3] sm:$0xff] %vm322_vm12, %v446_v10  ;;  %v657_v9 = vstv %s2450_s23  ;;  %s1952_s23 = sld [smem:[#allocation9 + $0x93]] }
 0x248   : > { %v448_v11 = vpop.permute.xlu1 %447  ;;  %v327_v13 = vld [vmem:[#allocation2] sm:$0xff] }
 0x249   : > { %v318_v12 = vpop.permute.xlu0 %317  ;;  %455 = vst.msk [vmem:[#allocation3 + $0x8] sm:$0xff] %vm322_vm12, %v448_v11  ;;  %333 = vrot.lane.b32.xlu0 %v327_v13, %s2222_s20 }
 0x24a   : > { %326 = vst.msk [vmem:[#allocation2 + $0x10] sm:$0x3f] %vm325_vm13, %v318_v12 }
 0x24c   : > { %v450_v14 = vpop.permute.xlu1 %449  ;;  %v328_v15 = vld [vmem:[#allocation2 + $0x8] sm:$0xff]  ;;  %v457_v16 = vld [vmem:[#allocation3] sm:$0xff] }
 0x24d   : > { %456 = vst.msk [vmem:[#allocation3 + $0x10] sm:$0x3f] %vm325_vm13, %v450_v14  ;;  %335 = vrot.lane.b32.xlu1 %v328_v15, %s2222_s20  ;;  %463 = vrot.lane.b32.xlu0 %v457_v16, %s2222_s20  ;;  %v685_v15 = vstv %s2460_s28  ;;  %s1954_s28 = sld [smem:[#allocation9 + $0x94]] }
 0x250   : > { %v458_v17 = vld [vmem:[#allocation3 + $0x8] sm:$0xff] }
 0x251   : > { %v329_v18 = vld [vmem:[#allocation2 + $0x10] sm:$0x3f]  ;;  %465 = vrot.lane.b32.xlu1 %v458_v17, %s2222_s20 }
 0x252   : > { %337 = vrot.lane.b32.xlu0 %v329_v18, %s2222_s20 }
 0x254   : > { %v459_v19 = vld [vmem:[#allocation3 + $0x10] sm:$0x3f] }
 0x255   : > { %467 = vrot.lane.b32.xlu1 %v459_v19, %s2222_s20  ;;  %s2227_s20 = smov 123   ;;  %v729_v19 = vstv %s1930_s24  ;;  %s1958_s24 = sld [smem:[#allocation9 + $0x96]] }
 0x2bb   : > { %v334_v20 = vpop.permute.xlu0 %333 }
 0x2bc   : > { %343 = vst.msk [vmem:[#allocation2] sm:$0xff] %vm342_vm14, %v334_v20 }
 0x2bf   : > { %v336_v21 = vpop.permute.xlu1 %335  ;;  %v464_v22 = vpop.permute.xlu0 %463 }
 0x2c0   : > { %344 = vst.msk [vmem:[#allocation2 + $0x8] sm:$0xff] %vm342_vm14, %v336_v21  ;;  %472 = vst.msk [vmem:[#allocation3] sm:$0xff] %vm342_vm14, %v464_v22  ;;  %v757_v22 = vstv %s1932_s6  ;;  %s1960_s6 = sld [smem:[#allocation9 + $0x97]] }
 0x2c3   : > { %v466_v23 = vpop.permute.xlu1 %465  ;;  %v347_v28 = vld [vmem:[#allocation2] sm:$0xff] }
 0x2c4   : > { %v338_v24 = vpop.permute.xlu0 %337  ;;  %473 = vst.msk [vmem:[#allocation3 + $0x8] sm:$0xff] %vm342_vm14, %v466_v23 }
 0x2c5   : > { %346 = vst.msk [vmem:[#allocation2 + $0x10] sm:$0x3f] %vm345_vm15, %v338_v24 }
 0x2c7   : > { %v468_v25 = vpop.permute.xlu1 %467  ;;  %v475_v26 = vld [vmem:[#allocation3] sm:$0xff]  ;;  %v348_v31 = vld [vmem:[#allocation2 + $0x8] sm:$0xff] }
 0x2c8   : > { %474 = vst.msk [vmem:[#allocation3 + $0x10] sm:$0x3f] %vm345_vm15, %v468_v25  ;;  %481 = vrot.lane.b32.xlu0 %v475_v26, %s2223_s21 }
 0x2cb   : > { %v476_v27 = vld [vmem:[#allocation3 + $0x8] sm:$0xff] }
 0x2cc   : > { %483 = vrot.lane.b32.xlu1 %v476_v27, %s2223_s21  ;;  %353 = vrot.lane.b32.xlu0 %v347_v28, %s2223_s21  ;;  %v349_v30 = vld [vmem:[#allocation2 + $0x10] sm:$0x3f] }
 0x2cf   : > { %v477_v29 = vld [vmem:[#allocation3 + $0x10] sm:$0x3f] }
 0x2d0   : > { %485 = vrot.lane.b32.xlu1 %v477_v29, %s2223_s21  ;;  %357 = vrot.lane.b32.xlu0 %v349_v30, %s2223_s21  ;;  %v813_v29 = vstv %s1936_s4  ;;  %s1964_s4 = sld [smem:[#allocation9 + $0x99]] }
 0x2d4   : > { %355 = vrot.lane.b32.xlu1 %v348_v31, %s2223_s21 }
 0x33a   : > { %v482_v32 = vpop.permute.xlu0 %481 }
 0x33b   : > { %490 = vst.msk [vmem:[#allocation3] sm:$0xff] %vm362_vm1, %v482_v32  ;;  %v841_v32 = vstv %s1938_s7  ;;  %s1966_s7 = sld [smem:[#allocation9 + $0x9a]] }
 0x33e   : > { %v484_v33 = vpop.permute.xlu1 %483  ;;  %v354_v34 = vpop.permute.xlu0 %353 }
 0x33f   : > { %491 = vst.msk [vmem:[#allocation3 + $0x8] sm:$0xff] %vm362_vm1, %v484_v33  ;;  %363 = vst.msk [vmem:[#allocation2] sm:$0xff] %vm362_vm1, %v354_v34 }
 0x342   : > { %v486_v35 = vpop.permute.xlu1 %485  ;;  %v358_v36 = vpop.permute.xlu0 %357  ;;  %v493_v37 = vld [vmem:[#allocation3] sm:$0xff] }
 0x343   : > { %492 = vst.msk [vmem:[#allocation3 + $0x10] sm:$0x3f] %vm365_vm2, %v486_v35  ;;  %366 = vst.msk [vmem:[#allocation2 + $0x10] sm:$0x3f] %vm365_vm2, %v358_v36  ;;  %499 = vrot.lane.b32.xlu1 %v493_v37, %s2224_s30  ;;  %v869_v35 = vstv %s1940_s5  ;;  %s1968_s5 = sld [smem:[#allocation9 + $0x9b]] }
 0x346   : > { %v356_v38 = vpop.permute.xlu1 %355  ;;  %v494_v39 = vld [vmem:[#allocation3 + $0x8] sm:$0xff] }
 0x347   : > { %364 = vst.msk [vmem:[#allocation2 + $0x8] sm:$0xff] %vm362_vm1, %v356_v38  ;;  %501 = vrot.lane.b32.xlu0 %v494_v39, %s2224_s30  ;;  %v367_v41 = vld [vmem:[#allocation2] sm:$0xff]  ;;  %v913_v39 = vstv %s1944_s8  ;;  %s1972_s8 = sld [smem:[#allocation9 + $0x9d]] }
 0x34a   : > { %v495_v40 = vld [vmem:[#allocation3 + $0x10] sm:$0x3f]  ;;  %v369_v43 = vld [vmem:[#allocation2 + $0x10] sm:$0x3f] }
 0x34b   : > { %503 = vrot.lane.b32.xlu1 %v495_v40, %s2224_s30  ;;  %373 = vrot.lane.b32.xlu0 %v367_v41, %s2224_s30 }
 0x34e   : > { %v368_v42 = vld [vmem:[#allocation2 + $0x8] sm:$0xff] }
 0x34f   : > { %375 = vrot.lane.b32.xlu1 %v368_v42, %s2224_s30  ;;  %377 = vrot.lane.b32.xlu0 %v369_v43, %s2224_s30  ;;  %s1934_s30 = sld [smem:[#allocation9 + $0x8a]]  ;;  %v941_v42 = vstv %s1946_s9 }
 0x350   : > { %s1974_s9 = sld [smem:[#allocation9 + $0x9e]] }
 0x355   : > { %v785_v26 = vstv %s1934_s30  ;;  %s1962_s30 = sld [smem:[#allocation9 + $0x98]] }
 0x3b5   : > { %v500_v44 = vpop.permute.xlu1 %499 }
 0x3b6   : > { %508 = vst.msk [vmem:[#allocation3] sm:$0xff] %vm382_vm3, %v500_v44 }
 0x3b9   : > { %v502_v45 = vpop.permute.xlu0 %501 }
 0x3ba   : > { %509 = vst.msk [vmem:[#allocation3 + $0x8] sm:$0xff] %vm382_vm3, %v502_v45 }
 0x3bd   : > { %v522_v47 = vld [vmem:[#allocation3] sm:$0xff]  ;;  %v504_v48 = vpop.permute.xlu1 %503  ;;  %v374_v49 = vpop.permute.xlu0 %373 }
 0x3be   : > { %510 = vst.msk [vmem:[#allocation3 + $0x10] sm:$0x3f] %vm385_vm4, %v504_v48  ;;  %v546_v50 = vmul.f32 %v545_v46, %v522_v47  ;;  %v574_v55 = vmul.f32 %v573_v51, %v522_v47  ;;  %v602_v63 = vmul.f32 %v601_v58, %v522_v47  ;;  %v526_v2 = vmul.f32 %v525_v59, %v522_v47 }
 0x3bf   : > { %383 = vst.msk [vmem:[#allocation2] sm:$0xff] %vm382_vm3, %v374_v49  ;;  %v630_v7 = vmul.f32 %v629_v1, %v522_v47  ;;  %v658_v13 = vmul.f32 %v657_v9, %v522_v47  ;;  %v686_v16 = vmul.f32 %v685_v15, %v522_v47  ;;  %v997_v49 = vstv %s1950_s11  ;;  %s1978_s11 = sld [smem:[#allocation9 + $0xa0]] }
 0x3c0   : > { %550 = vrot.lane.b32.xlu0 %v546_v50, %s2225_s13 }
 0x3c1   : > { %v523_v52 = vld [vmem:[#allocation3 + $0x8] sm:$0xff]  ;;  %v376_v53 = vpop.permute.xlu1 %375  ;;  %v378_v54 = vpop.permute.xlu0 %377 }
 0x3c2   : > { %384 = vst.msk [vmem:[#allocation2 + $0x8] sm:$0xff] %vm382_vm3, %v376_v53  ;;  %v547_v56 = vmul.f32 %v545_v46, %v523_v52  ;;  %v575_v0 = vmul.f32 %v573_v51, %v523_v52  ;;  %v603_v8 = vmul.f32 %v601_v58, %v523_v52  ;;  %v527_v10 = vmul.f32 %v525_v59, %v523_v52  ;;  %v706_v18 = vld [vmem:[#allocation3 + $0x1] sm:$0xff] }
 0x3c3   : > { %386 = vst.msk [vmem:[#allocation2 + $0x10] sm:$0x3f] %vm385_vm4, %v378_v54  ;;  %v631_v14 = vmul.f32 %v629_v1, %v523_v52  ;;  %v659_v17 = vmul.f32 %v657_v9, %v523_v52  ;;  %v730_v20 = vmul.f32 %v729_v19, %v706_v18  ;;  %v687_v21 = vmul.f32 %v685_v15, %v523_v52  ;;  %v890_v38 = vld [vmem:[#allocation3 + $0x2] sm:$0xff] }
 0x3c4   : > { %578 = vrot.lane.b32.xlu0 %v574_v55, %s2219_s27  ;;  %552 = vrot.lane.b32.xlu1 %v547_v56, %s2225_s13  ;;  %v758_v24 = vmul.f32 %v757_v22, %v706_v18  ;;  %v786_v27 = vmul.f32 %v785_v26, %v706_v18  ;;  %v814_v30 = vmul.f32 %v813_v29, %v706_v18  ;;  %v969_v46 = vstv %s1948_s10  ;;  %v1074_v58 = vld [vmem:[#allocation3 + $0x3] sm:$0xff]  ;;  %s1976_s10 = sld [smem:[#allocation9 + $0x9f]] }
 0x3c5   : > { %v707_v23 = vld [vmem:[#allocation3 + $0x9] sm:$0xff]  ;;  %v842_v33 = vmul.f32 %v841_v32, %v706_v18  ;;  %v870_v36 = vmul.f32 %v869_v35, %v706_v18  ;;  %v914_v40 = vmul.f32 %v913_v39, %v890_v38  ;;  %v942_v44 = vmul.f32 %v941_v42, %v890_v38 }
 0x3c6   : > { %v2456_v61 = vld [vmem:[#allocation2] sm:$0xff]  ;;  %v731_v25 = vmul.f32 %v729_v19, %v707_v23  ;;  %v759_v28 = vmul.f32 %v757_v22, %v707_v23  ;;  %v787_v31 = vmul.f32 %v785_v26, %v707_v23  ;;  %v815_v34 = vmul.f32 %v813_v29, %v707_v23 }
 0x3c7   : > { %v518_v62 = vmul.f32 %v517_v57, %v2456_v61  ;;  %v843_v37 = vmul.f32 %v841_v32, %v707_v23  ;;  %v871_v41 = vmul.f32 %v869_v35, %v707_v23  ;;  %v891_v43 = vld [vmem:[#allocation3 + $0xa] sm:$0xff]  ;;  %v970_v47 = vmul.f32 %v969_v46, %v890_v38 }
 0x3c8   : > { %606 = vrot.lane.b32.xlu0 %v602_v63, %s2226_s29  ;;  %580 = vrot.lane.b32.xlu1 %v575_v0, %s2219_s27  ;;  %v915_v45 = vmul.f32 %v913_v39, %v891_v43  ;;  %v943_v48 = vmul.f32 %v941_v42, %v891_v43  ;;  %v998_v50 = vmul.f32 %v997_v49, %v890_v38  ;;  %v1025_v52 = vstv %s1952_s23  ;;  %v1075_v0 = vld [vmem:[#allocation3 + $0xb] sm:$0xff]  ;;  %s1980_s23 = sld [smem:[#allocation9 + $0xa1]] }
 0x3c9   : > { %v520_v3 = vadd.f32 %v518_v62, %v512_v60  ;;  %v2464_v4 = vld [vmem:[#allocation2 + $0x8] sm:$0xff]  ;;  %v971_v51 = vmul.f32 %v969_v46, %v891_v43  ;;  %v1026_v53 = vmul.f32 %v1025_v52, %v890_v38  ;;  %v999_v54 = vmul.f32 %v997_v49, %v891_v43  ;;  %v1258_v18 = vld [vmem:[#allocation3 + $0x4] sm:$0xff] }
 0x3ca   : > { %v519_v6 = vmul.f32 %v517_v57, %v2464_v4  ;;  %v1053_v55 = vstv %s1954_s28  ;;  %v1027_v57 = vmul.f32 %v1025_v52, %v891_v43  ;;  %v1097_v59 = vstv %s1958_s24  ;;  %v1259_v23 = vld [vmem:[#allocation3 + $0xc] sm:$0xff]  ;;  %s1982_s28 = sld [smem:[#allocation9 + $0xa2]] }
 0x3cb   : > { %v2466_v5 = vadd.f32 %v526_v2, %v520_v3  ;;  %v1054_v56 = vmul.f32 %v1053_v55, %v890_v38  ;;  %v1055_v62 = vmul.f32 %v1053_v55, %v891_v43  ;;  %v1125_v63 = vstv %s1960_s6  ;;  %s1986_s24 = sld [smem:[#allocation9 + $0xa4]]  ;;  %v2529_v39 = vld [vmem:[#allocation3 + $0x5] sm:$0xff]  ;;  %v2541_v46 = vld [vmem:[#allocation3 + $0xd] sm:$0xff] }
 0x3cc   : > { %v521_v11 = vadd.f32 %v519_v6, %v512_v60  ;;  %634 = vrot.lane.b32.xlu0 %v630_v7, %s2221_s12  ;;  %608 = vrot.lane.b32.xlu1 %v603_v8, %s2226_s29  ;;  %v1098_v60 = vmul.f32 %v1097_v59, %v1074_v58  ;;  %v1126_v1 = vmul.f32 %v1125_v63, %v1074_v58  ;;  %v1153_v3 = vstv %s1962_s30  ;;  %s2523_s6 = sld [smem:[#allocation9 + $0xa5]] }
 0x3cd   : > { %v1099_v2 = vmul.f32 %v1097_v59, %v1075_v0  ;;  %v1154_v6 = vmul.f32 %v1153_v3, %v1074_v58  ;;  %v1127_v7 = vmul.f32 %v1125_v63, %v1075_v0  ;;  %v1181_v8 = vstv %s1964_s4  ;;  %s2531_s30 = sld [smem:[#allocation9 + $0xa6]] }
 0x3ce   : > { %v2472_v12 = vadd.f32 %v527_v10, %v521_v11  ;;  %v1182_v9 = vmul.f32 %v1181_v8, %v1074_v58  ;;  %v1155_v10 = vmul.f32 %v1153_v3, %v1075_v0  ;;  %v1209_v11 = vstv %s1966_s7  ;;  %s1992_s4 = sld [smem:[#allocation9 + $0xa7]] }
 0x3cf   : > { %v1237_v15 = vstv %s1968_s5  ;;  %v1281_v19 = vstv %s1972_s8  ;;  %v1309_v22 = vstv %s1974_s9  ;;  %v1337_v26 = vstv %s1976_s10  ;;  %s1994_s7 = sld [smem:[#allocation9 + $0xa8]] }
 0x3d0   : > { %662 = vrot.lane.b32.xlu0 %v658_v13, %s2227_s20  ;;  %636 = vrot.lane.b32.xlu1 %v631_v14, %s2221_s12  ;;  %v1210_v13 = vmul.f32 %v1209_v11, %v1074_v58  ;;  %v1183_v14 = vmul.f32 %v1181_v8, %v1075_v0  ;;  %v1365_v29 = vstv %s1978_s11  ;;  %v1393_v32 = vstv %s1980_s23  ;;  %s1915_s5 = sld [smem:[#allocation9 + $0x1]] }
 0x3d1   : > { %v1421_v35 = vstv %s1982_s28  ;;  %v1395_v38 = vmul.f32 %v1393_v32, %v1259_v23  ;;  %s1917_s8 = sld [smem:[#allocation9 + $0x2]] }
 0x3d2   : > { %s1919_s9 = sld [smem:[#allocation9 + $0x3]] }
 0x3d3   : > { %s1921_s10 = sld [smem:[#allocation9 + $0x4]] }
 0x3d4   : > { %690 = vrot.lane.b32.xlu0 %v686_v16, %s2223_s21  ;;  %664 = vrot.lane.b32.xlu1 %v659_v17, %s2227_s20  ;;  %v1238_v16 = vmul.f32 %v1237_v15, %v1074_v58  ;;  %v1211_v17 = vmul.f32 %v1209_v11, %v1075_v0  ;;  %s1923_s11 = sld [smem:[#allocation9 + $0x5]] }
 0x3d5   : > { %s1925_s23 = sld [smem:[#allocation9 + $0x6]] }
 0x3d6   : > { %v531_v3 = vstv %s1915_s5  ;;  %s1996_s28 = sld [smem:[#allocation9 + $0xa9]] }
 0x3d7   : > { %s1939_s5 = sld [smem:[#allocation9 + $0xd]] }
 0x3d8   : > { %734 = vrot.lane.b32.xlu0 %v730_v20, %s2225_s13  ;;  %692 = vrot.lane.b32.xlu1 %v687_v21, %s2223_s21  ;;  %v1282_v20 = vmul.f32 %v1281_v19, %v1258_v18  ;;  %v1239_v21 = vmul.f32 %v1237_v15, %v1075_v0 }
 0x3dc   : > { %762 = vrot.lane.b32.xlu0 %v758_v24, %s2219_s27  ;;  %736 = vrot.lane.b32.xlu1 %v731_v25, %s2225_s13  ;;  %v1310_v24 = vmul.f32 %v1309_v22, %v1258_v18  ;;  %v1283_v25 = vmul.f32 %v1281_v19, %v1259_v23 }
 0x3e0   : > { %790 = vrot.lane.b32.xlu0 %v786_v27, %s2226_s29  ;;  %764 = vrot.lane.b32.xlu1 %v759_v28, %s2219_s27  ;;  %v1338_v27 = vmul.f32 %v1337_v26, %v1258_v18  ;;  %v1311_v28 = vmul.f32 %v1309_v22, %v1259_v23 }
 0x3e4   : > { %818 = vrot.lane.b32.xlu0 %v814_v30, %s2221_s12  ;;  %792 = vrot.lane.b32.xlu1 %v787_v31, %s2226_s29  ;;  %v1366_v30 = vmul.f32 %v1365_v29, %v1258_v18  ;;  %v1339_v31 = vmul.f32 %v1337_v26, %v1259_v23  ;;  %v643_v26 = vstv %s1923_s11  ;;  %s1947_s11 = sld [smem:[#allocation9 + $0x11]] }
 0x3e8   : > { %846 = vrot.lane.b32.xlu0 %v842_v33, %s2227_s20  ;;  %820 = vrot.lane.b32.xlu1 %v815_v34, %s2221_s12  ;;  %v1394_v33 = vmul.f32 %v1393_v32, %v1258_v18  ;;  %v1367_v34 = vmul.f32 %v1365_v29, %v1259_v23 }
 0x3ec   : > { %874 = vrot.lane.b32.xlu0 %v870_v36, %s2223_s21  ;;  %848 = vrot.lane.b32.xlu1 %v843_v37, %s2227_s20  ;;  %v1422_v37 = vmul.f32 %v1421_v35, %v1258_v18 }
 0x3f0   : > { %918 = vrot.lane.b32.xlu0 %v914_v40, %s2225_s13  ;;  %876 = vrot.lane.b32.xlu1 %v871_v41, %s2223_s21  ;;  %v1465_v40 = vstv %s1986_s24  ;;  %s2616_s24 = sld [smem:[#allocation9 + $0x8]] }
 0x3f1   : > { %v1466_v43 = vmul.f32 %v1465_v40, %v2529_v39 }
 0x3f4   : > { %946 = vrot.lane.b32.xlu0 %v942_v44, %s2219_s27  ;;  %920 = vrot.lane.b32.xlu1 %v915_v45, %s2225_s13  ;;  %v1423_v44 = vmul.f32 %v1421_v35, %v1259_v23  ;;  %v1493_v45 = vstv %s2523_s6  ;;  %s2626_s6 = sld [smem:[#allocation9 + $0x9]] }
 0x3f5   : > { %v1494_v49 = vmul.f32 %v1493_v45, %v2529_v39  ;;  %v1495_v55 = vmul.f32 %v1493_v45, %v2541_v46  ;;  %v2636_v45 = vld [vmem:[#allocation2 + $0x1] sm:$0xff] }
 0x3f8   : > { %974 = vrot.lane.b32.xlu0 %v970_v47, %s2226_s29  ;;  %948 = vrot.lane.b32.xlu1 %v943_v48, %s2219_s27 }
 0x3fc   : > { %1002 = vrot.lane.b32.xlu0 %v998_v50, %s2221_s12  ;;  %976 = vrot.lane.b32.xlu1 %v971_v51, %s2226_s29  ;;  %v1467_v50 = vmul.f32 %v1465_v40, %v2541_v46  ;;  %v1521_v51 = vstv %s2531_s30  ;;  %s2639_s30 = sld [smem:[#allocation9 + $0xa]] }
 0x400   : > { %1030 = vrot.lane.b32.xlu0 %v1026_v53, %s2227_s20  ;;  %1004 = vrot.lane.b32.xlu1 %v999_v54, %s2221_s12  ;;  %v1522_v54 = vmul.f32 %v1521_v51, %v2529_v39 }
 0x404   : > { %1058 = vrot.lane.b32.xlu0 %v1054_v56, %s2223_s21  ;;  %1032 = vrot.lane.b32.xlu1 %v1027_v57, %s2227_s20  ;;  %v1549_v56 = vstv %s1992_s4  ;;  %s1935_s4 = sld [smem:[#allocation9 + $0xb]] }
 0x405   : > { %v1550_v59 = vmul.f32 %v1549_v56, %v2529_v39 }
 0x408   : > { %1102 = vrot.lane.b32.xlu0 %v1098_v60, %s2225_s13  ;;  %1060 = vrot.lane.b32.xlu1 %v1055_v62, %s2223_s21  ;;  %v1523_v60 = vmul.f32 %v1521_v51, %v2541_v46  ;;  %v1577_v62 = vstv %s1994_s7  ;;  %s1937_s7 = sld [smem:[#allocation9 + $0xc]] }
 0x409   : > { %v1579_v8 = vmul.f32 %v1577_v62, %v2541_v46 }
 0x40c   : > { %1130 = vrot.lane.b32.xlu0 %v1126_v1, %s2219_s27  ;;  %1104 = vrot.lane.b32.xlu1 %v1099_v2, %s2225_s13  ;;  %v1578_v1 = vmul.f32 %v1577_v62, %v2529_v39  ;;  %v1551_v2 = vmul.f32 %v1549_v56, %v2541_v46  ;;  %v771_v62 = vstv %s2639_s30  ;;  %s2758_s30 = sld [smem:[#allocation9 + $0x16]] }
 0x410   : > { %1158 = vrot.lane.b32.xlu0 %v1154_v6, %s2226_s29  ;;  %1132 = vrot.lane.b32.xlu1 %v1127_v7, %s2219_s27 }
 0x414   : > { %1186 = vrot.lane.b32.xlu0 %v1182_v9, %s2221_s12  ;;  %1160 = vrot.lane.b32.xlu1 %v1155_v10, %s2226_s29  ;;  %v532_v9 = vmul.f32 %v531_v3, %v2456_v61  ;;  %v559_v10 = vstv %s1917_s8  ;;  %s2677_s8 = sld [smem:[#allocation9 + $0xab]] }
 0x415   : > { %v560_v15 = vmul.f32 %v559_v10, %v2456_v61  ;;  %v561_v19 = vmul.f32 %v559_v10, %v2464_v4 }
 0x418   : > { %1214 = vrot.lane.b32.xlu0 %v1210_v13, %s2227_s20  ;;  %1188 = vrot.lane.b32.xlu1 %v1183_v14, %s2221_s12  ;;  %v533_v14 = vmul.f32 %v531_v3, %v2464_v4 }
 0x41c   : > { %1242 = vrot.lane.b32.xlu0 %v1238_v16, %s2223_s21  ;;  %1216 = vrot.lane.b32.xlu1 %v1211_v17, %s2227_s20  ;;  %v587_v16 = vstv %s1919_s9  ;;  %s2687_s9 = sld [smem:[#allocation9 + $0xf]] }
 0x420   : > { %1286 = vrot.lane.b32.xlu0 %v1282_v20, %s2225_s13  ;;  %1244 = vrot.lane.b32.xlu1 %v1239_v21, %s2223_s21  ;;  %v588_v20 = vmul.f32 %v587_v16, %v2456_v61  ;;  %v615_v21 = vstv %s1921_s10  ;;  %s2700_s10 = sld [smem:[#allocation9 + $0x10]] }
 0x421   : > { %v617_v29 = vmul.f32 %v615_v21, %v2464_v4 }
 0x424   : > { %1314 = vrot.lane.b32.xlu0 %v1310_v24, %s2219_s27  ;;  %1288 = vrot.lane.b32.xlu1 %v1283_v25, %s2225_s13  ;;  %v589_v24 = vmul.f32 %v587_v16, %v2464_v4  ;;  %v616_v25 = vmul.f32 %v615_v21, %v2456_v61  ;;  %v827_v16 = vstv %s1937_s7  ;;  %s1961_s7 = sld [smem:[#allocation9 + $0x18]] }
 0x425   : > { %v828_v21 = vmul.f32 %v827_v16, %v2636_v45 }
 0x428   : > { %1342 = vrot.lane.b32.xlu0 %v1338_v27, %s2226_s29  ;;  %1316 = vrot.lane.b32.xlu1 %v1311_v28, %s2219_s27 }
 0x42c   : > { %1370 = vrot.lane.b32.xlu0 %v1366_v30, %s2221_s12  ;;  %1344 = vrot.lane.b32.xlu1 %v1339_v31, %s2226_s29  ;;  %v644_v30 = vmul.f32 %v643_v26, %v2456_v61  ;;  %v671_v31 = vstv %s1925_s23  ;;  %s1949_s23 = sld [smem:[#allocation9 + $0x12]] }
 0x42d   : > { %v672_v35 = vmul.f32 %v671_v31, %v2456_v61 }
 0x430   : > { %1398 = vrot.lane.b32.xlu0 %v1394_v33, %s2227_s20  ;;  %1372 = vrot.lane.b32.xlu1 %v1367_v34, %s2221_s12  ;;  %v645_v34 = vmul.f32 %v643_v26, %v2464_v4 }
 0x432   : > { %v2527_v36 = vpop.permute.xlu0 %550 }
 0x434   : > { %1426 = vrot.lane.b32.xlu0 %v1422_v37, %s2223_s21  ;;  %1400 = vrot.lane.b32.xlu1 %v1395_v38, %s2227_s20  ;;  %v1605_v37 = vstv %s1996_s28  ;;  %s1951_s28 = sld [smem:[#allocation9 + $0x13]] }
 0x435   : > { %v1607_v51 = vmul.f32 %v1605_v37, %v2541_v46 }
 0x436   : > { %v2535_v41 = vpop.permute.xlu1 %552  ;;  %v2537_v42 = vpop.permute.xlu0 %578 }
 0x438   : > { %1470 = vrot.lane.b32.xlu0 %v1466_v43, %s2225_s13  ;;  %1428 = vrot.lane.b32.xlu1 %v1423_v44, %s2223_s21  ;;  %v673_v43 = vmul.f32 %v671_v31, %v2464_v4  ;;  %v1606_v44 = vmul.f32 %v1605_v37, %v2529_v39  ;;  %v2650_v39 = vld [vmem:[#allocation2 + $0x9] sm:$0xff] }
 0x439   : > { %v829_v31 = vmul.f32 %v827_v16, %v2650_v39 }
 0x43a   : > { %v2545_v47 = vpop.permute.xlu1 %580  ;;  %v2547_v48 = vpop.permute.xlu0 %606 }
 0x43c   : > { %1498 = vrot.lane.b32.xlu0 %v1494_v49, %s2219_s27  ;;  %1472 = vrot.lane.b32.xlu1 %v1467_v50, %s2225_s13  ;;  %v715_v49 = vstv %s2616_s24  ;;  %s1953_s24 = sld [smem:[#allocation9 + $0x14]] }
 0x43d   : > { %v716_v4 = vmul.f32 %v715_v49, %v2636_v45 }
 0x43e   : > { %v2554_v52 = vpop.permute.xlu1 %608  ;;  %v2556_v53 = vpop.permute.xlu0 %634 }
 0x440   : > { %1526 = vrot.lane.b32.xlu0 %v1522_v54, %s2226_s29  ;;  %1500 = vrot.lane.b32.xlu1 %v1495_v55, %s2219_s27  ;;  %v743_v54 = vstv %s2626_s6  ;;  %s2002_s6 = sld [smem:[#allocation9 + $0xac]] }
 0x441   : > { %v745_v3 = vmul.f32 %v743_v54, %v2650_v39 }
 0x442   : > { %v2562_v57 = vpop.permute.xlu1 %636  ;;  %v2564_v58 = vpop.permute.xlu0 %662 }
 0x444   : > { %1554 = vrot.lane.b32.xlu0 %v1550_v59, %s2221_s12  ;;  %1528 = vrot.lane.b32.xlu1 %v1523_v60, %s2226_s29  ;;  %v744_v59 = vmul.f32 %v743_v54, %v2636_v45  ;;  %v717_v60 = vmul.f32 %v715_v49, %v2650_v39  ;;  %v899_v54 = vstv %s2687_s9  ;;  %s1967_s9 = sld [smem:[#allocation9 + $0x1b]] }
 0x446   : > { %v2570_v63 = vpop.permute.xlu1 %664  ;;  %v2572_v0 = vpop.permute.xlu0 %690 }
 0x448   : > { %1582 = vrot.lane.b32.xlu0 %v1578_v1, %s2227_s20  ;;  %1556 = vrot.lane.b32.xlu1 %v1551_v2, %s2221_s12  ;;  %v772_v2 = vmul.f32 %v771_v62, %v2636_v45 }
 0x44a   : > { %v2578_v6 = vpop.permute.xlu1 %692  ;;  %v2580_v7 = vpop.permute.xlu0 %734 }
 0x44c   : > { %1584 = vrot.lane.b32.xlu1 %v1579_v8, %s2227_s20  ;;  %536 = vrot.lane.b32.xlu0 %v532_v9, %s2225_s13  ;;  %v799_v8 = vstv %s1935_s4  ;;  %s2768_s4 = sld [smem:[#allocation9 + $0x17]] }
 0x44e   : > { %v2586_v11 = vpop.permute.xlu1 %736  ;;  %v2588_v13 = vpop.permute.xlu0 %762 }
 0x450   : > { %538 = vrot.lane.b32.xlu1 %v533_v14, %s2225_s13  ;;  %564 = vrot.lane.b32.xlu0 %v560_v15, %s2219_s27  ;;  %v800_v14 = vmul.f32 %v799_v8, %v2636_v45  ;;  %v773_v15 = vmul.f32 %v771_v62, %v2650_v39 }
 0x452   : > { %v2594_v17 = vpop.permute.xlu1 %764  ;;  %v2596_v18 = vpop.permute.xlu0 %790 }
 0x454   : > { %566 = vrot.lane.b32.xlu1 %v561_v19, %s2219_s27  ;;  %592 = vrot.lane.b32.xlu0 %v588_v20, %s2226_s29 }
 0x456   : > { %v2602_v22 = vpop.permute.xlu1 %792  ;;  %v2604_v23 = vpop.permute.xlu0 %818 }
 0x458   : > { %594 = vrot.lane.b32.xlu1 %v589_v24, %s2226_s29  ;;  %620 = vrot.lane.b32.xlu0 %v616_v25, %s2221_s12  ;;  %v801_v24 = vmul.f32 %v799_v8, %v2650_v39  ;;  %v855_v25 = vstv %s1939_s5  ;;  %v927_v8 = vstv %s2700_s10  ;;  %s1963_s5 = sld [smem:[#allocation9 + $0x19]] }
 0x459   : > { %s2004_s10 = sld [smem:[#allocation9 + $0xad]] }
 0x45a   : > { %v2610_v27 = vpop.permute.xlu1 %820  ;;  %v2612_v28 = vpop.permute.xlu0 %846 }
 0x45c   : > { %622 = vrot.lane.b32.xlu1 %v617_v29, %s2221_s12  ;;  %648 = vrot.lane.b32.xlu0 %v644_v30, %s2227_s20  ;;  %v856_v30 = vmul.f32 %v855_v25, %v2636_v45 }
 0x45e   : > { %v2620_v32 = vpop.permute.xlu1 %848  ;;  %v2622_v33 = vpop.permute.xlu0 %874 }
 0x460   : > { %650 = vrot.lane.b32.xlu1 %v645_v34, %s2227_s20  ;;  %676 = vrot.lane.b32.xlu0 %v672_v35, %s2223_s21  ;;  %v2697_v34 = vld [vmem:[#allocation3 + $0x6] sm:$0xff]  ;;  %v1649_v35 = vstv %s2677_s8  ;;  %s1965_s8 = sld [smem:[#allocation9 + $0x1a]] }
 0x461   : > { %v1650_v49 = vmul.f32 %v1649_v35, %v2697_v34 }
 0x462   : > { %v2630_v38 = vpop.permute.xlu1 %876  ;;  %v2632_v40 = vpop.permute.xlu0 %918 }
 0x464   : > { %678 = vrot.lane.b32.xlu1 %v673_v43, %s2223_s21  ;;  %1610 = vrot.lane.b32.xlu0 %v1606_v44, %s2223_s21  ;;  %v857_v44 = vmul.f32 %v855_v25, %v2650_v39 }
 0x466   : > { %v2643_v61 = vpop.permute.xlu1 %920  ;;  %v2645_v50 = vpop.permute.xlu0 %946 }
 0x468   : > { %1612 = vrot.lane.b32.xlu1 %v1607_v51, %s2223_s21  ;;  %720 = vrot.lane.b32.xlu0 %v716_v4, %s2225_s13  ;;  %v2710_v51 = vld [vmem:[#allocation3 + $0xe] sm:$0xff] }
 0x469   : > { %v2712_v4 = vld [vmem:[#allocation2 + $0x2] sm:$0xff]  ;;  %v1651_v62 = vmul.f32 %v1649_v35, %v2710_v51 }
 0x46a   : > { %v2654_v55 = vpop.permute.xlu1 %948  ;;  %v2656_v56 = vpop.permute.xlu0 %974 }
 0x46c   : > { %748 = vrot.lane.b32.xlu0 %v744_v59, %s2219_s27  ;;  %722 = vrot.lane.b32.xlu1 %v717_v60, %s2225_s13 }
 0x46e   : > { %v2663_v46 = vpop.permute.xlu1 %976  ;;  %v2665_v1 = vpop.permute.xlu0 %1002 }
 0x470   : > { %776 = vrot.lane.b32.xlu0 %v772_v2, %s2226_s29  ;;  %750 = vrot.lane.b32.xlu1 %v745_v3, %s2219_s27  ;;  %v900_v2 = vmul.f32 %v899_v54, %v2712_v4  ;;  %v2723_v3 = vld [vmem:[#allocation2 + $0xa] sm:$0xff] }
 0x471   : > { %v901_v16 = vmul.f32 %v899_v54, %v2723_v3 }
 0x472   : > { %v2671_v9 = vpop.permute.xlu1 %1004  ;;  %v2673_v10 = vpop.permute.xlu0 %1030 }
 0x474   : > { %804 = vrot.lane.b32.xlu0 %v800_v14, %s2221_s12  ;;  %778 = vrot.lane.b32.xlu1 %v773_v15, %s2226_s29 }
 0x476   : > { %v2681_v19 = vpop.permute.xlu1 %1032  ;;  %v2683_v20 = vpop.permute.xlu0 %1058 }
 0x478   : > { %832 = vrot.lane.b32.xlu0 %v828_v21, %s2227_s20  ;;  %806 = vrot.lane.b32.xlu1 %v801_v24, %s2221_s12  ;;  %v928_v21 = vmul.f32 %v927_v8, %v2712_v4  ;;  %v955_v24 = vstv %s1947_s11  ;;  %s2824_s11 = sld [smem:[#allocation9 + $0x1d]] }
 0x479   : > { %v956_v35 = vmul.f32 %v955_v24, %v2712_v4 }
 0x47a   : > { %v2691_v26 = vpop.permute.xlu1 %1060  ;;  %v2693_v29 = vpop.permute.xlu0 %1102 }
 0x47c   : > { %860 = vrot.lane.b32.xlu0 %v856_v30, %s2223_s21  ;;  %834 = vrot.lane.b32.xlu1 %v829_v31, %s2227_s20  ;;  %v929_v31 = vmul.f32 %v927_v8, %v2723_v3 }
 0x47e   : > { %v2704_v37 = vpop.permute.xlu1 %1104  ;;  %v2706_v43 = vpop.permute.xlu0 %1130 }
 0x480   : > { %862 = vrot.lane.b32.xlu1 %v857_v44, %s2223_s21  ;;  %1654 = vrot.lane.b32.xlu0 %v1650_v49, %s2225_s13  ;;  %v983_v44 = vstv %s1949_s23  ;;  %s2834_s23 = sld [smem:[#allocation9 + $0x1e]] }
 0x482   : > { %v2717_v59 = vpop.permute.xlu1 %1132  ;;  %v2719_v60 = vpop.permute.xlu0 %1158 }
 0x483   : > { %3221 = vst [vmem:[#allocation14_spill] sm:$0xff] %v2717_v59  ;;  %3222 = vst [vmem:[#allocation15_spill] sm:$0xff] %v2719_v60 }
 0x484   : > { %1656 = vrot.lane.b32.xlu1 %v1651_v62, %s2225_s13  ;;  %904 = vrot.lane.b32.xlu0 %v900_v2, %s2225_s13  ;;  %v957_v62 = vmul.f32 %v955_v24, %v2723_v3  ;;  %v984_v2 = vmul.f32 %v983_v44, %v2712_v4 }
 0x486   : > { %v2728_v14 = vpop.permute.xlu1 %1160  ;;  %v2730_v15 = vpop.permute.xlu0 %1186 }
 0x487   : > { %3223 = vst [vmem:[#allocation16_spill] sm:$0xff] %v2728_v14  ;;  %3224 = vst [vmem:[#allocation17_spill] sm:$0xff] %v2730_v15 }
 0x488   : > { %906 = vrot.lane.b32.xlu1 %v901_v16, %s2225_s13  ;;  %932 = vrot.lane.b32.xlu0 %v928_v21, %s2219_s27  ;;  %v1011_v16 = vstv %s1951_s28  ;;  %s2847_s28 = sld [smem:[#allocation9 + $0x1f]] }
 0x48a   : > { %v2736_v25 = vpop.permute.xlu1 %1188  ;;  %v2738_v30 = vpop.permute.xlu0 %1214 }
 0x48b   : > { %3225 = vst [vmem:[#allocation18_spill] sm:$0xff] %v2736_v25  ;;  %3226 = vst [vmem:[#allocation19_spill] sm:$0xff] %v2738_v30 }
 0x48c   : > { %934 = vrot.lane.b32.xlu1 %v929_v31, %s2219_s27  ;;  %960 = vrot.lane.b32.xlu0 %v956_v35, %s2226_s29  ;;  %v985_v31 = vmul.f32 %v983_v44, %v2723_v3  ;;  %v1012_v35 = vmul.f32 %v1011_v16, %v2712_v4 }
 0x48e   : > { %v2744_v49 = vpop.permute.xlu1 %1216  ;;  %v2746_v54 = vpop.permute.xlu0 %1242  ;;  %v1323_v15 = vstv %s2847_s28  ;;  %s2956_s28 = sld [smem:[#allocation9 + $0x29]] }
 0x48f   : > { %3227 = vst [vmem:[#allocation20_spill] sm:$0xff] %v2744_v49  ;;  %3228 = vst [vmem:[#allocation21_spill] sm:$0xff] %v2746_v54  ;;  %v1039_v49 = vstv %s1953_s24  ;;  %s2860_s24 = sld [smem:[#allocation9 + $0x20]] }
 0x490   : > { %962 = vrot.lane.b32.xlu1 %v957_v62, %s2226_s29  ;;  %988 = vrot.lane.b32.xlu0 %v984_v2, %s2221_s12  ;;  %v1013_v2 = vmul.f32 %v1011_v16, %v2723_v3  ;;  %v1083_v16 = vstv %s2758_s30  ;;  %s2879_s30 = sld [smem:[#allocation9 + $0x22]] }
 0x492   : > { %v2752_v8 = vpop.permute.xlu1 %1244  ;;  %v2754_v21 = vpop.permute.xlu0 %1286 }
 0x493   : > { %3229 = vst [vmem:[#allocation22_spill] sm:$0xff] %v2752_v8  ;;  %3230 = vst [vmem:[#allocation23_spill] sm:$0xff] %v2754_v21  ;;  %v1040_v21 = vmul.f32 %v1039_v49, %v2712_v4  ;;  %v1677_v8 = vstv %s2002_s6  ;;  %s2870_s6 = sld [smem:[#allocation9 + $0x21]] }
 0x494   : > { %990 = vrot.lane.b32.xlu1 %v985_v31, %s2221_s12  ;;  %1016 = vrot.lane.b32.xlu0 %v1012_v35, %s2227_s20  ;;  %v1041_v35 = vmul.f32 %v1039_v49, %v2723_v3  ;;  %v1111_v49 = vstv %s2768_s4  ;;  %s2888_s4 = sld [smem:[#allocation9 + $0xae]] }
 0x496   : > { %v2762_v24 = vpop.permute.xlu1 %1288  ;;  %v2764_v62 = vpop.permute.xlu0 %1314 }
 0x497   : > { %3231 = vst [vmem:[#allocation24_spill] sm:$0xff] %v2762_v24  ;;  %3232 = vst [vmem:[#allocation25_spill] sm:$0xff] %v2764_v62  ;;  %v1678_v62 = vmul.f32 %v1677_v8, %v2697_v34  ;;  %v2778_v24 = vld [vmem:[#allocation2 + $0x3] sm:$0xff] }
 0x498   : > { %1018 = vrot.lane.b32.xlu1 %v1013_v2, %s2227_s20  ;;  %1044 = vrot.lane.b32.xlu0 %v1040_v21, %s2223_s21  ;;  %v1679_v21 = vmul.f32 %v1677_v8, %v2710_v51 }
 0x49a   : > { %v2772_v44 = vpop.permute.xlu1 %1316  ;;  %v2774_v31 = vpop.permute.xlu0 %1342 }
 0x49b   : > { %3233 = vst [vmem:[#allocation26_spill] sm:$0xff] %v2772_v44  ;;  %3234 = vst [vmem:[#allocation27_spill] sm:$0xff] %v2774_v31  ;;  %v1084_v31 = vmul.f32 %v1083_v16, %v2778_v24  ;;  %v2789_v44 = vld [vmem:[#allocation2 + $0xb] sm:$0xff] }
 0x49c   : > { %1046 = vrot.lane.b32.xlu1 %v1041_v35, %s2223_s21  ;;  %1682 = vrot.lane.b32.xlu0 %v1678_v62, %s2219_s27  ;;  %v1085_v62 = vmul.f32 %v1083_v16, %v2789_v44 }
 0x49e   : > { %v2783_v2 = vpop.permute.xlu1 %1344  ;;  %v2785_v54 = vpop.permute.xlu0 %1370 }
 0x49f   : > { %3235 = vst [vmem:[#allocation28_spill] sm:$0xff] %v2783_v2  ;;  %3236 = vst [vmem:[#allocation29_spill] sm:$0xff] %v2785_v54  ;;  %v1112_v54 = vmul.f32 %v1111_v49, %v2778_v24  ;;  %v1139_v2 = vstv %s1961_s7  ;;  %s2896_s7 = sld [smem:[#allocation9 + $0x7]] }
 0x4a0   : > { %1684 = vrot.lane.b32.xlu1 %v1679_v21, %s2219_s27  ;;  %1088 = vrot.lane.b32.xlu0 %v1084_v31, %s2225_s13  ;;  %v1113_v31 = vmul.f32 %v1111_v49, %v2789_v44  ;;  %v1140_v21 = vmul.f32 %v1139_v2, %v2778_v24 }
 0x4a2   : > { %v2794_v30 = vpop.permute.xlu1 %1372  ;;  %v2796_v35 = vpop.permute.xlu0 %1398 }
 0x4a3   : > { %3237 = vst [vmem:[#allocation30_spill] sm:$0xff] %v2794_v30  ;;  %3238 = vst [vmem:[#allocation31_spill] sm:$0xff] %v2796_v35  ;;  %v1167_v30 = vstv %s1963_s5  ;;  %s2899_s5 = sld [smem:[#allocation9 + $0x24]] }
 0x4a4   : > { %1090 = vrot.lane.b32.xlu1 %v1085_v62, %s2225_s13  ;;  %1116 = vrot.lane.b32.xlu0 %v1112_v54, %s2219_s27  ;;  %v1141_v54 = vmul.f32 %v1139_v2, %v2789_v44  ;;  %v1168_v62 = vmul.f32 %v1167_v30, %v2778_v24 }
 0x4a6   : > { %v2802_v8 = vpop.permute.xlu1 %1400  ;;  %v2804_v25 = vpop.permute.xlu0 %1426 }
 0x4a7   : > { %3239 = vst [vmem:[#allocation32_spill] sm:$0xff] %v2802_v8  ;;  %3240 = vst [vmem:[#allocation33_spill] sm:$0xff] %v2804_v25  ;;  %v1195_v8 = vstv %s1965_s8  ;;  %s2903_s8 = sld [smem:[#allocation9 + $0x87]] }
 0x4a8   : > { %1118 = vrot.lane.b32.xlu1 %v1113_v31, %s2219_s27  ;;  %1144 = vrot.lane.b32.xlu0 %v1140_v21, %s2226_s29  ;;  %v1169_v31 = vmul.f32 %v1167_v30, %v2789_v44  ;;  %v1196_v21 = vmul.f32 %v1195_v8, %v2778_v24 }
 0x4aa   : > { %v2810_v16 = vpop.permute.xlu1 %1428  ;;  %v2812_v35 = vpop.permute.xlu0 %1470 }
 0x4ab   : > { %3241 = vst [vmem:[#allocation34_spill] sm:$0xff] %v2810_v16  ;;  %3242 = vst [vmem:[#allocation35_spill] sm:$0xff] %v2812_v35  ;;  %v1223_v16 = vstv %s1967_s9  ;;  %v1295_v35 = vstv %s2834_s23  ;;  %s2910_s9 = sld [smem:[#allocation9 + $0x25]] }
 0x4ac   : > { %1146 = vrot.lane.b32.xlu1 %v1141_v54, %s2226_s29  ;;  %1172 = vrot.lane.b32.xlu0 %v1168_v62, %s2221_s12  ;;  %v1197_v62 = vmul.f32 %v1195_v8, %v2789_v44  ;;  %v1267_v8 = vstv %s2824_s11  ;;  %s2937_s11 = sld [smem:[#allocation9 + $0x27]] }
 0x4ad   : > { %s2948_s23 = sld [smem:[#allocation9 + $0x28]] }
 0x4ae   : > { %v2818_v49 = vpop.permute.xlu1 %1472  ;;  %v2820_v25 = vpop.permute.xlu0 %1498 }
 0x4af   : > { %3243 = vst [vmem:[#allocation36_spill] sm:$0xff] %v2818_v49  ;;  %3244 = vst [vmem:[#allocation37_spill] sm:$0xff] %v2820_v25  ;;  %v1224_v25 = vmul.f32 %v1223_v16, %v2778_v24  ;;  %v1705_v49 = vstv %s2004_s10  ;;  %s2922_s10 = sld [smem:[#allocation9 + $0x26]] }
 0x4b0   : > { %1174 = vrot.lane.b32.xlu1 %v1169_v31, %s2221_s12  ;;  %1200 = vrot.lane.b32.xlu0 %v1196_v21, %s2227_s20  ;;  %v1225_v21 = vmul.f32 %v1223_v16, %v2789_v44 }
 0x4b2   : > { %v2828_v2 = vpop.permute.xlu1 %1500  ;;  %v2830_v54 = vpop.permute.xlu0 %1526 }
 0x4b3   : > { %3245 = vst [vmem:[#allocation38_spill] sm:$0xff] %v2828_v2  ;;  %3246 = vst [vmem:[#allocation39_spill] sm:$0xff] %v2830_v54  ;;  %v1706_v54 = vmul.f32 %v1705_v49, %v2697_v34  ;;  %v2844_v2 = vld [vmem:[#allocation2 + $0x4] sm:$0xff] }
 0x4b4   : > { %1202 = vrot.lane.b32.xlu1 %v1197_v62, %s2227_s20  ;;  %1228 = vrot.lane.b32.xlu0 %v1224_v25, %s2223_s21  ;;  %v1268_v16 = vmul.f32 %v1267_v8, %v2844_v2 }
 0x4b6   : > { %v2838_v30 = vpop.permute.xlu1 %1528  ;;  %v2840_v31 = vpop.permute.xlu0 %1554 }
 0x4b7   : > { %3247 = vst [vmem:[#allocation40_spill] sm:$0xff] %v2838_v30  ;;  %3248 = vst [vmem:[#allocation41_spill] sm:$0xff] %v2840_v31  ;;  %v1707_v31 = vmul.f32 %v1705_v49, %v2710_v51  ;;  %v2857_v30 = vld [vmem:[#allocation2 + $0xc] sm:$0xff] }
 0x4b8   : > { %1230 = vrot.lane.b32.xlu1 %v1225_v21, %s2223_s21  ;;  %1710 = vrot.lane.b32.xlu0 %v1706_v54, %s2226_s29 }
 0x4ba   : > { %v2851_v62 = vpop.permute.xlu1 %1556  ;;  %v2853_v25 = vpop.permute.xlu0 %1582 }
 0x4bb   : > { %3249 = vst [vmem:[#allocation42_spill] sm:$0xff] %v2851_v62  ;;  %3250 = vst [vmem:[#allocation43_spill] sm:$0xff] %v2853_v25  ;;  %v1269_v62 = vmul.f32 %v1267_v8, %v2857_v30  ;;  %v1296_v25 = vmul.f32 %v1295_v35, %v2844_v2  ;;  %v1324_v8 = vmul.f32 %v1323_v15, %v2844_v2 }
 0x4bc   : > { %1712 = vrot.lane.b32.xlu1 %v1707_v31, %s2226_s29  ;;  %1272 = vrot.lane.b32.xlu0 %v1268_v16, %s2225_s13 }
 0x4be   : > { %v2864_v21 = vpop.permute.xlu1 %1584  ;;  %v537_v54 = vpop.permute.xlu0 %536 }
 0x4bf   : > { %3251 = vst [vmem:[#allocation44_spill] sm:$0xff] %v2864_v21  ;;  %v542_v49 = vadd.f32 %v537_v54, %v2466_v5  ;;  %v1297_v21 = vmul.f32 %v1295_v35, %v2857_v30  ;;  %v1351_v5 = vstv %s2860_s24  ;;  %v1325_v35 = vmul.f32 %v1323_v15, %v2857_v30  ;;  %s2965_s24 = sld [smem:[#allocation9 + $0xaf]] }
 0x4c0   : > { %1274 = vrot.lane.b32.xlu1 %v1269_v62, %s2225_s13  ;;  %1300 = vrot.lane.b32.xlu0 %v1296_v25, %s2219_s27  ;;  %v1353_v15 = vmul.f32 %v1351_v5, %v2857_v30 }
 0x4c1   : > { %v556_v31 = vadd.f32 %v2527_v36, %v542_v49  ;;  %v1352_v49 = vmul.f32 %v1351_v5, %v2844_v2 }
 0x4c2   : > { %v539_v16 = vpop.permute.xlu1 %538  ;;  %v565_v14 = vpop.permute.xlu0 %564 }
 0x4c3   : > { %v543_v60 = vadd.f32 %v539_v16, %v2472_v12  ;;  %v570_v59 = vadd.f32 %v565_v14, %v556_v31  ;;  %v1379_v31 = vstv %s2870_s6  ;;  %s2973_s6 = sld [smem:[#allocation9 + $0xe]] }
 0x4c4   : > { %1302 = vrot.lane.b32.xlu1 %v1297_v21, %s2219_s27  ;;  %1328 = vrot.lane.b32.xlu0 %v1324_v8, %s2226_s29  ;;  %v1380_v21 = vmul.f32 %v1379_v31, %v2844_v2 }
 0x4c5   : > { %v557_v62 = vadd.f32 %v2535_v41, %v543_v60  ;;  %v584_v36 = vadd.f32 %v2537_v42, %v570_v59 }
 0x4c6   : > { %v567_v25 = vpop.permute.xlu1 %566  ;;  %v593_v54 = vpop.permute.xlu0 %592 }
 0x4c7   : > { %v571_v12 = vadd.f32 %v567_v25, %v557_v62  ;;  %v598_v14 = vadd.f32 %v593_v54, %v584_v36  ;;  %v1407_v62 = vstv %s2879_s30  ;;  %v1381_v25 = vmul.f32 %v1379_v31, %v2857_v30  ;;  %s2976_s30 = sld [smem:[#allocation9 + $0x2b]] }
 0x4c8   : > { %1330 = vrot.lane.b32.xlu1 %v1325_v35, %s2226_s29  ;;  %1356 = vrot.lane.b32.xlu0 %v1352_v49, %s2221_s12  ;;  %v1408_v54 = vmul.f32 %v1407_v62, %v2844_v2 }
 0x4c9   : > { %v585_v41 = vadd.f32 %v2545_v47, %v571_v12  ;;  %v612_v42 = vadd.f32 %v2547_v48, %v598_v14  ;;  %v1733_v12 = vstv %s2888_s4  ;;  %s2980_s4 = sld [smem:[#allocation9 + $0x8e]] }
 0x4ca   : > { %v595_v59 = vpop.permute.xlu1 %594  ;;  %v621_v60 = vpop.permute.xlu0 %620 }
 0x4cb   : > { %v599_v16 = vadd.f32 %v595_v59, %v585_v41  ;;  %v626_v8 = vadd.f32 %v621_v60, %v612_v42  ;;  %v701_v41 = vstv %s2896_s7  ;;  %v1409_v42 = vmul.f32 %v1407_v62, %v2857_v30  ;;  %s2987_s7 = sld [smem:[#allocation9 + $0x2c]] }
 0x4cc   : > { %1358 = vrot.lane.b32.xlu1 %v1353_v15, %s2221_s12  ;;  %1384 = vrot.lane.b32.xlu0 %v1380_v21, %s2227_s20  ;;  %v1734_v59 = vmul.f32 %v1733_v12, %v2697_v34  ;;  %v2919_v21 = vld [vmem:[#allocation2 + $0x5] sm:$0xff] }
 0x4cd   : > { %v613_v47 = vadd.f32 %v2554_v52, %v599_v16  ;;  %v640_v48 = vadd.f32 %v2556_v53, %v626_v8  ;;  %v1451_v16 = vstv %s2899_s5  ;;  %v709_v8 = vstv %s2903_s8  ;;  %s2999_s5 = sld [smem:[#allocation9 + $0x2d]] }
 0x4ce   : > { %v623_v5 = vpop.permute.xlu1 %622  ;;  %v649_v36 = vpop.permute.xlu0 %648  ;;  %s3014_s8 = sld [smem:[#allocation9 + $0x2e]] }
 0x4cf   : > { %v627_v35 = vadd.f32 %v623_v5, %v613_v47  ;;  %v654_v49 = vadd.f32 %v649_v36, %v640_v48  ;;  %v1735_v5 = vmul.f32 %v1733_v12, %v2710_v51  ;;  %v1452_v36 = vmul.f32 %v1451_v16, %v2919_v21 }
 0x4d0   : > { %1386 = vrot.lane.b32.xlu1 %v1381_v25, %s2227_s20  ;;  %1412 = vrot.lane.b32.xlu0 %v1408_v54, %s2223_s21  ;;  %v2089_v25 = vld [vmem:[#allocation3 + $0x1] sm:$0xff] }
 0x4d1   : > { %v641_v52 = vadd.f32 %v2562_v57, %v627_v35  ;;  %v668_v53 = vadd.f32 %v2564_v58, %v654_v49  ;;  %v702_v58 = vmul.f32 %v701_v41, %v2636_v45  ;;  %v710_v54 = vmul.f32 %v2089_v25, %v709_v8 }
 0x4d2   : > { %v651_v14 = vpop.permute.xlu1 %650  ;;  %v677_v31 = vpop.permute.xlu0 %676  ;;  %v703_v45 = vmul.f32 %v701_v41, %v2650_v39 }
 0x4d3   : > { %v655_v60 = vadd.f32 %v651_v14, %v641_v52  ;;  %v682_v15 = vadd.f32 %v677_v31, %v668_v53  ;;  %v2934_v52 = vld [vmem:[#allocation2 + $0xd] sm:$0xff]  ;;  %v1479_v53 = vstv %s2910_s9  ;;  %s3025_s9 = sld [smem:[#allocation9 + $0x2f]] }
 0x4d4   : > { %1414 = vrot.lane.b32.xlu1 %v1409_v42, %s2223_s21  ;;  %1738 = vrot.lane.b32.xlu0 %v1734_v59, %s2221_s12  ;;  %v1453_v31 = vmul.f32 %v1451_v16, %v2934_v52  ;;  %v1480_v42 = vmul.f32 %v1479_v53, %v2919_v21  ;;  %v2090_v59 = vld [vmem:[#allocation3 + $0x9] sm:$0xff]  ;;  %v1481_v16 = vmul.f32 %v1479_v53, %v2934_v52 }
 0x4d5   : > { %v669_v57 = vadd.f32 %v2570_v63, %v655_v60  ;;  %v696_v62 = vadd.f32 %v2572_v0, %v682_v15  ;;  %v711_v60 = vmul.f32 %v2090_v59, %v709_v8 }
 0x4d6   : > { %v679_v47 = vpop.permute.xlu1 %678  ;;  %v2930_v48 = vpop.permute.xlu0 %1610 }
 0x4d7   : > { %v704_v35 = vadd.f32 %v702_v58, %v696_v62  ;;  %v683_v49 = vadd.f32 %v679_v47, %v669_v57  ;;  %v1507_v58 = vstv %s2922_s10  ;;  %s3033_s10 = sld [smem:[#allocation9 + $0x30]] }
 0x4d8   : > { %1740 = vrot.lane.b32.xlu1 %v1735_v5, %s2221_s12  ;;  %1456 = vrot.lane.b32.xlu0 %v1452_v36, %s2225_s13  ;;  %v1508_v47 = vmul.f32 %v1507_v58, %v2919_v21  ;;  %v1535_v36 = vstv %s2937_s11  ;;  %s3109_s11 = sld [smem:[#allocation9 + $0xa3]] }
 0x4d9   : > { %v712_v63 = vadd.f32 %v710_v54, %v704_v35  ;;  %v697_v0 = vadd.f32 %v2578_v6, %v683_v49  ;;  %v1509_v49 = vmul.f32 %v1507_v58, %v2934_v52  ;;  %v1536_v53 = vmul.f32 %v1535_v36, %v2919_v21 }
 0x4da   : > { %v2943_v12 = vpop.permute.xlu1 %1612  ;;  %v721_v14 = vpop.permute.xlu0 %720 }
 0x4db   : > { %v705_v15 = vadd.f32 %v703_v45, %v697_v0  ;;  %v726_v57 = vadd.f32 %v721_v14, %v712_v63  ;;  %v1563_v45 = vstv %s2948_s23  ;;  %s1997_s23 = sld [smem:[#allocation9 + $0x2a]] }
 0x4dc   : > { %1458 = vrot.lane.b32.xlu1 %v1453_v31, %s2225_s13  ;;  %1484 = vrot.lane.b32.xlu0 %v1480_v42, %s2219_s27  ;;  %v1537_v42 = vmul.f32 %v1535_v36, %v2934_v52  ;;  %v1564_v59 = vmul.f32 %v1563_v45, %v2919_v21 }
 0x4dd   : > { %v713_v6 = vadd.f32 %v711_v60, %v705_v15  ;;  %v740_v39 = vadd.f32 %v2580_v7, %v726_v57  ;;  %v1591_v57 = vstv %s2956_s28  ;;  %s3130_s28 = sld [smem:[#allocation9 + $0xaa]] }
 0x4de   : > { %v723_v41 = vpop.permute.xlu1 %722  ;;  %v749_v62 = vpop.permute.xlu0 %748 }
 0x4df   : > { %v727_v8 = vadd.f32 %v723_v41, %v713_v6  ;;  %v754_v5 = vadd.f32 %v749_v62, %v740_v39  ;;  %v1565_v39 = vmul.f32 %v1563_v45, %v2934_v52  ;;  %v1592_v41 = vmul.f32 %v1591_v57, %v2919_v21 }
 0x4e0   : > { %1486 = vrot.lane.b32.xlu1 %v1481_v16, %s2219_s27  ;;  %1512 = vrot.lane.b32.xlu0 %v1508_v47, %s2226_s29  ;;  %v1761_v47 = vstv %s2965_s24  ;;  %s1913_s24 = sshll.u32 %s2374_s18, 4 }
 0x4e1   : > { %v741_v25 = vadd.f32 %v2586_v11, %v727_v8  ;;  %v768_v7 = vadd.f32 %v2588_v13, %v754_v5  ;;  %v885_v5 = vstv %s2973_s6  ;;  %s203_s6 = scalar_lea.vmem [#allocation10], %s1913_s24 }
 0x4e2   : > { %v751_v54 = vpop.permute.xlu1 %750  ;;  %v777_v35 = vpop.permute.xlu0 %776 }
 0x4e3   : > { %v755_v63 = vadd.f32 %v751_v54, %v741_v25  ;;  %v782_v0 = vadd.f32 %v777_v35, %v768_v7  ;;  %v1593_v25 = vmul.f32 %v1591_v57, %v2934_v52  ;;  %v1762_v7 = vmul.f32 %v1761_v47, %v2697_v34 }
 0x4e4   : > { %1514 = vrot.lane.b32.xlu1 %v1509_v49, %s2226_s29  ;;  %1540 = vrot.lane.b32.xlu0 %v1536_v53, %s2221_s12  ;;  %v2996_v49 = vld [vmem:[#allocation2 + $0x6] sm:$0xff]  ;;  %v1635_v53 = vstv %s2976_s30  ;;  %v1663_v57 = vstv %s2987_s7  ;;  %s1818_s30 = sshll.u32 %s203_s6, 4  ;;  %s3153_s30 = int_to_ptr.vmem [resolvable:$true] %s1818_s30 }
 0x4e5   : > { %v769_v11 = vadd.f32 %v2594_v17, %v755_v63  ;;  %v796_v13 = vadd.f32 %v2596_v18, %v782_v0  ;;  %v893_v63 = vstv %s2980_s4  ;;  %s2017_s4 = sshll.u32 %s2275_s2, 8  ;;  %s2228_s2 = smov [#allocation10]  }
 0x4e6   : > { %v779_v14 = vpop.permute.xlu1 %778  ;;  %v805_v31 = vpop.permute.xlu0 %804 }
 0x4e7   : > { %v783_v60 = vadd.f32 %v779_v14, %v769_v11  ;;  %v810_v15 = vadd.f32 %v805_v31, %v796_v13  ;;  %v1763_v13 = vmul.f32 %v1761_v47, %v2710_v51  ;;  %v1636_v14 = vmul.f32 %v1635_v53, %v2996_v49  ;;  %v2091_v31 = vld [vmem:[#allocation3 + $0x2] sm:$0xff] }
 0x4e8   : > { %1542 = vrot.lane.b32.xlu1 %v1537_v42, %s2221_s12  ;;  %1568 = vrot.lane.b32.xlu0 %v1564_v59, %s2227_s20  ;;  %v894_v42 = vmul.f32 %v2091_v31, %v893_v63  ;;  %v1691_v47 = vstv %s2999_s5 }
 0x4e9   : > { %v797_v17 = vadd.f32 %v2602_v22, %v783_v60  ;;  %v824_v18 = vadd.f32 %v2604_v23, %v810_v15  ;;  %v3011_v15 = vld [vmem:[#allocation2 + $0xe] sm:$0xff] }
 0x4ea   : > { %v807_v58 = vpop.permute.xlu1 %806  ;;  %v833_v6 = vpop.permute.xlu0 %832 }
 0x4eb   : > { %v811_v62 = vadd.f32 %v807_v58, %v797_v17  ;;  %v838_v16 = vadd.f32 %v833_v6, %v824_v18  ;;  %v1637_v58 = vmul.f32 %v1635_v53, %v3011_v15  ;;  %v1664_v6 = vmul.f32 %v1663_v57, %v2996_v49 }
 0x4ec   : > { %1570 = vrot.lane.b32.xlu1 %v1565_v39, %s2227_s20  ;;  %1596 = vrot.lane.b32.xlu0 %v1592_v41, %s2223_s21  ;;  %v2092_v39 = vld [vmem:[#allocation3 + $0xa] sm:$0xff] }
 0x4ed   : > { %v825_v22 = vadd.f32 %v2610_v27, %v811_v62  ;;  %v852_v23 = vadd.f32 %v2612_v28, %v838_v16  ;;  %v886_v28 = vmul.f32 %v885_v5, %v2712_v4  ;;  %v895_v41 = vmul.f32 %v2092_v39, %v893_v63 }
 0x4ee   : > { %v835_v8 = vpop.permute.xlu1 %834  ;;  %v861_v36 = vpop.permute.xlu0 %860  ;;  %v1693_v63 = vmul.f32 %v1691_v47, %v3011_v15 }
 0x4ef   : > { %v839_v54 = vadd.f32 %v835_v8, %v825_v22  ;;  %v866_v35 = vadd.f32 %v861_v36, %v852_v23  ;;  %v1665_v8 = vmul.f32 %v1663_v57, %v3011_v15  ;;  %v1775_v57 = vstv %s3033_s10  ;;  %s2144_s10 = scalar_lea.vmem %s3153_s30, 256 }
 0x4f0   : > { %1598 = vrot.lane.b32.xlu1 %v1593_v25, %s2223_s21  ;;  %1766 = vrot.lane.b32.xlu0 %v1762_v7, %s2227_s20  ;;  %v1719_v7 = vstv %s3014_s8  ;;  %s3158_s8 = scalar_lea.hbm %s3205_s3, %s2017_s4  ;;  %p2145_p12 = scmp.ne.s32.totalorder %s3153_s30, %s2144_s10 }
 0x4f1   : > { %v853_v27 = vadd.f32 %v2620_v32, %v839_v54  ;;  %v880_v0 = vadd.f32 %v2622_v33, %v866_v35  ;;  %v887_v33 = vmul.f32 %v885_v5, %v2723_v3  ;;  %v1692_v5 = vmul.f32 %v1691_v47, %v2996_v49 }
 0x4f2   : > { %v863_v45 = vpop.permute.xlu1 %862  ;;  %v3007_v11 = vpop.permute.xlu0 %1654  ;;  %v1721_v31 = vmul.f32 %v1719_v7, %v3011_v15  ;;  %p2146_p2 = pnand %p2145_p12, %p3283_p0 }
 0x4f3   : > { %v888_v59 = vadd.f32 %v886_v28, %v880_v0  ;;  %v867_v60 = vadd.f32 %v863_v45, %v853_v27  ;;  %v1720_v27 = vmul.f32 %v1719_v7, %v2996_v49  ;;  %v1747_v45 = vstv %s3025_s9  ;;  %s1805_s9 = scalar_lea.sflag [#allocation7], %s2374_s18 }
 0x4f4   : > { %1768 = vrot.lane.b32.xlu1 %v1763_v13, %s2227_s20  ;;  %1640 = vrot.lane.b32.xlu0 %v1636_v14, %s2225_s13  ;;  %p2147_p7 = pneg %p2146_p2 }
 0x4f5   : > { %v896_v32 = vadd.f32 %v894_v42, %v888_v59  ;;  %v881_v4 = vadd.f32 %v2630_v38, %v867_v60  ;;  %v1748_v42 = vmul.f32 %v1747_v45, %v2996_v49 }
 0x4f6   : > { %v3020_v17 = vpop.permute.xlu1 %1656  ;;  %v905_v18 = vpop.permute.xlu0 %904 }
 0x4f7   : > { %v889_v62 = vadd.f32 %v887_v33, %v881_v4  ;;  %v910_v16 = vadd.f32 %v905_v18, %v896_v32  ;;  %v1749_v4 = vmul.f32 %v1747_v45, %v3011_v15  ;;  %v1776_v18 = vmul.f32 %v1775_v57, %v2996_v49 }
 0x4f8   : > { %1642 = vrot.lane.b32.xlu1 %v1637_v58, %s2225_s13  ;;  %1668 = vrot.lane.b32.xlu0 %v1664_v6, %s2219_s27  ;;  %s3042_s13 = sld [smem:[#allocation9 + $0xb0]] }
 0x4f9   : > { %v897_v38 = vadd.f32 %v895_v41, %v889_v62  ;;  %v924_v3 = vadd.f32 %v2632_v40, %v910_v16  ;;  %v1777_v16 = vmul.f32 %v1775_v57, %v3011_v15  ;;  %v3252_v57 = vld [vmem:[#allocation14_spill] sm:$0xff] }
 0x4fa   : > { %v907_v22 = vpop.permute.xlu1 %906  ;;  %v933_v23 = vpop.permute.xlu0 %932 }
 0x4fb   : > { %v911_v36 = vadd.f32 %v907_v22, %v897_v38  ;;  %v938_v25 = vadd.f32 %v933_v23, %v924_v3 }
 0x4fc   : > { %1670 = vrot.lane.b32.xlu1 %v1665_v8, %s2219_s27  ;;  %1696 = vrot.lane.b32.xlu0 %v1692_v5, %s2226_s29  ;;  %s3050_s27 = sld [smem:[#allocation9 + $0x15]] }
 0x4fd   : > { %v925_v54 = vadd.f32 %v2643_v61, %v911_v36  ;;  %v952_v40 = vadd.f32 %v2645_v50, %v938_v25 }
 0x4fe   : > { %v935_v35 = vpop.permute.xlu1 %934  ;;  %v961_v53 = vpop.permute.xlu0 %960  ;;  %v1789_v39 = vstv %s3042_s13  ;;  %s2148_s13 = sshll.u32 %s2228_s2, 4  ;;  %s2149_s13 = int_to_ptr.vmem [resolvable:$false] %s2148_s13 }
 0x4ff   : > { %v939_v28 = vadd.f32 %v935_v35, %v925_v54  ;;  %v966_v0 = vadd.f32 %v961_v53, %v952_v40  ;;  %v1790_v47 = vmul.f32 %v1789_v39, %v2697_v34  ;;  %v1791_v25 = vmul.f32 %v1789_v39, %v2710_v51  ;;  %v2093_v54 = vld [vmem:[#allocation3 + $0x3] sm:$0xff]  ;;  %p2151_p8 = scmp.lt.s32.totalorder %s3153_s30, %s2149_s13 }
 0x500   : > { %1698 = vrot.lane.b32.xlu1 %v1693_v63, %s2226_s29  ;;  %1724 = vrot.lane.b32.xlu0 %v1720_v27, %s2221_s12  ;;  %s3055_s29 = sld [smem:[#allocation9 + $0x95]]  ;;  %v2094_v27 = vld [vmem:[#allocation3 + $0xb] sm:$0xff] }
 0x501   : > { %v953_v61 = vadd.f32 %v2654_v55, %v939_v28  ;;  %v980_v50 = vadd.f32 %v2656_v56, %v966_v0 }
 0x502   : > { %v963_v13 = vpop.permute.xlu1 %962  ;;  %v989_v14 = vpop.permute.xlu0 %988  ;;  %v1069_v38 = vstv %s3050_s27  ;;  %s2150_s27 = scalar_lea.vmem %s2149_s13, 512 }
 0x503   : > { %v967_v59 = vadd.f32 %v963_v13, %v953_v61  ;;  %v994_v60 = vadd.f32 %v989_v14, %v980_v50  ;;  %p2152_p9 = scmp.lt.s32.totalorder %s2150_s27, %s2144_s10 }
 0x504   : > { %1726 = vrot.lane.b32.xlu1 %v1721_v31, %s2221_s12  ;;  %1752 = vrot.lane.b32.xlu0 %v1748_v42, %s2227_s20  ;;  %s1969_s12 = sld [smem:[#allocation9 + $0x1c]] }
 0x505   : > { %v981_v55 = vadd.f32 %v2663_v46, %v967_v59  ;;  %v1008_v56 = vadd.f32 %v2665_v1, %v994_v60  ;;  %p2153_p10 = por %p2152_p9, %p2151_p8 }
 0x506   : > { %v991_v32 = vpop.permute.xlu1 %990  ;;  %v1017_v33 = vpop.permute.xlu0 %1016  ;;  %v1077_v23 = vstv %s3055_s29 }
 0x507   : > { %v995_v58 = vadd.f32 %v991_v32, %v981_v55  ;;  %v1022_v6 = vadd.f32 %v1017_v33, %v1008_v56  ;;  %v1078_v40 = vmul.f32 %v2093_v54, %v1077_v23  ;;  %v1079_v28 = vmul.f32 %v2094_v27, %v1077_v23  ;;  %v3253_v56 = vld [vmem:[#allocation15_spill] sm:$0xff]  ;;  %v3260_v27 = vld [vmem:[#allocation22_spill] sm:$0xff]  ;;  %p2154_p1 = pnand %p2153_p10, %p2147_p7 }
 0x508   : > { %1754 = vrot.lane.b32.xlu1 %v1749_v4, %s2227_s20  ;;  %1780 = vrot.lane.b32.xlu0 %v1776_v18, %s2223_s21  ;;  %s1983_s20 = sld [smem:[#allocation9 + $0x23]] }
 0x509   : > { %v1009_v41 = vadd.f32 %v2671_v9, %v995_v58  ;;  %v1036_v46 = vadd.f32 %v2673_v10, %v1022_v6  ;;  %v1070_v10 = vmul.f32 %v1069_v38, %v2778_v24  ;;  %v3254_v58 = vld [vmem:[#allocation16_spill] sm:$0xff]  ;;  %v3255_v6 = vld [vmem:[#allocation17_spill] sm:$0xff] }
 0x50a   : > { %v1019_v1 = vpop.permute.xlu1 %1018  ;;  %v1045_v62 = vpop.permute.xlu0 %1044  ;;  %v1253_v23 = vstv %s1969_s12 }
 0x50b   : > { %v1023_v3 = vadd.f32 %v1019_v1, %v1009_v41  ;;  %v1050_v22 = vadd.f32 %v1045_v62, %v1036_v46  ;;  %v3256_v62 = vld [vmem:[#allocation18_spill] sm:$0xff]  ;;  %v1254_v54 = vmul.f32 %v1253_v23, %v2844_v2 }
 0x50c   : > { %1782 = vrot.lane.b32.xlu1 %v1777_v16, %s2223_s21  ;;  %1794 = vrot.lane.b32.xlu0 %v1790_v47, %s2223_s21  ;;  %v3257_v47 = vld [vmem:[#allocation19_spill] sm:$0xff] }
 0x50d   : > { %v1064_v8 = vadd.f32 %v2683_v20, %v1050_v22  ;;  %v1037_v9 = vadd.f32 %v2681_v19, %v1023_v3  ;;  %v1071_v20 = vmul.f32 %v1069_v38, %v2789_v44 }
 0x50e   : > { %v1047_v5 = vpop.permute.xlu1 %1046  ;;  %v3075_v36 = vpop.permute.xlu0 %1682 }
 0x50f   : > { %v1051_v34 = vadd.f32 %v1047_v5, %v1037_v9  ;;  %v1072_v7 = vadd.f32 %v1070_v10, %v1064_v8  ;;  %v3258_v5 = vld [vmem:[#allocation21_spill] sm:$0xff] }
 0x510   : > { %1796 = vrot.lane.b32.xlu1 %v1791_v25, %s2223_s21  ;;  %s3088_s21 = sld [smem:[#allocation9 + $0x9c]] }
 0x511   : > { %v1065_v35 = vadd.f32 %v2691_v26, %v1051_v34  ;;  %v1080_v53 = vadd.f32 %v1078_v40, %v1072_v7  ;;  %v3259_v34 = vld [vmem:[#allocation20_spill] sm:$0xff] }
 0x512   : > { %v3081_v63 = vpop.permute.xlu1 %1684  ;;  %v1089_v19 = vpop.permute.xlu0 %1088 }
 0x513   : > { %v1094_v24 = vadd.f32 %v1089_v19, %v1080_v53  ;;  %v1073_v0 = vadd.f32 %v1071_v20, %v1065_v35  ;;  %v2095_v19 = vld [vmem:[#allocation3 + $0x4] sm:$0xff] }
 0x515   : > { %v1081_v45 = vadd.f32 %v1079_v28, %v1073_v0  ;;  %v1108_v51 = vadd.f32 %v2693_v29, %v1094_v24 }
 0x516   : > { %v1091_v61 = vpop.permute.xlu1 %1090  ;;  %v1117_v50 = vpop.permute.xlu0 %1116  ;;  %v1261_v10 = vstv %s3088_s21 }
 0x517   : > { %v1095_v13 = vadd.f32 %v1091_v61, %v1081_v45  ;;  %v1122_v14 = vadd.f32 %v1117_v50, %v1108_v51  ;;  %v1262_v24 = vmul.f32 %v2095_v19, %v1261_v10  ;;  %v1255_v45 = vmul.f32 %v1253_v23, %v2857_v30  ;;  %v3270_v19 = vld [vmem:[#allocation33_spill] sm:$0xff] }
 0x519   : > { %v1109_v31 = vadd.f32 %v2704_v37, %v1095_v13  ;;  %v1136_v26 = vadd.f32 %v2706_v43, %v1122_v14  ;;  %v2096_v13 = vld [vmem:[#allocation3 + $0xc] sm:$0xff] }
 0x51a   : > { %v1119_v42 = vpop.permute.xlu1 %1118  ;;  %v1145_v44 = vpop.permute.xlu0 %1144  ;;  %v1263_v14 = vmul.f32 %v2096_v13, %v1261_v10 }
 0x51b   : > { %v1123_v59 = vadd.f32 %v1119_v42, %v1109_v31  ;;  %v1150_v60 = vadd.f32 %v1145_v44, %v1136_v26  ;;  %v3261_v26 = vld [vmem:[#allocation23_spill] sm:$0xff] }
 0x51d   : > { %v1137_v55 = vadd.f32 %v3252_v57, %v1123_v59  ;;  %v1164_v32 = vadd.f32 %v3253_v56, %v1150_v60 }
 0x51e   : > { %v1147_v33 = vpop.permute.xlu1 %1146  ;;  %v1173_v4 = vpop.permute.xlu0 %1172 }
 0x51f   : > { %v1151_v29 = vadd.f32 %v1147_v33, %v1137_v55  ;;  %v1178_v18 = vadd.f32 %v1173_v4, %v1164_v32  ;;  %v3262_v55 = vld [vmem:[#allocation24_spill] sm:$0xff]  ;;  %v3263_v32 = vld [vmem:[#allocation25_spill] sm:$0xff] }
 0x521   : > { %v1165_v37 = vadd.f32 %v3254_v58, %v1151_v29  ;;  %v1192_v43 = vadd.f32 %v3255_v6, %v1178_v18  ;;  %v3264_v58 = vld [vmem:[#allocation26_spill] sm:$0xff]  ;;  %v3265_v6 = vld [vmem:[#allocation27_spill] sm:$0xff] }
 0x522   : > { %v1175_v39 = vpop.permute.xlu1 %1174  ;;  %v1201_v41 = vpop.permute.xlu0 %1200 }
 0x523   : > { %v1179_v46 = vadd.f32 %v1175_v39, %v1165_v37  ;;  %v1206_v1 = vadd.f32 %v1201_v41, %v1192_v43 }
 0x525   : > { %v1193_v16 = vadd.f32 %v3256_v62, %v1179_v46  ;;  %v1220_v38 = vadd.f32 %v3257_v47, %v1206_v1  ;;  %v3266_v62 = vld [vmem:[#allocation28_spill] sm:$0xff]  ;;  %v3267_v47 = vld [vmem:[#allocation29_spill] sm:$0xff] }
 0x526   : > { %v1203_v3 = vpop.permute.xlu1 %1202  ;;  %v1229_v22 = vpop.permute.xlu0 %1228 }
 0x527   : > { %v1207_v8 = vadd.f32 %v1203_v3, %v1193_v16  ;;  %v1234_v9 = vadd.f32 %v1229_v22, %v1220_v38 }
 0x529   : > { %v1248_v25 = vadd.f32 %v3258_v5, %v1234_v9  ;;  %v1221_v7 = vadd.f32 %v3259_v34, %v1207_v8  ;;  %v3268_v9 = vld [vmem:[#allocation30_spill] sm:$0xff]  ;;  %v3269_v5 = vld [vmem:[#allocation31_spill] sm:$0xff] }
 0x52a   : > { %v1231_v40 = vpop.permute.xlu1 %1230  ;;  %v3098_v35 = vpop.permute.xlu0 %1710 }
 0x52b   : > { %v1235_v53 = vadd.f32 %v1231_v40, %v1221_v7  ;;  %v1256_v20 = vadd.f32 %v1254_v54, %v1248_v25  ;;  %v1437_v54 = vstv %s1983_s20 }
 0x52d   : > { %v1249_v28 = vadd.f32 %v3260_v27, %v1235_v53  ;;  %v1264_v0 = vadd.f32 %v1262_v24, %v1256_v20  ;;  %v1445_v20 = vstv %s3109_s11  ;;  %v3271_v27 = vld [vmem:[#allocation32_spill] sm:$0xff] }
 0x52e   : > { %v3102_v51 = vpop.permute.xlu1 %1712  ;;  %v1273_v61 = vpop.permute.xlu0 %1272 }
 0x52f   : > { %v1278_v50 = vadd.f32 %v1273_v61, %v1264_v0  ;;  %v1257_v31 = vadd.f32 %v1255_v45, %v1249_v28  ;;  %v1438_v0 = vmul.f32 %v1437_v54, %v2919_v21 }
 0x531   : > { %v1265_v2 = vadd.f32 %v1263_v14, %v1257_v31  ;;  %v1292_v42 = vadd.f32 %v3261_v26, %v1278_v50  ;;  %v2097_v14 = vld [vmem:[#allocation3 + $0x5] sm:$0xff] }
 0x532   : > { %v1275_v44 = vpop.permute.xlu1 %1274  ;;  %v1301_v59 = vpop.permute.xlu0 %1300  ;;  %v1446_v31 = vmul.f32 %v2097_v14, %v1445_v20 }
 0x533   : > { %v1279_v60 = vadd.f32 %v1275_v44, %v1265_v2  ;;  %v1306_v57 = vadd.f32 %v1301_v59, %v1292_v42  ;;  %v3272_v2 = vld [vmem:[#allocation34_spill] sm:$0xff]  ;;  %v1439_v44 = vmul.f32 %v1437_v54, %v2934_v52 }
 0x535   : > { %v1293_v56 = vadd.f32 %v3262_v55, %v1279_v60  ;;  %v1320_v33 = vadd.f32 %v3263_v32, %v1306_v57  ;;  %v2098_v55 = vld [vmem:[#allocation3 + $0xd] sm:$0xff] }
 0x536   : > { %v1303_v4 = vpop.permute.xlu1 %1302  ;;  %v1329_v30 = vpop.permute.xlu0 %1328 }
 0x537   : > { %v1307_v29 = vadd.f32 %v1303_v4, %v1293_v56  ;;  %v1334_v18 = vadd.f32 %v1329_v30, %v1320_v33  ;;  %v1447_v56 = vmul.f32 %v2098_v55, %v1445_v20  ;;  %v3273_v33 = vld [vmem:[#allocation35_spill] sm:$0xff] }
 0x538   : > { %v2099_v55 = vld [vmem:[#allocation3 + $0x6] sm:$0xff] }
 0x539   : > { %v1321_v37 = vadd.f32 %v3264_v58, %v1307_v29  ;;  %v1348_v43 = vadd.f32 %v3265_v6, %v1334_v18 }
 0x53a   : > { %v1331_v39 = vpop.permute.xlu1 %1330  ;;  %v1357_v41 = vpop.permute.xlu0 %1356 }
 0x53b   : > { %v1335_v46 = vadd.f32 %v1331_v39, %v1321_v37  ;;  %v1362_v1 = vadd.f32 %v1357_v41, %v1348_v43  ;;  %v3274_v37 = vld [vmem:[#allocation36_spill] sm:$0xff]  ;;  %v3275_v43 = vld [vmem:[#allocation37_spill] sm:$0xff] }
 0x53d   : > { %v1349_v16 = vadd.f32 %v3266_v62, %v1335_v46  ;;  %v1376_v38 = vadd.f32 %v3267_v47, %v1362_v1  ;;  %v3276_v62 = vld [vmem:[#allocation38_spill] sm:$0xff]  ;;  %v3277_v47 = vld [vmem:[#allocation39_spill] sm:$0xff] }
 0x53e   : > { %v1359_v3 = vpop.permute.xlu1 %1358  ;;  %v1385_v22 = vpop.permute.xlu0 %1384 }
 0x53f   : > { %v1363_v23 = vadd.f32 %v1359_v3, %v1349_v16  ;;  %v1390_v8 = vadd.f32 %v1385_v22, %v1376_v38 }
 0x541   : > { %v1377_v10 = vadd.f32 %v3268_v9, %v1363_v23  ;;  %v1404_v25 = vadd.f32 %v3269_v5, %v1390_v8  ;;  %v3278_v9 = vld [vmem:[#allocation40_spill] sm:$0xff]  ;;  %v3279_v5 = vld [vmem:[#allocation41_spill] sm:$0xff] }
 0x542   : > { %v1387_v34 = vpop.permute.xlu1 %1386  ;;  %v1413_v7 = vpop.permute.xlu0 %1412 }
 0x543   : > { %v1391_v40 = vadd.f32 %v1387_v34, %v1377_v10  ;;  %v1418_v53 = vadd.f32 %v1413_v7, %v1404_v25 }
 0x545   : > { %v1432_v24 = vadd.f32 %v3270_v19, %v1418_v53  ;;  %v1405_v28 = vadd.f32 %v3271_v27, %v1391_v40  ;;  %v3280_v53 = vld [vmem:[#allocation42_spill] sm:$0xff]  ;;  %v3281_v19 = vld [vmem:[#allocation43_spill] sm:$0xff] }
 0x546   : > { %v1415_v45 = vpop.permute.xlu1 %1414  ;;  %v3119_v61 = vpop.permute.xlu0 %1738 }
 0x547   : > { %v1419_v50 = vadd.f32 %v1415_v45, %v1405_v28  ;;  %v1440_v13 = vadd.f32 %v1438_v0, %v1432_v24  ;;  %v1621_v0 = vstv %s1997_s23 }
 0x549   : > { %v1433_v26 = vadd.f32 %v3272_v2, %v1419_v50  ;;  %v1448_v42 = vadd.f32 %v1446_v31, %v1440_v13  ;;  %v1629_v13 = vstv %s3130_s28  ;;  %v3282_v31 = vld [vmem:[#allocation44_spill] sm:$0xff] }
 0x54a   : > { %v3123_v59 = vpop.permute.xlu1 %1740  ;;  %v1457_v60 = vpop.permute.xlu0 %1456 }
 0x54b   : > { %v1462_v57 = vadd.f32 %v1457_v60, %v1448_v42  ;;  %v1441_v32 = vadd.f32 %v1439_v44, %v1433_v26  ;;  %v1622_v26 = vmul.f32 %v1621_v0, %v2996_v49 }
 0x54d   : > { %v1449_v21 = vadd.f32 %v1447_v56, %v1441_v32  ;;  %v1476_v4 = vadd.f32 %v3273_v33, %v1462_v57  ;;  %v1630_v56 = vmul.f32 %v2099_v55, %v1629_v13  ;;  %v1623_v33 = vmul.f32 %v1621_v0, %v3011_v15 }
 0x54e   : > { %v1459_v30 = vpop.permute.xlu1 %1458  ;;  %v1485_v29 = vpop.permute.xlu0 %1484 }
 0x54f   : > { %v1463_v18 = vadd.f32 %v1459_v30, %v1449_v21  ;;  %v1490_v58 = vadd.f32 %v1485_v29, %v1476_v4 }
 0x551   : > { %v1477_v6 = vadd.f32 %v3274_v37, %v1463_v18  ;;  %v1504_v39 = vadd.f32 %v3275_v43, %v1490_v58  ;;  %v2100_v18 = vld [vmem:[#allocation3 + $0xe] sm:$0xff] }
 0x552   : > { %v1487_v41 = vpop.permute.xlu1 %1486  ;;  %v1513_v52 = vpop.permute.xlu0 %1512 }
 0x553   : > { %v1491_v46 = vadd.f32 %v1487_v41, %v1477_v6  ;;  %v1518_v1 = vadd.f32 %v1513_v52, %v1504_v39 }
 0x555   : > { %v1505_v16 = vadd.f32 %v3276_v62, %v1491_v46  ;;  %v1532_v38 = vadd.f32 %v3277_v47, %v1518_v1 }
 0x556   : > { %v1515_v3 = vpop.permute.xlu1 %1514  ;;  %v1541_v22 = vpop.permute.xlu0 %1540 }
 0x557   : > { %v1519_v23 = vadd.f32 %v1515_v3, %v1505_v16  ;;  %v1546_v8 = vadd.f32 %v1541_v22, %v1532_v38 }
 0x559   : > { %v1533_v10 = vadd.f32 %v3278_v9, %v1519_v23  ;;  %v1560_v25 = vadd.f32 %v3279_v5, %v1546_v8 }
 0x55a   : > { %v1543_v34 = vpop.permute.xlu1 %1542  ;;  %v1569_v7 = vpop.permute.xlu0 %1568 }
 0x55b   : > { %v1547_v54 = vadd.f32 %v1543_v34, %v1533_v10  ;;  %v1574_v40 = vadd.f32 %v1569_v7, %v1560_v25 }
 0x55d   : > { %v1561_v20 = vadd.f32 %v3280_v53, %v1547_v54  ;;  %v1588_v24 = vadd.f32 %v3281_v19, %v1574_v40 }
 0x55e   : > { %v1571_v27 = vpop.permute.xlu1 %1570  ;;  %v1597_v28 = vpop.permute.xlu0 %1596 }
 0x55f   : > { %v1575_v45 = vadd.f32 %v1571_v27, %v1561_v20  ;;  %v1602_v50 = vadd.f32 %v1597_v28, %v1588_v24 }
 0x561   : > { %v1616_v14 = vadd.f32 %v2930_v48, %v1602_v50  ;;  %v1589_v2 = vadd.f32 %v3282_v31, %v1575_v45  ;;  %v1631_v48 = vmul.f32 %v2100_v18, %v1629_v13 }
 0x562   : > { %v1599_v42 = vpop.permute.xlu1 %1598  ;;  %v1767_v44 = vpop.permute.xlu0 %1766 }
 0x563   : > { %v1603_v60 = vadd.f32 %v1599_v42, %v1589_v2  ;;  %v1624_v57 = vadd.f32 %v1622_v26, %v1616_v14 }
 0x565   : > { %v1617_v32 = vadd.f32 %v2943_v12, %v1603_v60  ;;  %v1632_v21 = vadd.f32 %v1630_v56, %v1624_v57 }
 0x566   : > { %v1769_v4 = vpop.permute.xlu1 %1768  ;;  %v1641_v30 = vpop.permute.xlu0 %1640 }
 0x567   : > { %v1646_v29 = vadd.f32 %v1641_v30, %v1632_v21  ;;  %v1625_v58 = vadd.f32 %v1623_v33, %v1617_v32 }
 0x569   : > { %v1633_v37 = vadd.f32 %v1631_v48, %v1625_v58  ;;  %v1660_v49 = vadd.f32 %v3007_v11, %v1646_v29 }
 0x56a   : > { %v1643_v6 = vpop.permute.xlu1 %1642  ;;  %v1669_v43 = vpop.permute.xlu0 %1668 }
 0x56b   : > { %v1647_v39 = vadd.f32 %v1643_v6, %v1633_v37  ;;  %v1674_v41 = vadd.f32 %v1669_v43, %v1660_v49 }
 0x56d   : > { %v1661_v52 = vadd.f32 %v3020_v17, %v1647_v39  ;;  %v1688_v12 = vadd.f32 %v3075_v36, %v1674_v41 }
 0x56e   : > { %v1671_v46 = vpop.permute.xlu1 %1670  ;;  %v1697_v1 = vpop.permute.xlu0 %1696 }
 0x56f   : > { %v1675_v15 = vadd.f32 %v1671_v46, %v1661_v52  ;;  %v1702_v62 = vadd.f32 %v1697_v1, %v1688_v12 }
 0x571   : > { %v1689_v16 = vadd.f32 %v3081_v63, %v1675_v15  ;;  %v1716_v47 = vadd.f32 %v3098_v35, %v1702_v62 }
 0x572   : > { %v1699_v38 = vpop.permute.xlu1 %1698  ;;  %v1725_v3 = vpop.permute.xlu0 %1724 }
 0x573   : > { %v1703_v11 = vadd.f32 %v1699_v38, %v1689_v16  ;;  %v1730_v22 = vadd.f32 %v1725_v3, %v1716_v47 }
 0x575   : > { %v1717_v23 = vadd.f32 %v3102_v51, %v1703_v11  ;;  %v1744_v8 = vadd.f32 %v3119_v61, %v1730_v22 }
 0x576   : > { %v1727_v17 = vpop.permute.xlu1 %1726  ;;  %v1753_v9 = vpop.permute.xlu0 %1752 }
 0x577   : > { %v1731_v36 = vadd.f32 %v1727_v17, %v1717_v23  ;;  %v1758_v10 = vadd.f32 %v1753_v9, %v1744_v8 }
 0x579   : > { %v1745_v5 = vadd.f32 %v3123_v59, %v1731_v36  ;;  %v1772_v25 = vadd.f32 %v1767_v44, %v1758_v10 }
 0x57a   : > { %v1755_v63 = vpop.permute.xlu1 %1754  ;;  %v1781_v34 = vpop.permute.xlu0 %1780 }
 0x57b   : > { %v1759_v35 = vadd.f32 %v1755_v63, %v1745_v5  ;;  %v1786_v7 = vadd.f32 %v1781_v34, %v1772_v25 }
 0x57d   : > { %v1773_v54 = vadd.f32 %v1769_v4, %v1759_v35 }
 0x57e   : > { %v1783_v40 = vpop.permute.xlu1 %1782  ;;  %v1795_v51 = vpop.permute.xlu0 %1794 }
 0x57f   : > { %v1800_v61 = vadd.f32 %v1795_v51, %v1786_v7  ;;  %v1787_v53 = vadd.f32 %v1783_v40, %v1773_v54 }
 0x581   : > { %1802 = vst.msk [vmem:[%s203_s6] sm:$0xff] %vm212_vm0, %v1800_v61 }
 0x582   : > { %v1797_v59 = vpop.permute.xlu1 %1796 }
 0x583   : > { %v1801_v20 = vadd.f32 %v1797_v59, %v1787_v53 }
 0x585   : > { %1803 = vst.msk [vmem:[%s203_s6 + $0x8] sm:$0xff] %vm212_vm0, %v1801_v20 }
 0x586   : > { %2157 = shalt.err (!%p2154_p1)
}
 0x587   : > { %s2158_s29 = scalar_lea.hbm %s3158_s8, 256  ;;  %s2162_s20 = scalar_lea.hbm %s3205_s3, 512 }
 0x588   : > { %p2159_p4 = scmp.ne.s32.totalorder %s3158_s8, %s2158_s29  ;;  %p2163_p6 = scmp.lt.s32.totalorder %s3158_s8, %s3205_s3 }
 0x589   : > { %p2164_p13 = scmp.lt.s32.totalorder %s2162_s20, %s2158_s29 }
 0x58a   : > { %p2160_p11 = pnand %p2159_p4, %p3283_p0 }
 0x58b   : > { %p2165_p3 = por %p2164_p13, %p2163_p6 }
 0x58c   : > { %p2161_p5 = pneg %p2160_p11 }
 0x58e   : > { %p2166_p12 = pnand %p2165_p3, %p2161_p5 }
 0x590   : > { %2169 = shalt.err (!%p2166_p12)
}
 0x591   : > { %s2229_s28 = smov 128   ;;  %s2230_s24 = smov 8  }
 0x592   : > { %2024 = dma.vmem_to_hbm [thread:$0]  (%p3283_p0), %s3153_s30, 256, %s3158_s8, %s1805_s9, %s2229_s28, %s2229_s28, %s2230_s24  }
 0x593 PF: > { %s1833_s6 = sand.u32 1, %s2200_s14   ;;  %p3284_p2 = scmp.ne.s32.totalorder %s3213_s26, 0 }
 0x594   : > { %p3285_p7 = scmp.ge.s32.totalorder %s2212_s17, 2  ;;  %s1834_s4 = scalar_lea.sflag [#allocation7], %s1833_s6 }
 0x596   : > { %p2035_p8 = pnand %p3285_p7, %p3284_p2 }
 0x598   : > { %p2036_p9 = pneg %p2035_p8 }
 0x59a   : > { %2195 = dma.done.wait (%p2036_p9), %s1834_s4, 256  }
 0x59b   : > { %2197 = vsyncadd (%p2036_p9), %s1834_s4, 4294967040  ;;  %p18_p10 = scmp.ge.s32.totalorder %s2279_s19, 4   ;;  %s3286_s14 = smov %s2204_s15 }
 0x59c   : > { %s3287_s15 = smov %s2208_s16  ;;  %s3288_s16 = smov %s2291_s22 }
 0x59d   : > { %s3289_s17 = smov %s2279_s19  ;;  %20 = sbr.rel (!%p18_p10) target bundleno = 8 (0x8), region = 82 }
 0x5a2   :  { %1839 = vsyncpa [#allocation6], 1 }
 0x5a3   :  { %1841 = vsyncpa [#allocation6 + $0x1], 1 }
 0x5a4   :  { %1842 = vsyncpa [#allocation7], 1 }
 0x5a5   :  { %1844 = vsyncpa [#allocation7 + $0x1], 1 }
 0x5a6   :  { %1845 = vsyncpa [#allocation8], 1 }
 0x5a7   :  { %1847 = vsyncpa [#allocation8 + $0x1], 1 }

</bundles_post_ra>
